<compile_context>
chip_gen: v7x
topology: tpu7x:2x2x1
jax: 0.10.0
libtpu: 0.0.40
codegen_flags: <defaults>
</compile_context>

<pallas_src>
import functools

import jax
import jax.numpy as jnp
from jax.experimental import pallas as pl
from jax.experimental.pallas import tpu as pltpu

EPS = 1e-5


def _fused_kernel(a_ref, b_ref, w_ref, gamma_ref, beta_ref, o_ref):
    # a_ref, b_ref : (Cin, M)   residual inputs, channels-major
    # w_ref        : (Cout, Cin) 1x1-conv weight (native PyTorch layout)
    # gamma_ref    : (Cout, 1)   batchnorm scale
    # beta_ref     : (Cout, 1)   batchnorm shift
    # o_ref        : (Cout, M)

    # add + relu (VPU, f32)
    z = jnp.maximum(a_ref[...] + b_ref[...], 0.0)

    # 1x1 conv == matmul over channels (MXU). bf16 operands, f32 accumulation.
    zb = z.astype(jnp.bfloat16)
    wb = w_ref[...].astype(jnp.bfloat16)
    y = jnp.dot(wb, zb, preferred_element_type=jnp.float32)      # (Cout, M) f32

    # Batch statistics over the M axis (lane reduce), single pass over y.
    m = jnp.float32(y.shape[1])
    s1 = jnp.sum(y, axis=1, keepdims=True)                       # (Cout, 1)
    s2 = jnp.sum(y * y, axis=1, keepdims=True)                   # (Cout, 1)
    mean = s1 / m
    var = s2 / m - mean * mean                                   # biased var
    inv_std = jax.lax.rsqrt(var + EPS)

    # Folded BN epilogue: one y*scale + shift pass.
    scale = gamma_ref[...] * inv_std                             # (Cout, 1)
    shift = beta_ref[...] - mean * scale                         # (Cout, 1)
    o_ref[...] = (y * scale + shift).astype(o_ref.dtype)


def _full_spec(shape):
    return pl.BlockSpec(shape, lambda: (0,) * len(shape))


def _nchw_to_cm(x):
    """(N, C, H, W) -> (C, N*H*W). Free (metadata only) when N == 1."""
    n, c, h, w = x.shape
    if n == 1:
        return x.reshape(c, h * w)
    return jnp.transpose(x.reshape(n, c, h * w), (1, 0, 2)).reshape(c, n * h * w)


def _cm_to_nchw(x2d, n, h, w):
    c = x2d.shape[0]
    if n == 1:
        return x2d.reshape(1, c, h, w)
    return jnp.transpose(x2d.reshape(c, n, h, w), (1, 0, 2, 3))


@functools.partial(jax.jit, static_argnames=())
def fused_add_relu_conv1x1_bn(x377, x391, conv_w, bn_gamma, bn_beta):
    """x377, x391: NCHW float32; conv_w: (Cout, Cin, 1, 1); gamma/beta: (C,)."""
    n, c_in, h, w = x377.shape
    c_out = conv_w.shape[0]
    m = n * h * w

    # Layout glue is free for N=1: no transposes, no extra HBM traffic.
    a2d = _nchw_to_cm(x377)                                  # (Cin, M)
    b2d = _nchw_to_cm(x391)                                  # (Cin, M)
    w2d = conv_w.reshape(c_out, c_in)                        # (Cout, Cin) native
    gamma2d = bn_gamma.reshape(c_out, 1)
    beta2d = bn_beta.reshape(c_out, 1)

    cost = pl.CostEstimate(
        flops=2 * m * c_in * c_out + 8 * c_out * m,
        transcendentals=c_out,
        bytes_accessed=(2 * c_in * m + c_in * c_out + c_out * m + 2 * c_out) * 4,
    )

    out2d = pl.pallas_call(
        _fused_kernel,
        out_shape=jax.ShapeDtypeStruct((c_out, m), jnp.float32),
        in_specs=[
            _full_spec((c_in, m)),
            _full_spec((c_in, m)),
            _full_spec((c_out, c_in)),
            _full_spec((c_out, 1)),
            _full_spec((c_out, 1)),
        ],
        out_specs=_full_spec((c_out, m)),
        cost_estimate=cost,
    )(a2d, b2d, w2d, gamma2d, beta2d)

    return _cm_to_nchw(out2d, n, h, w)


def _reference(x377, x391, conv_w, bn_gamma, bn_beta):
    z = jnp.maximum(x377 + x391, 0.0)                              # NCHW
    w2d = conv_w.reshape(conv_w.shape[0], conv_w.shape[1])
    y = jnp.einsum("nchw,oc->nohw", z, w2d)                        # 1x1 conv
    mean = jnp.mean(y, axis=(0, 2, 3), keepdims=True)
    var = jnp.mean((y - mean) ** 2, axis=(0, 2, 3), keepdims=True)
    g = bn_gamma.reshape(1, -1, 1, 1)
    b = bn_beta.reshape(1, -1, 1, 1)
    return (y - mean) * jax.lax.rsqrt(var + EPS) * g + b


if __name__ == "__main__":
    key = jax.random.PRNGKey(0)
    k1, k2, k3, k4, k5 = jax.random.split(key, 5)

    N, C, H, W = 1, 336, 14, 14  # shapes implied by the module

    x377 = jax.random.normal(k1, (N, C, H, W), dtype=jnp.float32)
    x391 = jax.random.normal(k2, (N, C, H, W), dtype=jnp.float32)

    # deterministic parameter init (synthetic; not loaded from a checkpoint)
    conv_w = jax.random.normal(k3, (C, C, 1, 1), dtype=jnp.float32) * (1.0 / C**0.5)
    bn_gamma = 1.0 + 0.1 * jax.random.normal(k4, (C,), dtype=jnp.float32)
    bn_beta = 0.1 * jax.random.normal(k5, (C,), dtype=jnp.float32)

    out = fused_add_relu_conv1x1_bn(x377, x391, conv_w, bn_gamma, bn_beta)
    out = jax.block_until_ready(out)

    ref = _reference(x377, x391, conv_w, bn_gamma, bn_beta)
    assert out.shape == (N, C, H, W)
    # Tolerance loosened vs the pure-f32 version because MXU operands are bf16
    # (accumulation remains f32); BN statistics keep errors well below this.
    assert jnp.allclose(out, ref, atol=3e-2, rtol=3e-2), "mismatch vs reference"

    print("KERNEL_OK")
</pallas_src>

<mosaic_0001>
module attributes {stable_mosaic.version = 11 : i64} {
  func.func @_fused_kernel(%arg0: memref<336x196xf32, #tpu.memory_space<vmem>>, %arg1: memref<336x196xf32, #tpu.memory_space<vmem>>, %arg2: memref<336x336xf32, #tpu.memory_space<vmem>>, %arg3: memref<336x1xf32, #tpu.memory_space<vmem>>, %arg4: memref<336x1xf32, #tpu.memory_space<vmem>>, %arg5: memref<336x196xf32, #tpu.memory_space<vmem>>) attributes {dimension_semantics = [], scalar_prefetch = 0 : i64, scratch_operands = 0 : i64, tpu.core_type = #tpu.core_type<tc>} {
    %c0 = arith.constant 0 : index
    %c0_0 = arith.constant 0 : index
    %0 = vector.load %arg0[%c0, %c0_0] : memref<336x196xf32, #tpu.memory_space<vmem>>, vector<336x196xf32>
    %c0_1 = arith.constant 0 : index
    %c0_2 = arith.constant 0 : index
    %1 = vector.load %arg1[%c0_1, %c0_2] : memref<336x196xf32, #tpu.memory_space<vmem>>, vector<336x196xf32>
    %2 = arith.addf %0, %1 : vector<336x196xf32>
    %cst = arith.constant 0.000000e+00 : f32
    %3 = vector.broadcast %cst : f32 to vector<336x196xf32>
    %4 = arith.maximumf %2, %3 : vector<336x196xf32>
    %5 = arith.truncf %4 : vector<336x196xf32> to vector<336x196xbf16>
    %c0_3 = arith.constant 0 : index
    %c0_4 = arith.constant 0 : index
    %6 = vector.load %arg2[%c0_3, %c0_4] : memref<336x336xf32, #tpu.memory_space<vmem>>, vector<336x336xf32>
    %7 = arith.truncf %6 : vector<336x336xf32> to vector<336x336xbf16>
    %cst_5 = arith.constant dense<0.000000e+00> : vector<336x196xf32>
    %8 = tpu.matmul %7, %5, %cst_5 {dimension_numbers = #tpu.dot_dimension_numbers<[1], [0], [0], [1], [0, 0, 1, 1], [], []>} : vector<336x336xbf16>, vector<336x196xbf16>, vector<336x196xf32> -> vector<336x196xf32>
    %cst_6 = arith.constant dense<0.000000e+00> : vector<336xf32>
    %9 = vector.multi_reduction <add>, %8, %cst_6 [1] : vector<336x196xf32> to vector<336xf32>
    %10 = vector.shape_cast %9 : vector<336xf32> to vector<336x1xf32>
    %11 = arith.mulf %8, %8 : vector<336x196xf32>
    %cst_7 = arith.constant dense<0.000000e+00> : vector<336xf32>
    %12 = vector.multi_reduction <add>, %11, %cst_7 [1] : vector<336x196xf32> to vector<336xf32>
    %13 = vector.shape_cast %12 : vector<336xf32> to vector<336x1xf32>
    %cst_8 = arith.constant 1.960000e+02 : f32
    %14 = vector.broadcast %cst_8 : f32 to vector<336x1xf32>
    %15 = arith.divf %10, %14 : vector<336x1xf32>
    %cst_9 = arith.constant 1.960000e+02 : f32
    %16 = vector.broadcast %cst_9 : f32 to vector<336x1xf32>
    %17 = arith.divf %13, %16 : vector<336x1xf32>
    %18 = arith.mulf %15, %15 : vector<336x1xf32>
    %19 = arith.subf %17, %18 : vector<336x1xf32>
    %cst_10 = arith.constant 9.99999974E-6 : f32
    %20 = vector.broadcast %cst_10 : f32 to vector<336x1xf32>
    %21 = arith.addf %19, %20 : vector<336x1xf32>
    %22 = math.rsqrt %21 : vector<336x1xf32>
    %c0_11 = arith.constant 0 : index
    %c0_12 = arith.constant 0 : index
    %23 = vector.load %arg3[%c0_11, %c0_12] : memref<336x1xf32, #tpu.memory_space<vmem>>, vector<336x1xf32>
    %24 = arith.mulf %23, %22 : vector<336x1xf32>
    %c0_13 = arith.constant 0 : index
    %c0_14 = arith.constant 0 : index
    %25 = vector.load %arg4[%c0_13, %c0_14] : memref<336x1xf32, #tpu.memory_space<vmem>>, vector<336x1xf32>
    %26 = arith.mulf %15, %24 : vector<336x1xf32>
    %27 = arith.subf %25, %26 : vector<336x1xf32>
    %28 = vector.broadcast %24 : vector<336x1xf32> to vector<336x196xf32>
    %29 = arith.mulf %8, %28 : vector<336x196xf32>
    %30 = vector.broadcast %27 : vector<336x1xf32> to vector<336x196xf32>
    %31 = arith.addf %29, %30 : vector<336x196xf32>
    %c0_15 = arith.constant 0 : index
    %c0_16 = arith.constant 0 : index
    %32 = vector.load %arg5[%c0_15, %c0_16] : memref<336x196xf32, #tpu.memory_space<vmem>>, vector<336x196xf32>
    tpu.vector_store %arg5[%c0_15, %c0_16], %31 {strides = array<i32>} : memref<336x196xf32, #tpu.memory_space<vmem>>, vector<336x196xf32>,
    return
  }
}

</mosaic_0001>

<bundles_post_ra>
// kernel: fused_add_relu_conv1x1_bn.1
= control target key start
LH: loop header
LB: loop body
LE: loop exit
PB: predicated region body
PF: predicated region fallthrough
CT: control target
= control target key end

     0   :  { %v2890_v3 = vmov 0   ;;  %vm588_vm0 = vcmask 654336   ;;  %vm1138_vm1 = vcmask 556032   ;;  %s5356_s0 = inlined_call_operand.vmem [shape: f32[336,196], index: 0, kind: input, shape index: {}]   ;;  %s5357_s1 = inlined_call_operand.vmem [shape: f32[336,196], index: 1, kind: input, shape index: {}]   ;;  %s5358_s2 = inlined_call_operand.vmem [shape: f32[336,336], index: 2, kind: input, shape index: {}]   ;;  %s5359_s3 = inlined_call_operand.vmem [shape: f32[336,1], index: 3, kind: input, shape index: {}]   ;;  %s5360_s4 = inlined_call_operand.vmem [shape: f32[336,1], index: 4, kind: input, shape index: {}]   ;;  %s5361_s5 = inlined_call_operand.vmem [shape: f32[336,196], index: 5, kind: output, shape index: {}]  }
   0x1   :  { %v22_v0 = vld [vmem:[%s5356_s0 + $0x8] sm:$0xff]  ;;  %v24_v1 = vld [vmem:[%s5356_s0 + $0x18] sm:$0xff]  ;;  %927 = vmatprep.mubr.bf16.mxu0 %v2890_v3  ;;  %2805 = vset.pattern.permute.xlu1 %v2890_v3  ;;  %v21_v6 = vld [vmem:[%s5356_s0] sm:$0xff] }
   0x2   :  { %v106_v2 = vld [vmem:[%s5357_s1 + $0x8] sm:$0xff]  ;;  %v108_v4 = vld [vmem:[%s5357_s1 + $0x18] sm:$0xff]  ;;  %v23_v7 = vld [vmem:[%s5356_s0 + $0x10] sm:$0xff]  ;;  %2804 = vset.pattern.permute.xlu0 %v2890_v3 }
   0x3   :  { %v190_v5 = vadd.f32 %v106_v2, %v22_v0  ;;  %v192_v8 = vadd.f32 %v108_v4, %v24_v1  ;;  %v105_v9 = vld [vmem:[%s5357_s1] sm:$0xff]  ;;  %v107_v10 = vld [vmem:[%s5357_s1 + $0x10] sm:$0xff]  ;;  %v26_v11 = vld [vmem:[%s5356_s0 + $0x28] sm:$0xff] }
   0x4   :  { %v189_v13 = vadd.f32 %v105_v9, %v21_v6  ;;  %v191_v14 = vadd.f32 %v107_v10, %v23_v7  ;;  %v28_v15 = vld [vmem:[%s5356_s0 + $0x38] sm:$0xff]  ;;  %v110_v16 = vld [vmem:[%s5357_s1 + $0x28] sm:$0xff]  ;;  %v25_v21 = vld [vmem:[%s5356_s0 + $0x20] sm:$0xff] }
   0x5   :  { %v274_v12 = vmax.f32 %v190_v5, 0.0  ;;  %v112_v17 = vld [vmem:[%s5357_s1 + $0x38] sm:$0xff]  ;;  %v276_v18 = vmax.f32 %v192_v8, 0.0  ;;  %v194_v19 = vadd.f32 %v110_v16, %v26_v11  ;;  %v27_v22 = vld [vmem:[%s5356_s0 + $0x30] sm:$0xff]  ;;  %v109_v23 = vld [vmem:[%s5357_s1 + $0x20] sm:$0xff] }
   0x6   :  { %v196_v20 = vadd.f32 %v112_v17, %v28_v15  ;;  %v273_v24 = vmax.f32 %v189_v13, 0.0  ;;  %v275_v25 = vmax.f32 %v191_v14, 0.0  ;;  %v111_v26 = vld [vmem:[%s5357_s1 + $0x30] sm:$0xff]  ;;  %v193_v27 = vadd.f32 %v109_v23, %v25_v21  ;;  %v30_v28 = vld [vmem:[%s5356_s0 + $0x48] sm:$0xff]  ;;  %v32_v29 = vld [vmem:[%s5356_s0 + $0x58] sm:$0xff] }
   0x7   :  { %v358_v30 = vpack.c.bf16 %v276_v18, %v274_v12  ;;  %v278_v31 = vmax.f32 %v194_v19, 0.0  ;;  %v195_v33 = vadd.f32 %v111_v26, %v27_v22  ;;  %v114_v34 = vld [vmem:[%s5357_s1 + $0x48] sm:$0xff]  ;;  %v116_v35 = vld [vmem:[%s5357_s1 + $0x58] sm:$0xff]  ;;  %v29_v36 = vld [vmem:[%s5356_s0 + $0x40] sm:$0xff] }
   0x8   :  { %v280_v32 = vmax.f32 %v196_v20, 0.0  ;;  %v357_v37 = vpack.c.bf16 %v275_v25, %v273_v24  ;;  %v277_v38 = vmax.f32 %v193_v27, 0.0  ;;  %v198_v39 = vadd.f32 %v114_v34, %v30_v28  ;;  %v31_v41 = vld [vmem:[%s5356_s0 + $0x50] sm:$0xff]  ;;  %v113_v42 = vld [vmem:[%s5357_s1 + $0x40] sm:$0xff]  ;;  %v34_v48 = vld [vmem:[%s5356_s0 + $0x68] sm:$0xff] }
   0x9   :  { %v200_v40 = vadd.f32 %v116_v35, %v32_v29  ;;  %v115_v43 = vld [vmem:[%s5357_s1 + $0x50] sm:$0xff]  ;;  %652 = vmatprep.subr.bf16.mxu1 %v358_v30  ;;  %v279_v45 = vmax.f32 %v195_v33, 0.0  ;;  %v197_v46 = vadd.f32 %v113_v42, %v29_v36  ;;  %v36_v49 = vld [vmem:[%s5356_s0 + $0x78] sm:$0xff]  ;;  %v118_v50 = vld [vmem:[%s5357_s1 + $0x68] sm:$0xff] }
   0xa   :  { %v360_v44 = vpack.c.bf16 %v280_v32, %v278_v31  ;;  %v199_v47 = vadd.f32 %v115_v43, %v31_v41  ;;  %653 = vmatpush1.bf16.msra.mxu1 %v357_v37  ;;  %v282_v51 = vmax.f32 %v198_v39, 0.0  ;;  %v120_v53 = vld [vmem:[%s5357_s1 + $0x78] sm:$0xff]  ;;  %v202_v54 = vadd.f32 %v118_v50, %v34_v48  ;;  %v33_v55 = vld [vmem:[%s5356_s0 + $0x60] sm:$0xff]  ;;  %v35_v56 = vld [vmem:[%s5356_s0 + $0x70] sm:$0xff] }
   0xb   :  { %v284_v52 = vmax.f32 %v200_v40, 0.0  ;;  %v359_v57 = vpack.c.bf16 %v279_v45, %v277_v38  ;;  %v281_v58 = vmax.f32 %v197_v46, 0.0  ;;  %v204_v60 = vadd.f32 %v120_v53, %v36_v49  ;;  %v117_v61 = vld [vmem:[%s5357_s1 + $0x60] sm:$0xff]  ;;  %v119_v62 = vld [vmem:[%s5357_s1 + $0x70] sm:$0xff]  ;;  %v38_v63 = vld [vmem:[%s5356_s0 + $0x88] sm:$0xff] }
   0xc   :  { %654 = vmatprep.subr.bf16.mxu1 %v360_v44  ;;  %v283_v59 = vmax.f32 %v199_v47, 0.0  ;;  %v286_v1 = vmax.f32 %v202_v54, 0.0  ;;  %v201_v2 = vadd.f32 %v117_v61, %v33_v55  ;;  %v203_v4 = vadd.f32 %v119_v62, %v35_v56  ;;  %v40_v5 = vld [vmem:[%s5356_s0 + $0x98] sm:$0xff]  ;;  %v122_v6 = vld [vmem:[%s5357_s1 + $0x88] sm:$0xff]  ;;  %v37_v11 = vld [vmem:[%s5356_s0 + $0x80] sm:$0xff] }
   0xd   :  { %v362_v0 = vpack.c.bf16 %v284_v52, %v282_v51  ;;  %v124_v7 = vld [vmem:[%s5357_s1 + $0x98] sm:$0xff]  ;;  %v288_v8 = vmax.f32 %v204_v60, 0.0  ;;  %v206_v9 = vadd.f32 %v122_v6, %v38_v63  ;;  %v39_v12 = vld [vmem:[%s5356_s0 + $0x90] sm:$0xff]  ;;  %v121_v13 = vld [vmem:[%s5357_s1 + $0x80] sm:$0xff] }
   0xe   :  { %v208_v10 = vadd.f32 %v124_v7, %v40_v5  ;;  %655 = vmatpush1.bf16.msra.mxu1 %v359_v57  ;;  %v361_v14 = vpack.c.bf16 %v283_v59, %v281_v58  ;;  %v285_v15 = vmax.f32 %v201_v2, 0.0  ;;  %v287_v16 = vmax.f32 %v203_v4, 0.0  ;;  %v123_v17 = vld [vmem:[%s5357_s1 + $0x90] sm:$0xff]  ;;  %v42_v19 = vld [vmem:[%s5356_s0 + $0xa8] sm:$0xff]  ;;  %v44_v20 = vld [vmem:[%s5356_s0 + $0xb8] sm:$0xff] }
   0xf   :  { %v205_v18 = vadd.f32 %v121_v13, %v37_v11  ;;  %656 = vmatprep.subr.bf16.mxu1 %v362_v0  ;;  %v364_v21 = vpack.c.bf16 %v288_v8, %v286_v1  ;;  %v290_v22 = vmax.f32 %v206_v9, 0.0  ;;  %v207_v24 = vadd.f32 %v123_v17, %v39_v12  ;;  %v126_v25 = vld [vmem:[%s5357_s1 + $0xa8] sm:$0xff]  ;;  %v128_v26 = vld [vmem:[%s5357_s1 + $0xb8] sm:$0xff]  ;;  %v41_v27 = vld [vmem:[%s5356_s0 + $0xa0] sm:$0xff] }
  0x10   :  { %v292_v23 = vmax.f32 %v208_v10, 0.0  ;;  %v210_v28 = vadd.f32 %v126_v25, %v42_v19  ;;  %v212_v29 = vadd.f32 %v128_v26, %v44_v20  ;;  %v43_v30 = vld [vmem:[%s5356_s0 + $0xb0] sm:$0xff]  ;;  %v125_v31 = vld [vmem:[%s5357_s1 + $0xa0] sm:$0xff]  ;;  %v46_v35 = vld [vmem:[%s5356_s0 + $0xc8] sm:$0xff]  ;;  %v363_v38 = vpack.c.bf16 %v287_v16, %v285_v15 }
  0x11   :  { %v127_v32 = vld [vmem:[%s5357_s1 + $0xb0] sm:$0xff]  ;;  %v209_v33 = vadd.f32 %v125_v31, %v41_v27  ;;  %v48_v36 = vld [vmem:[%s5356_s0 + $0xd8] sm:$0xff]  ;;  %v130_v37 = vld [vmem:[%s5357_s1 + $0xc8] sm:$0xff]  ;;  %v289_v39 = vmax.f32 %v205_v18, 0.0  ;;  %v291_v40 = vmax.f32 %v207_v24, 0.0 }
  0x12   :  { %v211_v34 = vadd.f32 %v127_v32, %v43_v30  ;;  %657 = vmatpush1.bf16.msra.mxu1 %v361_v14  ;;  %v132_v41 = vld [vmem:[%s5357_s1 + $0xd8] sm:$0xff]  ;;  %v214_v42 = vadd.f32 %v130_v37, %v46_v35  ;;  %v45_v43 = vld [vmem:[%s5356_s0 + $0xc0] sm:$0xff]  ;;  %v47_v44 = vld [vmem:[%s5356_s0 + $0xd0] sm:$0xff]  ;;  %v366_v45 = vpack.c.bf16 %v292_v23, %v290_v22  ;;  %v294_v46 = vmax.f32 %v210_v28, 0.0 }
  0x13   :  { %658 = vmatprep.subr.bf16.mxu1 %v364_v21  ;;  %v296_v47 = vmax.f32 %v212_v29, 0.0  ;;  %v216_v48 = vadd.f32 %v132_v41, %v48_v36  ;;  %v129_v49 = vld [vmem:[%s5357_s1 + $0xc0] sm:$0xff]  ;;  %v131_v50 = vld [vmem:[%s5357_s1 + $0xd0] sm:$0xff]  ;;  %v50_v51 = vld [vmem:[%s5356_s0 + $0xe8] sm:$0xff]  ;;  %v293_v52 = vmax.f32 %v209_v33, 0.0  ;;  %v365_v2 = vpack.c.bf16 %v291_v40, %v289_v39 }
  0x14   :  { %v295_v53 = vmax.f32 %v211_v34, 0.0  ;;  %v298_v54 = vmax.f32 %v214_v42, 0.0  ;;  %v3095_v55 = vadd.f32 %v129_v49, %v45_v43  ;;  %v52_v56 = vld [vmem:[%s5356_s0 + $0xf8] sm:$0xff]  ;;  %v134_v57 = vld [vmem:[%s5357_s1 + $0xe8] sm:$0xff]  ;;  %v215_v60 = vadd.f32 %v131_v50, %v47_v44  ;;  %v49_v63 = vld [vmem:[%s5356_s0 + $0xe0] sm:$0xff] }
  0x15   :  { %v136_v58 = vld [vmem:[%s5357_s1 + $0xf8] sm:$0xff]  ;;  %v300_v59 = vmax.f32 %v216_v48, 0.0  ;;  %v218_v61 = vadd.f32 %v134_v57, %v50_v51  ;;  %v51_v0 = vld [vmem:[%s5356_s0 + $0xf0] sm:$0xff]  ;;  %v133_v1 = vld [vmem:[%s5357_s1 + $0xe0] sm:$0xff]  ;;  %v368_v8 = vpack.c.bf16 %v296_v47, %v294_v46 }
  0x16   :  { %v220_v62 = vadd.f32 %v136_v58, %v52_v56  ;;  %659 = vmatpush1.bf16.msra.mxu1 %v363_v38  ;;  %v135_v4 = vld [vmem:[%s5357_s1 + $0xf0] sm:$0xff]  ;;  %v217_v5 = vadd.f32 %v133_v1, %v49_v63  ;;  %v54_v6 = vld [vmem:[%s5356_s0 + $0x108] sm:$0xff]  ;;  %v56_v7 = vld [vmem:[%s5356_s0 + $0x118] sm:$0xff]  ;;  %v367_v13 = vpack.c.bf16 %v295_v53, %v293_v52  ;;  %v297_v14 = vmax.f32 %v3095_v55, 0.0 }
  0x17   :  { %660 = vmatprep.subr.bf16.mxu1 %v366_v45  ;;  %v219_v9 = vadd.f32 %v135_v4, %v51_v0  ;;  %v138_v10 = vld [vmem:[%s5357_s1 + $0x108] sm:$0xff]  ;;  %v140_v11 = vld [vmem:[%s5357_s1 + $0x118] sm:$0xff]  ;;  %v53_v12 = vld [vmem:[%s5356_s0 + $0x100] sm:$0xff]  ;;  %v370_v20 = vpack.c.bf16 %v300_v59, %v298_v54  ;;  %v299_v21 = vmax.f32 %v215_v60, 0.0  ;;  %v302_v22 = vmax.f32 %v218_v61, 0.0 }
  0x18   :  { %v222_v15 = vadd.f32 %v138_v10, %v54_v6  ;;  %v224_v16 = vadd.f32 %v140_v11, %v56_v7  ;;  %v55_v17 = vld [vmem:[%s5356_s0 + $0x110] sm:$0xff]  ;;  %v137_v18 = vld [vmem:[%s5357_s1 + $0x100] sm:$0xff]  ;;  %v304_v23 = vmax.f32 %v220_v62, 0.0  ;;  %v58_v24 = vld [vmem:[%s5356_s0 + $0x128] sm:$0xff]  ;;  %v301_v27 = vmax.f32 %v217_v5, 0.0 }
  0x19   :  { %v139_v19 = vld [vmem:[%s5357_s1 + $0x110] sm:$0xff]  ;;  %v60_v25 = vld [vmem:[%s5356_s0 + $0x138] sm:$0xff]  ;;  %v142_v26 = vld [vmem:[%s5357_s1 + $0x128] sm:$0xff]  ;;  %v303_v28 = vmax.f32 %v219_v9, 0.0  ;;  %v221_v29 = vadd.f32 %v137_v18, %v53_v12  ;;  %v369_v49 = vpack.c.bf16 %v299_v21, %v297_v14 }
  0x1a   :  { %661 = vmatpush1.bf16.msra.mxu1 %v365_v2  ;;  %v223_v30 = vadd.f32 %v139_v19, %v55_v17  ;;  %v144_v31 = vld [vmem:[%s5357_s1 + $0x138] sm:$0xff]  ;;  %v57_v32 = vld [vmem:[%s5356_s0 + $0x120] sm:$0xff]  ;;  %v59_v33 = vld [vmem:[%s5356_s0 + $0x130] sm:$0xff]  ;;  %v306_v34 = vmax.f32 %v222_v15, 0.0  ;;  %v308_v35 = vmax.f32 %v224_v16, 0.0  ;;  %v226_v36 = vadd.f32 %v142_v26, %v58_v24 }
  0x1b   :  { %662 = vmatprep.subr.bf16.mxu1 %v368_v8  ;;  %v228_v37 = vadd.f32 %v144_v31, %v60_v25  ;;  %v141_v38 = vld [vmem:[%s5357_s1 + $0x120] sm:$0xff]  ;;  %v143_v39 = vld [vmem:[%s5357_s1 + $0x130] sm:$0xff]  ;;  %v62_v40 = vld [vmem:[%s5356_s0 + $0x148] sm:$0xff]  ;;  %v372_v50 = vpack.c.bf16 %v304_v23, %v302_v22  ;;  %v371_v51 = vpack.c.bf16 %v303_v28, %v301_v27  ;;  %v305_v52 = vmax.f32 %v221_v29, 0.0 }
  0x1c   :  { %v64_v41 = vld [vmem:[%s5356_s0 + $0x158] sm:$0xff]  ;;  %v146_v42 = vld [vmem:[%s5357_s1 + $0x148] sm:$0xff]  ;;  %v3179_v44 = vadd.f32 %v141_v38, %v57_v32  ;;  %v3181_v45 = vadd.f32 %v143_v39, %v59_v33  ;;  %v61_v46 = vld [vmem:[%s5356_s0 + $0x140] sm:$0xff]  ;;  %v374_v56 = vpack.c.bf16 %v308_v35, %v306_v34  ;;  %v307_v57 = vmax.f32 %v223_v30, 0.0 }
  0x1d   :  { %v148_v43 = vld [vmem:[%s5357_s1 + $0x158] sm:$0xff]  ;;  %v63_v47 = vld [vmem:[%s5356_s0 + $0x150] sm:$0xff]  ;;  %v145_v48 = vld [vmem:[%s5357_s1 + $0x140] sm:$0xff]  ;;  %v310_v58 = vmax.f32 %v226_v36, 0.0  ;;  %v312_v59 = vmax.f32 %v228_v37, 0.0  ;;  %v3210_v63 = vadd.f32 %v146_v42, %v62_v40 }
  0x1e   :  { %663 = vmatpush1.bf16.msra.mxu1 %v367_v13  ;;  %v147_v53 = vld [vmem:[%s5357_s1 + $0x150] sm:$0xff]  ;;  %v86_v54 = vld [vmem:[%s5356_s0 + $0x208] sm:$0xff]  ;;  %v88_v55 = vld [vmem:[%s5356_s0 + $0x218] sm:$0xff]  ;;  %v3212_v0 = vadd.f32 %v148_v43, %v64_v41  ;;  %v309_v7 = vmax.f32 %v3179_v44, 0.0  ;;  %v311_v8 = vmax.f32 %v3181_v45, 0.0  ;;  %v3234_v14 = vadd.f32 %v145_v48, %v61_v46 }
  0x1f   :  { %664 = vmatprep.subr.bf16.mxu1 %v370_v20  ;;  %v170_v60 = vld [vmem:[%s5357_s1 + $0x208] sm:$0xff]  ;;  %v172_v61 = vld [vmem:[%s5357_s1 + $0x218] sm:$0xff]  ;;  %v85_v62 = vld [vmem:[%s5356_s0 + $0x200] sm:$0xff]  ;;  %v3236_v15 = vadd.f32 %v147_v53, %v63_v47  ;;  %v373_v20 = vpack.c.bf16 %v307_v57, %v305_v52  ;;  %v376_v21 = vpack.c.bf16 %v312_v59, %v310_v58  ;;  %v314_v28 = vmax.f32 %v3210_v63, 0.0 }
  0x20   :  { %v254_v1 = vadd.f32 %v170_v60, %v86_v54  ;;  %v256_v2 = vadd.f32 %v172_v61, %v88_v55  ;;  %v87_v4 = vld [vmem:[%s5356_s0 + $0x210] sm:$0xff]  ;;  %v169_v5 = vld [vmem:[%s5357_s1 + $0x200] sm:$0xff]  ;;  %v66_v11 = vld [vmem:[%s5356_s0 + $0x168] sm:$0xff]  ;;  %v316_v35 = vmax.f32 %v3212_v0, 0.0  ;;  %v375_v42 = vpack.c.bf16 %v311_v8, %v309_v7 }
  0x21   :  { %v171_v6 = vld [vmem:[%s5357_s1 + $0x210] sm:$0xff]  ;;  %v253_v9 = vadd.f32 %v169_v5, %v85_v62  ;;  %v68_v12 = vld [vmem:[%s5356_s0 + $0x178] sm:$0xff]  ;;  %v150_v13 = vld [vmem:[%s5357_s1 + $0x168] sm:$0xff]  ;;  %v313_v43 = vmax.f32 %v3234_v14, 0.0  ;;  %v315_v44 = vmax.f32 %v3236_v15, 0.0 }
  0x22   :  { %v255_v10 = vadd.f32 %v171_v6, %v87_v4  ;;  %665 = vmatpush1.bf16.msra.mxu1 %v369_v49  ;;  %v338_v16 = vmax.f32 %v254_v1, 0.0  ;;  %v340_v17 = vmax.f32 %v256_v2, 0.0  ;;  %v152_v18 = vld [vmem:[%s5357_s1 + $0x178] sm:$0xff]  ;;  %v65_v19 = vld [vmem:[%s5356_s0 + $0x160] sm:$0xff]  ;;  %v67_v24 = vld [vmem:[%s5356_s0 + $0x170] sm:$0xff]  ;;  %v3257_v30 = vadd.f32 %v150_v13, %v66_v11 }
  0x23   :  { %666 = vmatprep.subr.bf16.mxu1 %v372_v50  ;;  %v337_v22 = vmax.f32 %v253_v9, 0.0  ;;  %v149_v25 = vld [vmem:[%s5357_s1 + $0x160] sm:$0xff]  ;;  %v151_v26 = vld [vmem:[%s5357_s1 + $0x170] sm:$0xff]  ;;  %v90_v27 = vld [vmem:[%s5356_s0 + $0x228] sm:$0xff]  ;;  %v3259_v31 = vadd.f32 %v152_v18, %v68_v12  ;;  %v378_v7 = vpack.c.bf16 %v316_v35, %v314_v28  ;;  %v377_v8 = vpack.c.bf16 %v315_v44, %v313_v43 }
  0x24   :  { %v339_v23 = vmax.f32 %v255_v10, 0.0  ;;  %v390_v29 = vpack.c.bf16 %v340_v17, %v338_v16  ;;  %v92_v32 = vld [vmem:[%s5356_s0 + $0x238] sm:$0xff]  ;;  %v174_v33 = vld [vmem:[%s5357_s1 + $0x228] sm:$0xff]  ;;  %v89_v39 = vld [vmem:[%s5356_s0 + $0x220] sm:$0xff]  ;;  %v3291_v49 = vadd.f32 %v149_v25, %v65_v19  ;;  %v3304_v58 = vadd.f32 %v151_v26, %v67_v24 }
  0x25   :  { %v176_v34 = vld [vmem:[%s5357_s1 + $0x238] sm:$0xff]  ;;  %v258_v37 = vadd.f32 %v174_v33, %v90_v27  ;;  %v91_v40 = vld [vmem:[%s5356_s0 + $0x230] sm:$0xff]  ;;  %v173_v41 = vld [vmem:[%s5357_s1 + $0x220] sm:$0xff]  ;;  %v320_v57 = vmax.f32 %v3259_v31, 0.0 }
  0x26   :  { %v389_v36 = vpack.c.bf16 %v339_v23, %v337_v22  ;;  %v260_v38 = vadd.f32 %v176_v34, %v92_v32  ;;  %667 = vmatpush1.bf16.msra.mxu1 %v371_v51  ;;  %895 = vmatprep.subr.bf16.mxu0 %v390_v29  ;;  %v175_v45 = vld [vmem:[%s5357_s1 + $0x230] sm:$0xff]  ;;  %v257_v46 = vadd.f32 %v173_v41, %v89_v39  ;;  %v70_v47 = vld [vmem:[%s5356_s0 + $0x188] sm:$0xff]  ;;  %v72_v48 = vld [vmem:[%s5356_s0 + $0x198] sm:$0xff]  ;;  %v317_v14 = vmax.f32 %v3291_v49, 0.0 }
  0x27   :  { %668 = vmatprep.subr.bf16.mxu1 %v374_v56  ;;  %v342_v50 = vmax.f32 %v258_v37, 0.0  ;;  %v259_v52 = vadd.f32 %v175_v45, %v91_v40  ;;  %v154_v53 = vld [vmem:[%s5357_s1 + $0x188] sm:$0xff]  ;;  %v156_v54 = vld [vmem:[%s5357_s1 + $0x198] sm:$0xff]  ;;  %v69_v55 = vld [vmem:[%s5356_s0 + $0x180] sm:$0xff]  ;;  %v318_v56 = vmax.f32 %v3257_v30, 0.0 }
  0x28   :  { %896 = vmatpush1.bf16.msra.mxu0 %v389_v36  ;;  %v344_v51 = vmax.f32 %v260_v38, 0.0  ;;  %v341_v59 = vmax.f32 %v257_v46, 0.0  ;;  %v71_v60 = vld [vmem:[%s5356_s0 + $0x190] sm:$0xff]  ;;  %v153_v61 = vld [vmem:[%s5357_s1 + $0x180] sm:$0xff]  ;;  %v238_v1 = vadd.f32 %v154_v53, %v70_v47  ;;  %v240_v2 = vadd.f32 %v156_v54, %v72_v48  ;;  %v94_v4 = vld [vmem:[%s5356_s0 + $0x248] sm:$0xff] }
  0x29   :  { %v155_v62 = vld [vmem:[%s5357_s1 + $0x190] sm:$0xff]  ;;  %v343_v0 = vmax.f32 %v259_v52, 0.0  ;;  %v96_v5 = vld [vmem:[%s5356_s0 + $0x258] sm:$0xff]  ;;  %v178_v6 = vld [vmem:[%s5357_s1 + $0x248] sm:$0xff]  ;;  %v3324_v9 = vadd.f32 %v153_v61, %v69_v55  ;;  %v380_v28 = vpack.c.bf16 %v320_v57, %v318_v56 }
  0x2a   :  { %v392_v63 = vpack.c.bf16 %v344_v51, %v342_v50  ;;  %669 = vmatpush1.bf16.msra.mxu1 %v373_v20  ;;  %v180_v10 = vld [vmem:[%s5357_s1 + $0x258] sm:$0xff]  ;;  %v262_v11 = vadd.f32 %v178_v6, %v94_v4  ;;  %v93_v12 = vld [vmem:[%s5356_s0 + $0x240] sm:$0xff]  ;;  %v95_v13 = vld [vmem:[%s5356_s0 + $0x250] sm:$0xff]  ;;  %v3336_v16 = vadd.f32 %v155_v62, %v71_v60  ;;  %v322_v29 = vmax.f32 %v238_v1, 0.0 }
  0x2b   :  { %670 = vmatprep.subr.bf16.mxu1 %v376_v21  ;;  %v391_v15 = vpack.c.bf16 %v343_v0, %v341_v59  ;;  %v264_v17 = vadd.f32 %v180_v10, %v96_v5  ;;  %v177_v18 = vld [vmem:[%s5357_s1 + $0x240] sm:$0xff]  ;;  %v179_v19 = vld [vmem:[%s5357_s1 + $0x250] sm:$0xff]  ;;  %v74_v20 = vld [vmem:[%s5356_s0 + $0x1a8] sm:$0xff]  ;;  %v319_v21 = vmax.f32 %v3304_v58, 0.0  ;;  %v324_v30 = vmax.f32 %v240_v2, 0.0 }
  0x2c   :  { %897 = vmatprep.subr.bf16.mxu0 %v392_v63  ;;  %v346_v22 = vmax.f32 %v262_v11, 0.0  ;;  %v261_v23 = vadd.f32 %v177_v18, %v93_v12  ;;  %v263_v24 = vadd.f32 %v179_v19, %v95_v13  ;;  %v76_v25 = vld [vmem:[%s5356_s0 + $0x1b8] sm:$0xff]  ;;  %v158_v26 = vld [vmem:[%s5357_s1 + $0x1a8] sm:$0xff]  ;;  %v73_v32 = vld [vmem:[%s5356_s0 + $0x1a0] sm:$0xff]  ;;  %v321_v35 = vmax.f32 %v3324_v9, 0.0 }
  0x2d   :  { %v160_v27 = vld [vmem:[%s5357_s1 + $0x1b8] sm:$0xff]  ;;  %898 = vmatpush1.bf16.msra.mxu0 %v391_v15  ;;  %v348_v31 = vmax.f32 %v264_v17, 0.0  ;;  %v75_v33 = vld [vmem:[%s5356_s0 + $0x1b0] sm:$0xff]  ;;  %v157_v34 = vld [vmem:[%s5357_s1 + $0x1a0] sm:$0xff]  ;;  %v3367_v38 = vadd.f32 %v158_v26, %v74_v20  ;;  %v379_v56 = vpack.c.bf16 %v319_v21, %v317_v14  ;;  %v382_v57 = vpack.c.bf16 %v324_v30, %v322_v29 }
  0x2e   :  { %671 = vmatpush1.bf16.msra.mxu1 %v375_v42  ;;  %v345_v36 = vmax.f32 %v261_v23, 0.0  ;;  %v347_v37 = vmax.f32 %v263_v24, 0.0  ;;  %v159_v39 = vld [vmem:[%s5357_s1 + $0x1b0] sm:$0xff]  ;;  %v98_v40 = vld [vmem:[%s5356_s0 + $0x268] sm:$0xff]  ;;  %v100_v41 = vld [vmem:[%s5356_s0 + $0x278] sm:$0xff]  ;;  %v323_v42 = vmax.f32 %v3336_v16, 0.0  ;;  %v3379_v44 = vadd.f32 %v160_v27, %v76_v25 }
  0x2f   :  { %672 = vmatprep.subr.bf16.mxu1 %v378_v7  ;;  %v394_v43 = vpack.c.bf16 %v348_v31, %v346_v22  ;;  %v3381_v45 = vadd.f32 %v157_v34, %v73_v32  ;;  %v182_v46 = vld [vmem:[%s5357_s1 + $0x268] sm:$0xff]  ;;  %v184_v47 = vld [vmem:[%s5357_s1 + $0x278] sm:$0xff]  ;;  %v97_v48 = vld [vmem:[%s5356_s0 + $0x260] sm:$0xff]  ;;  %v3392_v50 = vadd.f32 %v159_v39, %v75_v33  ;;  %v326_v63 = vmax.f32 %v3367_v38, 0.0 }
  0x30   :  { %v393_v49 = vpack.c.bf16 %v347_v37, %v345_v36  ;;  %v266_v51 = vadd.f32 %v182_v46, %v98_v40  ;;  %v268_v52 = vadd.f32 %v184_v47, %v100_v41  ;;  %v99_v53 = vld [vmem:[%s5356_s0 + $0x270] sm:$0xff]  ;;  %v181_v54 = vld [vmem:[%s5357_s1 + $0x260] sm:$0xff]  ;;  %v78_v60 = vld [vmem:[%s5356_s0 + $0x1c8] sm:$0xff]  ;;  %v328_v7 = vmax.f32 %v3379_v44, 0.0 }
  0x31   :  { %v183_v55 = vld [vmem:[%s5357_s1 + $0x270] sm:$0xff]  ;;  %899 = vmatprep.subr.bf16.mxu0 %v394_v43  ;;  %v265_v58 = vadd.f32 %v181_v54, %v97_v48  ;;  %v80_v61 = vld [vmem:[%s5356_s0 + $0x1d8] sm:$0xff]  ;;  %v162_v62 = vld [vmem:[%s5357_s1 + $0x1c8] sm:$0xff]  ;;  %v381_v14 = vpack.c.bf16 %v323_v42, %v321_v35  ;;  %v325_v15 = vmax.f32 %v3381_v45, 0.0  ;;  %v327_v16 = vmax.f32 %v3392_v50, 0.0 }
  0x32   :  { %v267_v59 = vadd.f32 %v183_v55, %v99_v53  ;;  %673 = vmatpush1.bf16.msra.mxu1 %v377_v8  ;;  %900 = vmatpush1.bf16.msra.mxu0 %v393_v49  ;;  %v350_v0 = vmax.f32 %v266_v51, 0.0  ;;  %v352_v1 = vmax.f32 %v268_v52, 0.0  ;;  %v164_v2 = vld [vmem:[%s5357_s1 + $0x1d8] sm:$0xff]  ;;  %v246_v4 = vadd.f32 %v162_v62, %v78_v60  ;;  %v77_v5 = vld [vmem:[%s5356_s0 + $0x1c0] sm:$0xff]  ;;  %v79_v6 = vld [vmem:[%s5356_s0 + $0x1d0] sm:$0xff] }
  0x33   :  { %674 = vmatprep.subr.bf16.mxu1 %v380_v28  ;;  %v349_v8 = vmax.f32 %v265_v58, 0.0  ;;  %v248_v10 = vadd.f32 %v164_v2, %v80_v61  ;;  %v161_v11 = vld [vmem:[%s5357_s1 + $0x1c0] sm:$0xff]  ;;  %v163_v12 = vld [vmem:[%s5357_s1 + $0x1d0] sm:$0xff]  ;;  %v102_v13 = vld [vmem:[%s5356_s0 + $0x288] sm:$0xff]  ;;  %v384_v35 = vpack.c.bf16 %v328_v7, %v326_v63  ;;  %v383_v48 = vpack.c.bf16 %v327_v16, %v325_v15 }
  0x34   :  { %v351_v9 = vmax.f32 %v267_v59, 0.0  ;;  %v396_v17 = vpack.c.bf16 %v352_v1, %v350_v0  ;;  %v104_v18 = vld [vmem:[%s5356_s0 + $0x298] sm:$0xff]  ;;  %v186_v19 = vld [vmem:[%s5357_s1 + $0x288] sm:$0xff]  ;;  %v245_v22 = vadd.f32 %v161_v11, %v77_v5  ;;  %v101_v25 = vld [vmem:[%s5356_s0 + $0x280] sm:$0xff]  ;;  %v330_v28 = vmax.f32 %v246_v4, 0.0 }
  0x35   :  { %v188_v20 = vld [vmem:[%s5357_s1 + $0x298] sm:$0xff]  ;;  %v270_v23 = vadd.f32 %v186_v19, %v102_v13  ;;  %v103_v26 = vld [vmem:[%s5356_s0 + $0x290] sm:$0xff]  ;;  %v185_v27 = vld [vmem:[%s5357_s1 + $0x280] sm:$0xff]  ;;  %v332_v29 = vmax.f32 %v248_v10, 0.0  ;;  %v247_v30 = vadd.f32 %v163_v12, %v79_v6 }
  0x36   :  { %v395_v21 = vpack.c.bf16 %v351_v9, %v349_v8  ;;  %v272_v24 = vadd.f32 %v188_v20, %v104_v18  ;;  %675 = vmatpush1.bf16.msra.mxu1 %v379_v56  ;;  %901 = vmatprep.subr.bf16.mxu0 %v396_v17  ;;  %v187_v31 = vld [vmem:[%s5357_s1 + $0x290] sm:$0xff]  ;;  %v269_v32 = vadd.f32 %v185_v27, %v101_v25  ;;  %v82_v33 = vld [vmem:[%s5356_s0 + $0x1e8] sm:$0xff]  ;;  %v84_v34 = vld [vmem:[%s5356_s0 + $0x1f8] sm:$0xff]  ;;  %v329_v49 = vmax.f32 %v245_v22, 0.0 }
  0x37   :  { %676 = vmatprep.subr.bf16.mxu1 %v382_v57  ;;  %v354_v36 = vmax.f32 %v270_v23, 0.0  ;;  %v271_v38 = vadd.f32 %v187_v31, %v103_v26  ;;  %v166_v39 = vld [vmem:[%s5357_s1 + $0x1e8] sm:$0xff]  ;;  %v168_v40 = vld [vmem:[%s5357_s1 + $0x1f8] sm:$0xff]  ;;  %v81_v41 = vld [vmem:[%s5356_s0 + $0x1e0] sm:$0xff]  ;;  %v386_v55 = vpack.c.bf16 %v332_v29, %v330_v28  ;;  %v331_v56 = vmax.f32 %v247_v30, 0.0 }
  0x38   :  { %902 = vmatpush1.bf16.msra.mxu0 %v395_v21  ;;  %v356_v37 = vmax.f32 %v272_v24, 0.0  ;;  %v353_v42 = vmax.f32 %v269_v32, 0.0  ;;  %v250_v43 = vadd.f32 %v166_v39, %v82_v33  ;;  %v252_v44 = vadd.f32 %v168_v40, %v84_v34  ;;  %v83_v45 = vld [vmem:[%s5356_s0 + $0x1f0] sm:$0xff]  ;;  %v165_v46 = vld [vmem:[%s5357_s1 + $0x1e0] sm:$0xff]  ;;  %v404_v53 = vld [vmem:[%s5358_s2 + $0x28] sm:$0xff] }
  0x39   :  { %v167_v47 = vld [vmem:[%s5357_s1 + $0x1f0] sm:$0xff]  ;;  %v355_v51 = vmax.f32 %v271_v38, 0.0  ;;  %v400_v54 = vld [vmem:[%s5358_s2 + $0x8] sm:$0xff]  ;;  %v249_v57 = vadd.f32 %v165_v46, %v81_v41  ;;  %v403_v59 = vld [vmem:[%s5358_s2 + $0x20] sm:$0xff]  ;;  %v385_v1 = vpack.c.bf16 %v331_v56, %v329_v49 }
  0x3a   :  { %v398_v50 = vpack.c.bf16 %v356_v37, %v354_v36  ;;  %v401_v52 = vld [vmem:[%s5358_s2 + $0x10] sm:$0xff]  ;;  %677 = vmatpush1.bf16.msra.mxu1 %v381_v14  ;;  %v251_v58 = vadd.f32 %v167_v47, %v83_v45  ;;  %v334_v61 = vmax.f32 %v250_v43, 0.0  ;;  %v336_v62 = vmax.f32 %v252_v44, 0.0  ;;  %v407_v6 = vld [vmem:[%s5358_s2 + $0x40] sm:$0xff]  ;;  %v410_v7 = vld [vmem:[%s5358_s2 + $0x58] sm:$0xff] }
  0x3b   :  { %678 = vmatprep.subr.bf16.mxu1 %v384_v35  ;;  %v397_v60 = vpack.c.bf16 %v355_v51, %v353_v42  ;;  %v526_v63 = vpack.c.bf16 %v403_v59, %v400_v54  ;;  %v527_v0 = vpack.c.bf16 %v404_v53, %v401_v52  ;;  %v333_v2 = vmax.f32 %v249_v57, 0.0  ;;  %v399_v9 = vld [vmem:[%s5358_s2] sm:$0xff]  ;;  %v402_v10 = vld [vmem:[%s5358_s2 + $0x18] sm:$0xff]  ;;  %v409_v12 = vld [vmem:[%s5358_s2 + $0x50] sm:$0xff] }
  0x3c   :  { %903 = vmatprep.subr.bf16.mxu0 %v398_v50  ;;  %v335_v4 = vmax.f32 %v251_v58, 0.0  ;;  %v388_v5 = vpack.c.bf16 %v336_v62, %v334_v61  ;;  %v406_v11 = vld [vmem:[%s5358_s2 + $0x38] sm:$0xff]  ;;  %v530_v13 = vpack.c.bf16 %v410_v7, %v407_v6  ;;  %v525_v14 = vpack.c.bf16 %v402_v10, %v399_v9  ;;  %v413_v16 = vld [vmem:[%s5358_s2 + $0x70] sm:$0xff]  ;;  %v416_v17 = vld [vmem:[%s5358_s2 + $0x88] sm:$0xff] }
  0x3d   :  { %904 = vmatpush1.bf16.msra.mxu0 %v397_v60  ;;  %684 = vmatprep.mubr.bf16.mxu1 %v526_v63  ;;  %v529_v15 = vpack.c.bf16 %v409_v12, %v406_v11  ;;  %v405_v18 = vld [vmem:[%s5358_s2 + $0x30] sm:$0xff]  ;;  %v408_v19 = vld [vmem:[%s5358_s2 + $0x48] sm:$0xff]  ;;  %v415_v21 = vld [vmem:[%s5358_s2 + $0x80] sm:$0xff]  ;;  %v533_v22 = vpack.c.bf16 %v416_v17, %v413_v16 }
  0x3e   :  { %679 = vmatpush1.bf16.msra.mxu1 %v383_v48  ;;  %v387_v8 = vpack.c.bf16 %v335_v4, %v333_v2  ;;  %v412_v20 = vld [vmem:[%s5358_s2 + $0x68] sm:$0xff]  ;;  %v528_v23 = vpack.c.bf16 %v408_v19, %v405_v18  ;;  %v419_v25 = vld [vmem:[%s5358_s2 + $0xa0] sm:$0xff]  ;;  %v422_v26 = vld [vmem:[%s5358_s2 + $0xb8] sm:$0xff] }
  0x3f   :  { %680 = vmatprep.subr.bf16.mxu1 %v386_v55  ;;  %v532_v24 = vpack.c.bf16 %v415_v21, %v412_v20  ;;  %v411_v27 = vld [vmem:[%s5358_s2 + $0x60] sm:$0xff]  ;;  %v414_v28 = vld [vmem:[%s5358_s2 + $0x78] sm:$0xff]  ;;  %v421_v30 = vld [vmem:[%s5358_s2 + $0xb0] sm:$0xff]  ;;  %v536_v31 = vpack.c.bf16 %v422_v26, %v419_v25 }
  0x40   :  { %2698 = vmatmul.mubr.msk.bf16.vlgmr.msra.gmra.mrb[0].mxu0 %vm588_vm0, %v527_v0  ;;  %v418_v29 = vld [vmem:[%s5358_s2 + $0x98] sm:$0xff]  ;;  %v531_v32 = vpack.c.bf16 %v414_v28, %v411_v27  ;;  %v425_v34 = vld [vmem:[%s5358_s2 + $0xd0] sm:$0xff]  ;;  %v428_v35 = vld [vmem:[%s5358_s2 + $0xe8] sm:$0xff] }
  0x41   :  { %937 = vmatprep.mubr.bf16.mxu0 %v2890_v3  ;;  %v535_v33 = vpack.c.bf16 %v421_v30, %v418_v29  ;;  %v417_v36 = vld [vmem:[%s5358_s2 + $0x90] sm:$0xff]  ;;  %v420_v37 = vld [vmem:[%s5358_s2 + $0xa8] sm:$0xff]  ;;  %v427_v39 = vld [vmem:[%s5358_s2 + $0xe0] sm:$0xff]  ;;  %v539_v40 = vpack.c.bf16 %v428_v35, %v425_v34 }
  0x42   :  { %681 = vmatpush1.bf16.msra.mxu1 %v385_v1  ;;  %v424_v38 = vld [vmem:[%s5358_s2 + $0xc8] sm:$0xff]  ;;  %v534_v41 = vpack.c.bf16 %v420_v37, %v417_v36  ;;  %v431_v43 = vld [vmem:[%s5358_s2 + $0x100] sm:$0xff]  ;;  %v434_v44 = vld [vmem:[%s5358_s2 + $0x118] sm:$0xff] }
  0x43   :  { %682 = vmatprep.subr.bf16.mxu1 %v388_v5  ;;  %v538_v42 = vpack.c.bf16 %v427_v39, %v424_v38  ;;  %v423_v45 = vld [vmem:[%s5358_s2 + $0xc0] sm:$0xff]  ;;  %v426_v46 = vld [vmem:[%s5358_s2 + $0xd8] sm:$0xff]  ;;  %v433_v48 = vld [vmem:[%s5358_s2 + $0x110] sm:$0xff]  ;;  %v542_v49 = vpack.c.bf16 %v434_v44, %v431_v43 }
  0x44   :  { %v430_v47 = vld [vmem:[%s5358_s2 + $0xf8] sm:$0xff]  ;;  %v537_v50 = vpack.c.bf16 %v426_v46, %v423_v45  ;;  %v437_v52 = vld [vmem:[%s5358_s2 + $0x130] sm:$0xff]  ;;  %v440_v53 = vld [vmem:[%s5358_s2 + $0x148] sm:$0xff] }
  0x45   :  { %v541_v51 = vpack.c.bf16 %v433_v48, %v430_v47  ;;  %v429_v54 = vld [vmem:[%s5358_s2 + $0xf0] sm:$0xff]  ;;  %v432_v55 = vld [vmem:[%s5358_s2 + $0x108] sm:$0xff]  ;;  %v439_v57 = vld [vmem:[%s5358_s2 + $0x140] sm:$0xff]  ;;  %v545_v58 = vpack.c.bf16 %v440_v53, %v437_v52 }
  0x46   :  { %683 = vmatpush1.bf16.msra.mxu1 %v387_v8  ;;  %v436_v56 = vld [vmem:[%s5358_s2 + $0x128] sm:$0xff]  ;;  %v540_v59 = vpack.c.bf16 %v432_v55, %v429_v54  ;;  %v443_v61 = vld [vmem:[%s5358_s2 + $0x160] sm:$0xff]  ;;  %v446_v62 = vld [vmem:[%s5358_s2 + $0x178] sm:$0xff] }
  0x47   :  { %v544_v60 = vpack.c.bf16 %v439_v57, %v436_v56  ;;  %v435_v63 = vld [vmem:[%s5358_s2 + $0x120] sm:$0xff]  ;;  %v438_v0 = vld [vmem:[%s5358_s2 + $0x138] sm:$0xff]  ;;  %v445_v2 = vld [vmem:[%s5358_s2 + $0x170] sm:$0xff]  ;;  %v548_v4 = vpack.c.bf16 %v446_v62, %v443_v61 }
  0x48   :  { %2699 = vmatmul.mubr.msk.bf16.gmra.mrb[4].mxu0 %vm588_vm0, %v530_v13  ;;  %v442_v1 = vld [vmem:[%s5358_s2 + $0x158] sm:$0xff]  ;;  %v543_v5 = vpack.c.bf16 %v438_v0, %v435_v63  ;;  %v449_v7 = vld [vmem:[%s5358_s2 + $0x190] sm:$0xff]  ;;  %v452_v8 = vld [vmem:[%s5358_s2 + $0x1a8] sm:$0xff] }
  0x49   :  { %685 = vmatmul.mubr.bf16.vlgmr.msra.gmra.mrb[0].mxu1 %v525_v14  ;;  %947 = vmatprep.mubr.bf16.mxu0 %v2890_v3  ;;  %v547_v6 = vpack.c.bf16 %v445_v2, %v442_v1  ;;  %v441_v9 = vld [vmem:[%s5358_s2 + $0x150] sm:$0xff]  ;;  %v444_v10 = vld [vmem:[%s5358_s2 + $0x168] sm:$0xff]  ;;  %v451_v12 = vld [vmem:[%s5358_s2 + $0x1a0] sm:$0xff]  ;;  %v551_v13 = vpack.c.bf16 %v452_v8, %v449_v7 }
  0x4a   :  { %694 = vmatprep.mubr.bf16.mxu1 %v529_v15  ;;  %v448_v11 = vld [vmem:[%s5358_s2 + $0x188] sm:$0xff]  ;;  %v546_v14 = vpack.c.bf16 %v444_v10, %v441_v9  ;;  %v455_v16 = vld [vmem:[%s5358_s2 + $0x1c0] sm:$0xff]  ;;  %v458_v17 = vld [vmem:[%s5358_s2 + $0x1d8] sm:$0xff] }
  0x4b   :  { %v550_v15 = vpack.c.bf16 %v451_v12, %v448_v11  ;;  %v447_v18 = vld [vmem:[%s5358_s2 + $0x180] sm:$0xff]  ;;  %v450_v19 = vld [vmem:[%s5358_s2 + $0x198] sm:$0xff]  ;;  %v457_v21 = vld [vmem:[%s5358_s2 + $0x1d0] sm:$0xff] }
  0x4c   :  { %v454_v20 = vld [vmem:[%s5358_s2 + $0x1b8] sm:$0xff]  ;;  %v461_v25 = vld [vmem:[%s5358_s2 + $0x1f0] sm:$0xff]  ;;  %v464_v26 = vld [vmem:[%s5358_s2 + $0x208] sm:$0xff] }
  0x4d   :  { %v453_v27 = vld [vmem:[%s5358_s2 + $0x1b0] sm:$0xff]  ;;  %v456_v28 = vld [vmem:[%s5358_s2 + $0x1c8] sm:$0xff]  ;;  %v463_v30 = vld [vmem:[%s5358_s2 + $0x200] sm:$0xff] }
  0x4e   :  { %v460_v29 = vld [vmem:[%s5358_s2 + $0x1e8] sm:$0xff]  ;;  %v467_v34 = vld [vmem:[%s5358_s2 + $0x220] sm:$0xff]  ;;  %v470_v35 = vld [vmem:[%s5358_s2 + $0x238] sm:$0xff] }
  0x4f   :  { %v459_v36 = vld [vmem:[%s5358_s2 + $0x1e0] sm:$0xff]  ;;  %v462_v37 = vld [vmem:[%s5358_s2 + $0x1f8] sm:$0xff]  ;;  %v469_v39 = vld [vmem:[%s5358_s2 + $0x230] sm:$0xff] }
  0x50   :  { %2700 = vmatmul.mubr.msk.bf16.gmra.mrb[8].mxu0 %vm588_vm0, %v533_v22  ;;  %v554_v22 = vpack.c.bf16 %v458_v17, %v455_v16  ;;  %v466_v38 = vld [vmem:[%s5358_s2 + $0x218] sm:$0xff]  ;;  %v473_v43 = vld [vmem:[%s5358_s2 + $0x250] sm:$0xff]  ;;  %v476_v44 = vld [vmem:[%s5358_s2 + $0x268] sm:$0xff] }
  0x51   :  { %695 = vmatmul.mubr.bf16.gmra.mrb[4].mxu1 %v528_v23  ;;  %957 = vmatprep.mubr.bf16.mxu0 %v2890_v3  ;;  %v549_v23 = vpack.c.bf16 %v450_v19, %v447_v18  ;;  %v465_v45 = vld [vmem:[%s5358_s2 + $0x210] sm:$0xff]  ;;  %v468_v46 = vld [vmem:[%s5358_s2 + $0x228] sm:$0xff]  ;;  %v475_v48 = vld [vmem:[%s5358_s2 + $0x260] sm:$0xff] }
  0x52   :  { %704 = vmatprep.mubr.bf16.mxu1 %v532_v24  ;;  %v553_v24 = vpack.c.bf16 %v457_v21, %v454_v20  ;;  %v472_v47 = vld [vmem:[%s5358_s2 + $0x248] sm:$0xff]  ;;  %v479_v52 = vld [vmem:[%s5358_s2 + $0x280] sm:$0xff]  ;;  %v482_v53 = vld [vmem:[%s5358_s2 + $0x298] sm:$0xff] }
  0x53   :  { %v471_v54 = vld [vmem:[%s5358_s2 + $0x240] sm:$0xff]  ;;  %v474_v55 = vld [vmem:[%s5358_s2 + $0x258] sm:$0xff]  ;;  %v481_v57 = vld [vmem:[%s5358_s2 + $0x290] sm:$0xff] }
  0x54   :  { %v478_v56 = vld [vmem:[%s5358_s2 + $0x278] sm:$0xff]  ;;  %v485_v61 = vld [vmem:[%s5358_s2 + $0x2b0] sm:$0xff]  ;;  %v488_v62 = vld [vmem:[%s5358_s2 + $0x2c8] sm:$0xff] }
  0x55   :  { %v477_v63 = vld [vmem:[%s5358_s2 + $0x270] sm:$0xff]  ;;  %v480_v0 = vld [vmem:[%s5358_s2 + $0x288] sm:$0xff]  ;;  %v487_v2 = vld [vmem:[%s5358_s2 + $0x2c0] sm:$0xff] }
  0x56   :  { %v484_v1 = vld [vmem:[%s5358_s2 + $0x2a8] sm:$0xff]  ;;  %v491_v7 = vld [vmem:[%s5358_s2 + $0x2e0] sm:$0xff]  ;;  %v494_v8 = vld [vmem:[%s5358_s2 + $0x2f8] sm:$0xff] }
  0x57   :  { %v483_v9 = vld [vmem:[%s5358_s2 + $0x2a0] sm:$0xff]  ;;  %v486_v10 = vld [vmem:[%s5358_s2 + $0x2b8] sm:$0xff]  ;;  %v493_v12 = vld [vmem:[%s5358_s2 + $0x2f0] sm:$0xff] }
  0x58   :  { %2701 = vmatmul.mubr.msk.bf16.gmra.mrb[12].mxu0 %vm588_vm0, %v536_v31  ;;  %v557_v31 = vpack.c.bf16 %v464_v26, %v461_v25  ;;  %v490_v11 = vld [vmem:[%s5358_s2 + $0x2d8] sm:$0xff]  ;;  %v497_v16 = vld [vmem:[%s5358_s2 + $0x310] sm:$0xff]  ;;  %v500_v17 = vld [vmem:[%s5358_s2 + $0x328] sm:$0xff] }
  0x59   :  { %705 = vmatmul.mubr.bf16.gmra.mrb[8].mxu1 %v531_v32  ;;  %967 = vmatprep.mubr.bf16.mxu0 %v2890_v3  ;;  %v552_v32 = vpack.c.bf16 %v456_v28, %v453_v27  ;;  %v489_v18 = vld [vmem:[%s5358_s2 + $0x2d0] sm:$0xff]  ;;  %v492_v19 = vld [vmem:[%s5358_s2 + $0x2e8] sm:$0xff]  ;;  %v499_v21 = vld [vmem:[%s5358_s2 + $0x320] sm:$0xff] }
  0x5a   :  { %714 = vmatprep.mubr.bf16.mxu1 %v535_v33  ;;  %v556_v33 = vpack.c.bf16 %v463_v30, %v460_v29  ;;  %v496_v20 = vld [vmem:[%s5358_s2 + $0x308] sm:$0xff]  ;;  %v503_v25 = vld [vmem:[%s5358_s2 + $0x340] sm:$0xff]  ;;  %v506_v26 = vld [vmem:[%s5358_s2 + $0x358] sm:$0xff] }
  0x5b   :  { %v495_v27 = vld [vmem:[%s5358_s2 + $0x300] sm:$0xff]  ;;  %v498_v28 = vld [vmem:[%s5358_s2 + $0x318] sm:$0xff]  ;;  %v505_v30 = vld [vmem:[%s5358_s2 + $0x350] sm:$0xff] }
  0x5c   :  { %v502_v29 = vld [vmem:[%s5358_s2 + $0x338] sm:$0xff] }
  0x60   :  { %2702 = vmatmul.mubr.msk.bf16.gmra.mrb[16].mxu0 %vm588_vm0, %v539_v40  ;;  %v560_v40 = vpack.c.bf16 %v470_v35, %v467_v34  ;;  %v509_v34 = vld [vmem:[%s5358_s2 + $0x370] sm:$0xff]  ;;  %v512_v35 = vld [vmem:[%s5358_s2 + $0x388] sm:$0xff] }
  0x61   :  { %715 = vmatmul.mubr.bf16.gmra.mrb[12].mxu1 %v534_v41  ;;  %977 = vmatprep.mubr.bf16.mxu0 %v2890_v3  ;;  %v555_v41 = vpack.c.bf16 %v462_v37, %v459_v36  ;;  %v501_v36 = vld [vmem:[%s5358_s2 + $0x330] sm:$0xff]  ;;  %v504_v37 = vld [vmem:[%s5358_s2 + $0x348] sm:$0xff] }
  0x62   :  { %724 = vmatprep.mubr.bf16.mxu1 %v538_v42  ;;  %v559_v42 = vpack.c.bf16 %v469_v39, %v466_v38  ;;  %v508_v38 = vld [vmem:[%s5358_s2 + $0x368] sm:$0xff]  ;;  %v511_v39 = vld [vmem:[%s5358_s2 + $0x380] sm:$0xff] }
  0x68   :  { %2703 = vmatmul.mubr.msk.bf16.gmra.mrb[20].mxu0 %vm588_vm0, %v542_v49  ;;  %v563_v49 = vpack.c.bf16 %v476_v44, %v473_v43  ;;  %v515_v43 = vld [vmem:[%s5358_s2 + $0x3a0] sm:$0xff]  ;;  %v518_v44 = vld [vmem:[%s5358_s2 + $0x3b8] sm:$0xff] }
  0x69   :  { %725 = vmatmul.mubr.bf16.gmra.mrb[16].mxu1 %v537_v50  ;;  %987 = vmatprep.mubr.bf16.mxu0 %v2890_v3  ;;  %v558_v50 = vpack.c.bf16 %v468_v46, %v465_v45  ;;  %v507_v45 = vld [vmem:[%s5358_s2 + $0x360] sm:$0xff]  ;;  %v510_v46 = vld [vmem:[%s5358_s2 + $0x378] sm:$0xff] }
  0x6a   :  { %734 = vmatprep.mubr.bf16.mxu1 %v541_v51  ;;  %v562_v51 = vpack.c.bf16 %v475_v48, %v472_v47  ;;  %v514_v47 = vld [vmem:[%s5358_s2 + $0x398] sm:$0xff]  ;;  %v517_v48 = vld [vmem:[%s5358_s2 + $0x3b0] sm:$0xff] }
  0x70   :  { %2704 = vmatmul.mubr.msk.bf16.gmra.mrb[24].mxu0 %vm588_vm0, %v545_v58  ;;  %v566_v58 = vpack.c.bf16 %v482_v53, %v479_v52  ;;  %v521_v52 = vld [vmem:[%s5358_s2 + $0x3d0] sm:$0xff]  ;;  %v524_v53 = vld [vmem:[%s5358_s2 + $0x3e8] sm:$0xff] }
  0x71   :  { %735 = vmatmul.mubr.bf16.gmra.mrb[20].mxu1 %v540_v59  ;;  %997 = vmatprep.mubr.bf16.mxu0 %v2890_v3  ;;  %v561_v59 = vpack.c.bf16 %v474_v55, %v471_v54  ;;  %v513_v54 = vld [vmem:[%s5358_s2 + $0x390] sm:$0xff]  ;;  %v516_v55 = vld [vmem:[%s5358_s2 + $0x3a8] sm:$0xff] }
  0x72   :  { %744 = vmatprep.mubr.bf16.mxu1 %v544_v60  ;;  %v565_v60 = vpack.c.bf16 %v481_v57, %v478_v56  ;;  %v523_v56 = vld [vmem:[%s5358_s2 + $0x3e0] sm:$0xff]  ;;  %v587_v57 = vpack.c.bf16 %v524_v53, %v521_v52 }
  0x78   :  { %2705 = vmatmul.mubr.msk.bf16.gmra.mrb[28].mxu0 %vm588_vm0, %v548_v4  ;;  %v569_v4 = vpack.c.bf16 %v488_v62, %v485_v61  ;;  %v522_v61 = vld [vmem:[%s5358_s2 + $0x3d8] sm:$0xff] }
  0x79   :  { %745 = vmatmul.mubr.bf16.gmra.mrb[24].mxu1 %v543_v5  ;;  %1007 = vmatprep.mubr.bf16.mxu0 %v2890_v3  ;;  %v564_v5 = vpack.c.bf16 %v480_v0, %v477_v63 }
  0x7a   :  { %754 = vmatprep.mubr.bf16.mxu1 %v547_v6  ;;  %v568_v6 = vpack.c.bf16 %v487_v2, %v484_v1 }
  0x80   :  { %2706 = vmatmul.mubr.msk.bf16.gmra.mrb[32].mxu0 %vm588_vm0, %v551_v13  ;;  %v572_v13 = vpack.c.bf16 %v494_v8, %v491_v7 }
  0x81   :  { %755 = vmatmul.mubr.bf16.gmra.mrb[28].mxu1 %v546_v14  ;;  %1017 = vmatprep.mubr.bf16.mxu0 %v2890_v3  ;;  %v567_v14 = vpack.c.bf16 %v486_v10, %v483_v9 }
  0x82   :  { %764 = vmatprep.mubr.bf16.mxu1 %v550_v15  ;;  %v571_v15 = vpack.c.bf16 %v493_v12, %v490_v11 }
  0x88   :  { %2707 = vmatmul.mubr.msk.bf16.gmra.mrb[36].mxu0 %vm588_vm0, %v554_v22  ;;  %v575_v22 = vpack.c.bf16 %v500_v17, %v497_v16 }
  0x89   :  { %765 = vmatmul.mubr.bf16.gmra.mrb[32].mxu1 %v549_v23  ;;  %1027 = vmatprep.mubr.bf16.mxu0 %v2890_v3  ;;  %v570_v23 = vpack.c.bf16 %v492_v19, %v489_v18 }
  0x8a   :  { %774 = vmatprep.mubr.bf16.mxu1 %v553_v24  ;;  %v574_v24 = vpack.c.bf16 %v499_v21, %v496_v20 }
  0x90   :  { %2708 = vmatmul.mubr.msk.bf16.gmra.mrb[40].mxu0 %vm588_vm0, %v557_v31  ;;  %v578_v31 = vpack.c.bf16 %v506_v26, %v503_v25 }
  0x91   :  { %775 = vmatmul.mubr.bf16.gmra.mrb[36].mxu1 %v552_v32  ;;  %1037 = vmatprep.mubr.bf16.mxu0 %v2890_v3  ;;  %v573_v32 = vpack.c.bf16 %v498_v28, %v495_v27 }
  0x92   :  { %784 = vmatprep.mubr.bf16.mxu1 %v556_v33  ;;  %v577_v33 = vpack.c.bf16 %v505_v30, %v502_v29 }
  0x98   :  { %2709 = vmatmul.mubr.msk.bf16.gmra.mrb[44].mxu0 %vm588_vm0, %v560_v40  ;;  %v581_v40 = vpack.c.bf16 %v512_v35, %v509_v34 }
  0x99   :  { %785 = vmatmul.mubr.bf16.gmra.mrb[40].mxu1 %v555_v41  ;;  %1047 = vmatprep.mubr.bf16.mxu0 %v2890_v3  ;;  %v576_v41 = vpack.c.bf16 %v504_v37, %v501_v36 }
  0x9a   :  { %794 = vmatprep.mubr.bf16.mxu1 %v559_v42  ;;  %v580_v42 = vpack.c.bf16 %v511_v39, %v508_v38 }
  0xa0   :  { %2710 = vmatmul.mubr.msk.bf16.gmra.mrb[48].mxu0 %vm588_vm0, %v563_v49  ;;  %v584_v49 = vpack.c.bf16 %v518_v44, %v515_v43 }
  0xa1   :  { %795 = vmatmul.mubr.bf16.gmra.mrb[44].mxu1 %v558_v50  ;;  %1057 = vmatprep.mubr.bf16.mxu0 %v2890_v3  ;;  %v579_v50 = vpack.c.bf16 %v510_v46, %v507_v45 }
  0xa2   :  { %804 = vmatprep.mubr.bf16.mxu1 %v562_v51  ;;  %v583_v51 = vpack.c.bf16 %v517_v48, %v514_v47 }
  0xa8   :  { %2711 = vmatmul.mubr.msk.bf16.gmra.mrb[52].mxu0 %vm588_vm0, %v566_v58  ;;  %v582_v58 = vpack.c.bf16 %v516_v55, %v513_v54 }
  0xa9   :  { %805 = vmatmul.mubr.bf16.gmra.mrb[48].mxu1 %v561_v59  ;;  %1067 = vmatprep.mubr.bf16.mxu0 %v2890_v3 }
  0xaa   :  { %814 = vmatprep.mubr.bf16.mxu1 %v565_v60  ;;  %v519_v60 = vld [vmem:[%s5358_s2 + $0x3c0] sm:$0xff] }
  0xab   :  { %v585_v62 = vpack.c.bf16 %v522_v61, %v519_v60 }
  0xb0   :  { %2712 = vmatmul.mubr.msk.bf16.gmra.mrb[56].mxu0 %vm588_vm0, %v569_v4 }
  0xb1   :  { %815 = vmatmul.mubr.bf16.gmra.mrb[52].mxu1 %v564_v5  ;;  %1077 = vmatprep.mubr.bf16.mxu0 %v2890_v3 }
  0xb2   :  { %824 = vmatprep.mubr.bf16.mxu1 %v568_v6 }
  0xb8   :  { %2713 = vmatmul.mubr.msk.bf16.gmra.mrb[60].mxu0 %vm588_vm0, %v572_v13 }
  0xb9   :  { %825 = vmatmul.mubr.bf16.gmra.mrb[56].mxu1 %v567_v14  ;;  %1087 = vmatprep.mubr.bf16.mxu0 %v2890_v3 }
  0xba   :  { %834 = vmatprep.mubr.bf16.mxu1 %v571_v15 }
  0xc0   :  { %2714 = vmatmul.mubr.msk.bf16.gmra.mrb[64].mxu0 %vm588_vm0, %v575_v22 }
  0xc1   :  { %835 = vmatmul.mubr.bf16.gmra.mrb[60].mxu1 %v570_v23  ;;  %1097 = vmatprep.mubr.bf16.mxu0 %v2890_v3 }
  0xc2   :  { %844 = vmatprep.mubr.bf16.mxu1 %v574_v24 }
  0xc8   :  { %2715 = vmatmul.mubr.msk.bf16.gmra.mrb[68].mxu0 %vm588_vm0, %v578_v31 }
  0xc9   :  { %845 = vmatmul.mubr.bf16.gmra.mrb[64].mxu1 %v573_v32  ;;  %1107 = vmatprep.mubr.bf16.mxu0 %v2890_v3 }
  0xca   :  { %854 = vmatprep.mubr.bf16.mxu1 %v577_v33 }
  0xd0   :  { %2716 = vmatmul.mubr.msk.bf16.gmra.mrb[72].mxu0 %vm588_vm0, %v581_v40 }
  0xd1   :  { %855 = vmatmul.mubr.bf16.gmra.mrb[68].mxu1 %v576_v41  ;;  %1117 = vmatprep.mubr.bf16.mxu0 %v2890_v3 }
  0xd2   :  { %864 = vmatprep.mubr.bf16.mxu1 %v580_v42 }
  0xd8   :  { %2717 = vmatmul.mubr.msk.bf16.gmra.mrb[76].mxu0 %vm588_vm0, %v584_v49 }
  0xd9   :  { %865 = vmatmul.mubr.bf16.gmra.mrb[72].mxu1 %v579_v50  ;;  %1127 = vmatprep.mubr.bf16.mxu0 %v2890_v3  ;;  %v520_v3 = vld [vmem:[%s5358_s2 + $0x3c8] sm:$0xff] }
  0xda   :  { %874 = vmatprep.mubr.bf16.mxu1 %v583_v51  ;;  %v586_v59 = vpack.c.bf16 %v523_v56, %v520_v3 }
  0xe0   :  { %2718 = vmatmul.mubr.msk.bf16.gmra.mrb[80].mxu0 %vm588_vm0, %v587_v57 }
  0xe1   :  { %875 = vmatmul.mubr.bf16.gmra.mrb[76].mxu1 %v582_v58 }
  0xe2   :  { %884 = vmatprep.mubr.bf16.mxu1 %v586_v59 }
  0xe9   :  { %885 = vmatmul.mubr.bf16.gmra.mrb[80].mxu1 %v585_v62 }
 0x113   :  { %v929_v63 = vpop.f32.mrb[0].mxu0 }
 0x114   :  { %v931_v0 = vpop.f32.mrb[1].mxu0 }
 0x115   :  { %v933_v1 = vpop.f32.mrb[2].mxu0 }
 0x116   :  { %v935_v2 = vpop.f32.mrb[3].mxu0 }
 0x11b   :  { %v939_v4 = vpop.f32.mrb[4].mxu0 }
 0x11c   :  { %v686_v5 = vpop.f32.mrb[0].mxu1  ;;  %v941_v6 = vpop.f32.mrb[5].mxu0 }
 0x11d   :  { %v3898_v7 = vadd.f32 %v929_v63, %v686_v5  ;;  %v688_v8 = vpop.f32.mrb[1].mxu1  ;;  %v943_v9 = vpop.f32.mrb[6].mxu0 }
 0x11e   :  { %v3900_v10 = vadd.f32 %v931_v0, %v688_v8  ;;  %v690_v11 = vpop.f32.mrb[2].mxu1  ;;  %v945_v12 = vpop.f32.mrb[7].mxu0 }
 0x11f   :  { %v3902_v13 = vadd.f32 %v933_v1, %v690_v11  ;;  %v692_v14 = vpop.f32.mrb[3].mxu1  ;;  %v1307_v37 = vmul.f32 %v3898_v7, %v3898_v7 }
 0x120   :  { %v3904_v15 = vadd.f32 %v935_v2, %v692_v14  ;;  %v1139_v16 = vsel %vm1138_vm1, %v3900_v10, 0.0  ;;  %v1308_v20 = vmul.f32 %v3900_v10, %v3900_v10 }
 0x121   :  { %v1140_v17 = vadd.f32 %v1139_v16, %v3898_v7  ;;  %v1309_v21 = vmul.f32 %v3902_v13, %v3902_v13 }
 0x122   :  { %v1310_v18 = vmul.f32 %v3904_v15, %v3904_v15  ;;  %v1143_v19 = vsel %vm1138_vm1, %v3904_v15, 0.0  ;;  %v1391_v33 = vsel %vm1138_vm1, %v1308_v20, 0.0 }
 0x123   :  { %1141 = vadd.xlane.f32.xlu0 %v1140_v17  ;;  %v949_v22 = vpop.f32.mrb[8].mxu0  ;;  %v1144_v29 = vadd.f32 %v1143_v19, %v3902_v13  ;;  %v1392_v41 = vadd.f32 %v1391_v33, %v1307_v37 }
 0x124   :  { %v696_v23 = vpop.f32.mrb[4].mxu1  ;;  %v1395_v24 = vsel %vm1138_vm1, %v1310_v18, 0.0  ;;  %v951_v25 = vpop.f32.mrb[9].mxu0 }
 0x125   :  { %v3918_v26 = vadd.f32 %v939_v4, %v696_v23  ;;  %v698_v27 = vpop.f32.mrb[5].mxu1  ;;  %v1396_v28 = vadd.f32 %v1395_v24, %v1309_v21  ;;  %v953_v30 = vpop.f32.mrb[10].mxu0 }
 0x126   :  { %v3921_v31 = vadd.f32 %v941_v6, %v698_v27  ;;  %v700_v32 = vpop.f32.mrb[6].mxu1  ;;  %v955_v34 = vpop.f32.mrb[11].mxu0 }
 0x127   :  { %v3924_v35 = vadd.f32 %v943_v9, %v700_v32  ;;  %1397 = vadd.xlane.f32.xlu1 %v1396_v28  ;;  %1145 = vadd.xlane.f32.xlu0 %v1144_v29  ;;  %v702_v36 = vpop.f32.mrb[7].mxu1  ;;  %v1311_v46 = vmul.f32 %v3918_v26, %v3918_v26 }
 0x128   :  { %v3928_v38 = vadd.f32 %v945_v12, %v702_v36  ;;  %v1147_v39 = vsel %vm1138_vm1, %v3921_v31, 0.0  ;;  %v1312_v40 = vmul.f32 %v3921_v31, %v3921_v31 }
 0x129   :  { %v1148_v42 = vadd.f32 %v1147_v39, %v3918_v26  ;;  %v1313_v60 = vmul.f32 %v3924_v35, %v3924_v35 }
 0x12a   :  { %v1399_v43 = vsel %vm1138_vm1, %v1312_v40, 0.0  ;;  %v1151_v44 = vsel %vm1138_vm1, %v3928_v38, 0.0  ;;  %v1314_v45 = vmul.f32 %v3928_v38, %v3928_v38 }
 0x12b   :  { %1393 = vadd.xlane.f32.xlu0 %v1392_v41  ;;  %1149 = vadd.xlane.f32.xlu1 %v1148_v42  ;;  %v959_v47 = vpop.f32.mrb[12].mxu0  ;;  %v1400_v52 = vadd.f32 %v1399_v43, %v1311_v46  ;;  %v1152_v53 = vadd.f32 %v1151_v44, %v3924_v35 }
 0x12c   :  { %v706_v48 = vpop.f32.mrb[8].mxu1  ;;  %v961_v49 = vpop.f32.mrb[13].mxu0  ;;  %v1403_v56 = vsel %vm1138_vm1, %v1314_v45, 0.0 }
 0x12d   :  { %v3942_v50 = vadd.f32 %v949_v22, %v706_v48  ;;  %v708_v51 = vpop.f32.mrb[9].mxu1  ;;  %v963_v54 = vpop.f32.mrb[14].mxu0  ;;  %v1404_v0 = vadd.f32 %v1403_v56, %v1313_v60 }
 0x12e   :  { %v3945_v55 = vadd.f32 %v951_v25, %v708_v51  ;;  %v710_v3 = vpop.f32.mrb[10].mxu1  ;;  %v965_v57 = vpop.f32.mrb[15].mxu0 }
 0x12f   :  { %v3948_v58 = vadd.f32 %v953_v30, %v710_v3  ;;  %1401 = vadd.xlane.f32.xlu0 %v1400_v52  ;;  %1153 = vadd.xlane.f32.xlu1 %v1152_v53  ;;  %v712_v59 = vpop.f32.mrb[11].mxu1  ;;  %v1315_v2 = vmul.f32 %v3942_v50, %v3942_v50 }
 0x130   :  { %v3952_v61 = vadd.f32 %v955_v34, %v712_v59  ;;  %v1155_v62 = vsel %vm1138_vm1, %v3945_v55, 0.0  ;;  %v1316_v63 = vmul.f32 %v3945_v55, %v3945_v55 }
 0x131   :  { %v1156_v1 = vadd.f32 %v1155_v62, %v3942_v50  ;;  %v1317_v25 = vmul.f32 %v3948_v58, %v3948_v58 }
 0x132   :  { %v1407_v4 = vsel %vm1138_vm1, %v1316_v63, 0.0  ;;  %v1159_v5 = vsel %vm1138_vm1, %v3952_v61, 0.0  ;;  %v1318_v6 = vmul.f32 %v3952_v61, %v3952_v61 }
 0x133   :  { %1405 = vadd.xlane.f32.xlu1 %v1404_v0  ;;  %1157 = vadd.xlane.f32.xlu0 %v1156_v1  ;;  %v969_v8 = vpop.f32.mrb[16].mxu0  ;;  %v1408_v16 = vadd.f32 %v1407_v4, %v1315_v2  ;;  %v1160_v17 = vadd.f32 %v1159_v5, %v3948_v58 }
 0x134   :  { %v716_v9 = vpop.f32.mrb[12].mxu1  ;;  %v971_v11 = vpop.f32.mrb[17].mxu0  ;;  %v1411_v21 = vsel %vm1138_vm1, %v1318_v6, 0.0 }
 0x135   :  { %v3966_v12 = vadd.f32 %v959_v47, %v716_v9  ;;  %v718_v14 = vpop.f32.mrb[13].mxu1  ;;  %v973_v18 = vpop.f32.mrb[18].mxu0  ;;  %v1412_v30 = vadd.f32 %v1411_v21, %v1317_v25 }
 0x136   :  { %v3969_v19 = vadd.f32 %v961_v49, %v718_v14  ;;  %v720_v20 = vpop.f32.mrb[14].mxu1  ;;  %v975_v22 = vpop.f32.mrb[19].mxu0 }
 0x137   :  { %v3972_v23 = vadd.f32 %v963_v54, %v720_v20  ;;  %1409 = vadd.xlane.f32.xlu0 %v1408_v16  ;;  %1161 = vadd.xlane.f32.xlu1 %v1160_v17  ;;  %v722_v24 = vpop.f32.mrb[15].mxu1  ;;  %v1319_v33 = vmul.f32 %v3966_v12, %v3966_v12 }
 0x138   :  { %v3976_v27 = vadd.f32 %v965_v57, %v722_v24  ;;  %v1163_v28 = vsel %vm1138_vm1, %v3969_v19, 0.0  ;;  %v1320_v29 = vmul.f32 %v3969_v19, %v3969_v19 }
 0x139   :  { %v1164_v32 = vadd.f32 %v1163_v28, %v3966_v12  ;;  %v1321_v54 = vmul.f32 %v3972_v23, %v3972_v23 }
 0x13a   :  { %v1415_v34 = vsel %vm1138_vm1, %v1320_v29, 0.0  ;;  %v1167_v36 = vsel %vm1138_vm1, %v3976_v27, 0.0  ;;  %v1322_v37 = vmul.f32 %v3976_v27, %v3976_v27 }
 0x13b   :  { %1413 = vadd.xlane.f32.xlu1 %v1412_v30  ;;  %1165 = vadd.xlane.f32.xlu0 %v1164_v32  ;;  %v979_v39 = vpop.f32.mrb[20].mxu0  ;;  %v1416_v44 = vadd.f32 %v1415_v34, %v1319_v33  ;;  %v1168_v45 = vadd.f32 %v1167_v36, %v3972_v23 }
 0x13c   :  { %v726_v40 = vpop.f32.mrb[16].mxu1  ;;  %v981_v41 = vpop.f32.mrb[21].mxu0  ;;  %v1419_v49 = vsel %vm1138_vm1, %v1322_v37, 0.0 }
 0x13d   :  { %v3990_v42 = vadd.f32 %v969_v8, %v726_v40  ;;  %v728_v43 = vpop.f32.mrb[17].mxu1  ;;  %v983_v46 = vpop.f32.mrb[22].mxu0  ;;  %v1420_v59 = vadd.f32 %v1419_v49, %v1321_v54 }
 0x13e   :  { %v3993_v47 = vadd.f32 %v971_v11, %v728_v43  ;;  %v730_v48 = vpop.f32.mrb[18].mxu1  ;;  %v985_v51 = vpop.f32.mrb[23].mxu0 }
 0x13f   :  { %v3996_v52 = vadd.f32 %v973_v18, %v730_v48  ;;  %1417 = vadd.xlane.f32.xlu0 %v1416_v44  ;;  %1169 = vadd.xlane.f32.xlu1 %v1168_v45  ;;  %v732_v53 = vpop.f32.mrb[19].mxu1  ;;  %v1323_v62 = vmul.f32 %v3990_v42, %v3990_v42 }
 0x140   :  { %v4000_v3 = vadd.f32 %v975_v22, %v732_v53  ;;  %v1171_v56 = vsel %vm1138_vm1, %v3993_v47, 0.0  ;;  %v1324_v57 = vmul.f32 %v3993_v47, %v3993_v47 }
 0x141   :  { %v1172_v60 = vadd.f32 %v1171_v56, %v3990_v42  ;;  %v1325_v24 = vmul.f32 %v3996_v52, %v3996_v52 }
 0x142   :  { %v1423_v63 = vsel %vm1138_vm1, %v1324_v57, 0.0  ;;  %v1175_v0 = vsel %vm1138_vm1, %v4000_v3, 0.0  ;;  %v1326_v1 = vmul.f32 %v4000_v3, %v4000_v3 }
 0x143   :  { %1421 = vadd.xlane.f32.xlu1 %v1420_v59  ;;  %1173 = vadd.xlane.f32.xlu0 %v1172_v60  ;;  %v989_v2 = vpop.f32.mrb[24].mxu0  ;;  %v1424_v9 = vadd.f32 %v1423_v63, %v1323_v62  ;;  %v1176_v11 = vadd.f32 %v1175_v0, %v3996_v52 }
 0x144   :  { %v736_v4 = vpop.f32.mrb[20].mxu1  ;;  %v991_v5 = vpop.f32.mrb[25].mxu0  ;;  %v1427_v18 = vsel %vm1138_vm1, %v1326_v1, 0.0 }
 0x145   :  { %v4014_v6 = vadd.f32 %v979_v39, %v736_v4  ;;  %v738_v8 = vpop.f32.mrb[21].mxu1  ;;  %v993_v14 = vpop.f32.mrb[26].mxu0  ;;  %v1428_v30 = vadd.f32 %v1427_v18, %v1325_v24 }
 0x146   :  { %v4017_v16 = vadd.f32 %v981_v41, %v738_v8  ;;  %v740_v17 = vpop.f32.mrb[22].mxu1  ;;  %v995_v20 = vpop.f32.mrb[27].mxu0 }
 0x147   :  { %5420 = vst [vmem:[#allocation2_spill] sm:$0xff] %v4014_v6  ;;  %v4020_v21 = vadd.f32 %v983_v46, %v740_v17  ;;  %1425 = vadd.xlane.f32.xlu0 %v1424_v9  ;;  %1177 = vadd.xlane.f32.xlu1 %v1176_v11  ;;  %v742_v22 = vpop.f32.mrb[23].mxu1  ;;  %v1327_v33 = vmul.f32 %v4014_v6, %v4014_v6 }
 0x148   :  { %5421 = vst [vmem:[#allocation3_spill] sm:$0xff] %v4017_v16  ;;  %v4024_v25 = vadd.f32 %v985_v51, %v742_v22  ;;  %v1179_v28 = vsel %vm1138_vm1, %v4017_v16, 0.0  ;;  %v1328_v29 = vmul.f32 %v4017_v16, %v4017_v16 }
 0x149   :  { %v1180_v32 = vadd.f32 %v1179_v28, %v4014_v6  ;;  %v1329_v59 = vmul.f32 %v4020_v21, %v4020_v21 }
 0x14a   :  { %v1431_v34 = vsel %vm1138_vm1, %v1328_v29, 0.0  ;;  %v1183_v36 = vsel %vm1138_vm1, %v4024_v25, 0.0  ;;  %v1330_v37 = vmul.f32 %v4024_v25, %v4024_v25 }
 0x14b   :  { %1429 = vadd.xlane.f32.xlu1 %v1428_v30  ;;  %1181 = vadd.xlane.f32.xlu0 %v1180_v32  ;;  %v999_v39 = vpop.f32.mrb[28].mxu0  ;;  %v1432_v45 = vadd.f32 %v1431_v34, %v1327_v33  ;;  %v1184_v46 = vadd.f32 %v1183_v36, %v4020_v21 }
 0x14c   :  { %v746_v40 = vpop.f32.mrb[24].mxu1  ;;  %v1001_v41 = vpop.f32.mrb[29].mxu0  ;;  %v1435_v53 = vsel %vm1138_vm1, %v1330_v37, 0.0 }
 0x14d   :  { %v4038_v43 = vadd.f32 %v989_v2, %v746_v40  ;;  %v748_v44 = vpop.f32.mrb[25].mxu1  ;;  %v1003_v48 = vpop.f32.mrb[30].mxu0  ;;  %v1436_v0 = vadd.f32 %v1435_v53, %v1329_v59 }
 0x14e   :  { %v4041_v49 = vadd.f32 %v991_v5, %v748_v44  ;;  %v750_v51 = vpop.f32.mrb[26].mxu1  ;;  %v1005_v54 = vpop.f32.mrb[31].mxu0 }
 0x14f   :  { %5422 = vst [vmem:[#allocation4_spill] sm:$0xff] %v4038_v43  ;;  %v4044_v56 = vadd.f32 %v993_v14, %v750_v51  ;;  %1433 = vadd.xlane.f32.xlu0 %v1432_v45  ;;  %1185 = vadd.xlane.f32.xlu1 %v1184_v46  ;;  %v752_v57 = vpop.f32.mrb[27].mxu1  ;;  %v1331_v2 = vmul.f32 %v4038_v43, %v4038_v43 }
 0x150   :  { %5423 = vst [vmem:[#allocation5_spill] sm:$0xff] %v4041_v49  ;;  %v4048_v60 = vadd.f32 %v995_v20, %v752_v57  ;;  %v1187_v62 = vsel %vm1138_vm1, %v4041_v49, 0.0  ;;  %v1332_v63 = vmul.f32 %v4041_v49, %v4041_v49 }
 0x151   :  { %v1188_v1 = vadd.f32 %v1187_v62, %v4038_v43  ;;  %v1333_v36 = vmul.f32 %v4044_v56, %v4044_v56 }
 0x152   :  { %v1439_v4 = vsel %vm1138_vm1, %v1332_v63, 0.0  ;;  %v1191_v5 = vsel %vm1138_vm1, %v4048_v60, 0.0  ;;  %v1334_v8 = vmul.f32 %v4048_v60, %v4048_v60 }
 0x153   :  { %1437 = vadd.xlane.f32.xlu1 %v1436_v0  ;;  %1189 = vadd.xlane.f32.xlu0 %v1188_v1  ;;  %v1009_v9 = vpop.f32.mrb[32].mxu0  ;;  %v1440_v20 = vadd.f32 %v1439_v4, %v1331_v2  ;;  %v1192_v22 = vadd.f32 %v1191_v5, %v4044_v56 }
 0x154   :  { %v756_v11 = vpop.f32.mrb[28].mxu1  ;;  %v1011_v14 = vpop.f32.mrb[33].mxu0  ;;  %v1443_v30 = vsel %vm1138_vm1, %v1334_v8, 0.0 }
 0x155   :  { %v4062_v17 = vadd.f32 %v999_v39, %v756_v11  ;;  %v758_v18 = vpop.f32.mrb[29].mxu1  ;;  %v1013_v24 = vpop.f32.mrb[34].mxu0 }
 0x156   :  { %v4065_v28 = vadd.f32 %v1001_v41, %v758_v18  ;;  %v760_v29 = vpop.f32.mrb[30].mxu1  ;;  %v1015_v32 = vpop.f32.mrb[35].mxu0  ;;  %v1444_v41 = vadd.f32 %v1443_v30, %v1333_v36 }
 0x157   :  { %5424 = vst [vmem:[#allocation6_spill] sm:$0xff] %v4062_v17  ;;  %v4068_v33 = vadd.f32 %v1003_v48, %v760_v29  ;;  %1441 = vadd.xlane.f32.xlu0 %v1440_v20  ;;  %1193 = vadd.xlane.f32.xlu1 %v1192_v22  ;;  %v762_v34 = vpop.f32.mrb[31].mxu1  ;;  %v1335_v45 = vmul.f32 %v4062_v17, %v4062_v17 }
 0x158   :  { %5425 = vst [vmem:[#allocation7_spill] sm:$0xff] %v4065_v28  ;;  %v4072_v37 = vadd.f32 %v1005_v54, %v762_v34  ;;  %v1195_v39 = vsel %vm1138_vm1, %v4065_v28, 0.0  ;;  %v1336_v40 = vmul.f32 %v4065_v28, %v4065_v28 }
 0x159   :  { %v1196_v44 = vadd.f32 %v1195_v39, %v4062_v17 }
 0x15a   :  { %v1447_v46 = vsel %vm1138_vm1, %v1336_v40, 0.0  ;;  %v1199_v48 = vsel %vm1138_vm1, %v4072_v37, 0.0  ;;  %v1338_v51 = vmul.f32 %v4072_v37, %v4072_v37 }
 0x15b   :  { %1445 = vadd.xlane.f32.xlu1 %v1444_v41  ;;  %1197 = vadd.xlane.f32.xlu0 %v1196_v44  ;;  %v1019_v53 = vpop.f32.mrb[36].mxu0  ;;  %v1448_v63 = vadd.f32 %v1447_v46, %v1335_v45  ;;  %v1200_v0 = vadd.f32 %v1199_v48, %v4068_v33 }
 0x15c   :  { %v766_v54 = vpop.f32.mrb[32].mxu1  ;;  %v1021_v57 = vpop.f32.mrb[37].mxu0  ;;  %v1451_v5 = vsel %vm1138_vm1, %v1338_v51, 0.0 }
 0x15d   :  { %v4086_v59 = vadd.f32 %v1009_v9, %v766_v54  ;;  %v768_v62 = vpop.f32.mrb[33].mxu1  ;;  %v1023_v1 = vpop.f32.mrb[38].mxu0  ;;  %v1337_v9 = vmul.f32 %v4068_v33, %v4068_v33 }
 0x15e   :  { %v4089_v2 = vadd.f32 %v1011_v14, %v768_v62  ;;  %v770_v4 = vpop.f32.mrb[34].mxu1  ;;  %v1025_v8 = vpop.f32.mrb[39].mxu0 }
 0x15f   :  { %5426 = vst [vmem:[#allocation8_spill] sm:$0xff] %v4086_v59  ;;  %v4092_v11 = vadd.f32 %v1013_v24, %v770_v4  ;;  %1449 = vadd.xlane.f32.xlu0 %v1448_v63  ;;  %1201 = vadd.xlane.f32.xlu1 %v1200_v0  ;;  %v772_v18 = vpop.f32.mrb[35].mxu1  ;;  %v1452_v29 = vadd.f32 %v1451_v5, %v1337_v9 }
 0x160   :  { %5427 = vst [vmem:[#allocation9_spill] sm:$0xff] %v4089_v2  ;;  %v4096_v20 = vadd.f32 %v1015_v32, %v772_v18  ;;  %v1203_v22 = vsel %vm1138_vm1, %v4089_v2, 0.0  ;;  %v1340_v14 = vmul.f32 %v4089_v2, %v4089_v2  ;;  %v1339_v24 = vmul.f32 %v4086_v59, %v4086_v59 }
 0x161   :  { %5428 = vst [vmem:[#allocation10_spill] sm:$0xff] %v4092_v11  ;;  %v1204_v30 = vadd.f32 %v1203_v22, %v4086_v59 }
 0x162   :  { %5429 = vst [vmem:[#allocation11_spill] sm:$0xff] %v4096_v20  ;;  %v1455_v34 = vsel %vm1138_vm1, %v1340_v14, 0.0  ;;  %v1207_v36 = vsel %vm1138_vm1, %v4096_v20, 0.0  ;;  %v1342_v32 = vmul.f32 %v4096_v20, %v4096_v20 }
 0x163   :  { %1453 = vadd.xlane.f32.xlu1 %v1452_v29  ;;  %1205 = vadd.xlane.f32.xlu0 %v1204_v30  ;;  %v1029_v39 = vpop.f32.mrb[40].mxu0  ;;  %v1456_v46 = vadd.f32 %v1455_v34, %v1339_v24  ;;  %v1208_v48 = vadd.f32 %v1207_v36, %v4092_v11 }
 0x164   :  { %v776_v40 = vpop.f32.mrb[36].mxu1  ;;  %v1031_v41 = vpop.f32.mrb[41].mxu0  ;;  %v1459_v63 = vsel %vm1138_vm1, %v1342_v32, 0.0 }
 0x165   :  { %v4110_v44 = vadd.f32 %v1019_v53, %v776_v40  ;;  %v778_v45 = vpop.f32.mrb[37].mxu1  ;;  %v1033_v51 = vpop.f32.mrb[42].mxu0  ;;  %v1341_v53 = vmul.f32 %v4092_v11, %v4092_v11 }
 0x166   :  { %v4113_v54 = vadd.f32 %v1021_v57, %v778_v45  ;;  %v780_v62 = vpop.f32.mrb[38].mxu1  ;;  %v1035_v0 = vpop.f32.mrb[43].mxu0 }
 0x167   :  { %5430 = vst [vmem:[#allocation12_spill] sm:$0xff] %v4110_v44  ;;  %v4116_v4 = vadd.f32 %v1023_v1, %v780_v62  ;;  %1457 = vadd.xlane.f32.xlu0 %v1456_v46  ;;  %1209 = vadd.xlane.f32.xlu1 %v1208_v48  ;;  %v782_v5 = vpop.f32.mrb[39].mxu1  ;;  %v1460_v22 = vadd.f32 %v1459_v63, %v1341_v53 }
 0x168   :  { %5431 = vst [vmem:[#allocation13_spill] sm:$0xff] %v4113_v54  ;;  %v4120_v18 = vadd.f32 %v1025_v8, %v782_v5  ;;  %v1211_v9 = vsel %vm1138_vm1, %v4113_v54, 0.0  ;;  %v1344_v57 = vmul.f32 %v4113_v54, %v4113_v54  ;;  %v1343_v1 = vmul.f32 %v4110_v44, %v4110_v44 }
 0x169   :  { %5432 = vst [vmem:[#allocation14_spill] sm:$0xff] %v4116_v4  ;;  %v1212_v14 = vadd.f32 %v1211_v9, %v4110_v44 }
 0x16a   :  { %5433 = vst [vmem:[#allocation15_spill] sm:$0xff] %v4120_v18  ;;  %v1463_v29 = vsel %vm1138_vm1, %v1344_v57, 0.0  ;;  %v1215_v30 = vsel %vm1138_vm1, %v4120_v18, 0.0  ;;  %v1346_v8 = vmul.f32 %v4120_v18, %v4120_v18 }
 0x16b   :  { %1461 = vadd.xlane.f32.xlu1 %v1460_v22  ;;  %1213 = vadd.xlane.f32.xlu0 %v1212_v14  ;;  %v1039_v24 = vpop.f32.mrb[44].mxu0  ;;  %v1464_v45 = vadd.f32 %v1463_v29, %v1343_v1  ;;  %v1216_v46 = vadd.f32 %v1215_v30, %v4116_v4 }
 0x16c   :  { %v786_v34 = vpop.f32.mrb[40].mxu1  ;;  %v1041_v36 = vpop.f32.mrb[45].mxu0  ;;  %v1467_v5 = vsel %vm1138_vm1, %v1346_v8, 0.0 }
 0x16d   :  { %v4134_v32 = vadd.f32 %v1029_v39, %v786_v34  ;;  %v788_v40 = vpop.f32.mrb[41].mxu1  ;;  %v1043_v48 = vpop.f32.mrb[46].mxu0  ;;  %v1345_v39 = vmul.f32 %v4116_v4, %v4116_v4 }
 0x16e   :  { %v4137_v62 = vadd.f32 %v1031_v41, %v788_v40  ;;  %v790_v63 = vpop.f32.mrb[42].mxu1  ;;  %v1045_v53 = vpop.f32.mrb[47].mxu0 }
 0x16f   :  { %5434 = vst [vmem:[#allocation16_spill] sm:$0xff] %v4134_v32  ;;  %v4140_v9 = vadd.f32 %v1033_v51, %v790_v63  ;;  %1465 = vadd.xlane.f32.xlu0 %v1464_v45  ;;  %1217 = vadd.xlane.f32.xlu1 %v1216_v46  ;;  %v792_v57 = vpop.f32.mrb[43].mxu1  ;;  %v1468_v1 = vadd.f32 %v1467_v5, %v1345_v39 }
 0x170   :  { %5435 = vst [vmem:[#allocation17_spill] sm:$0xff] %v4137_v62  ;;  %v4144_v22 = vadd.f32 %v1035_v0, %v792_v57  ;;  %v1219_v14 = vsel %vm1138_vm1, %v4137_v62, 0.0  ;;  %v1348_v41 = vmul.f32 %v4137_v62, %v4137_v62  ;;  %v1347_v51 = vmul.f32 %v4134_v32, %v4134_v32 }
 0x171   :  { %5436 = vst [vmem:[#allocation18_spill] sm:$0xff] %v4140_v9  ;;  %v1220_v29 = vadd.f32 %v1219_v14, %v4134_v32 }
 0x172   :  { %5437 = vst [vmem:[#allocation19_spill] sm:$0xff] %v4144_v22  ;;  %v1471_v30 = vsel %vm1138_vm1, %v1348_v41, 0.0  ;;  %v1223_v8 = vsel %vm1138_vm1, %v4144_v22, 0.0  ;;  %v1350_v0 = vmul.f32 %v4144_v22, %v4144_v22 }
 0x173   :  { %1469 = vadd.xlane.f32.xlu1 %v1468_v1  ;;  %1221 = vadd.xlane.f32.xlu0 %v1220_v29  ;;  %v1049_v34 = vpop.f32.mrb[48].mxu0  ;;  %v1472_v5 = vadd.f32 %v1471_v30, %v1347_v51  ;;  %v1224_v57 = vadd.f32 %v1223_v8, %v4140_v9 }
 0x174   :  { %v796_v40 = vpop.f32.mrb[44].mxu1  ;;  %v1051_v45 = vpop.f32.mrb[49].mxu0  ;;  %v1475_v62 = vsel %vm1138_vm1, %v1350_v0, 0.0 }
 0x175   :  { %v4158_v46 = vadd.f32 %v1039_v24, %v796_v40  ;;  %v798_v63 = vpop.f32.mrb[45].mxu1  ;;  %v1053_v39 = vpop.f32.mrb[50].mxu0  ;;  %v1349_v24 = vmul.f32 %v4140_v9, %v4140_v9 }
 0x176   :  { %v4161_v14 = vadd.f32 %v1041_v36, %v798_v63  ;;  %v800_v41 = vpop.f32.mrb[46].mxu1  ;;  %v1055_v32 = vpop.f32.mrb[51].mxu0 }
 0x177   :  { %5438 = vst [vmem:[#allocation20_spill] sm:$0xff] %v4158_v46  ;;  %v4164_v54 = vadd.f32 %v1043_v48, %v800_v41  ;;  %1473 = vadd.xlane.f32.xlu0 %v1472_v5  ;;  %1225 = vadd.xlane.f32.xlu1 %v1224_v57  ;;  %v802_v1 = vpop.f32.mrb[47].mxu1  ;;  %v1476_v30 = vadd.f32 %v1475_v62, %v1349_v24 }
 0x178   :  { %5439 = vst [vmem:[#allocation21_spill] sm:$0xff] %v4161_v14  ;;  %v4168_v29 = vadd.f32 %v1045_v53, %v802_v1  ;;  %v1227_v51 = vsel %vm1138_vm1, %v4161_v14, 0.0  ;;  %v1352_v36 = vmul.f32 %v4161_v14, %v4161_v14  ;;  %v1351_v48 = vmul.f32 %v4158_v46, %v4158_v46 }
 0x179   :  { %5440 = vst [vmem:[#allocation22_spill] sm:$0xff] %v4164_v54  ;;  %v1228_v8 = vadd.f32 %v1227_v51, %v4158_v46 }
 0x17a   :  { %5441 = vst [vmem:[#allocation23_spill] sm:$0xff] %v4168_v29  ;;  %v1479_v0 = vsel %vm1138_vm1, %v1352_v36, 0.0  ;;  %v1231_v40 = vsel %vm1138_vm1, %v4168_v29, 0.0  ;;  %v1354_v53 = vmul.f32 %v4168_v29, %v4168_v29 }
 0x17b   :  { %1477 = vadd.xlane.f32.xlu1 %v1476_v30  ;;  %1229 = vadd.xlane.f32.xlu0 %v1228_v8  ;;  %v1059_v63 = vpop.f32.mrb[52].mxu0  ;;  %v1480_v1 = vadd.f32 %v1479_v0, %v1351_v48  ;;  %v1232_v24 = vadd.f32 %v1231_v40, %v4164_v54 }
 0x17c   :  { %v806_v5 = vpop.f32.mrb[48].mxu1  ;;  %v1061_v57 = vpop.f32.mrb[53].mxu0  ;;  %v1483_v46 = vsel %vm1138_vm1, %v1354_v53, 0.0 }
 0x17d   :  { %v4182_v41 = vadd.f32 %v1049_v34, %v806_v5  ;;  %v808_v62 = vpop.f32.mrb[49].mxu1  ;;  %v1063_v51 = vpop.f32.mrb[54].mxu0  ;;  %v1353_v34 = vmul.f32 %v4164_v54, %v4164_v54 }
 0x17e   :  { %v4185_v14 = vadd.f32 %v1051_v45, %v808_v62  ;;  %v810_v36 = vpop.f32.mrb[50].mxu1  ;;  %v1065_v44 = vpop.f32.mrb[55].mxu0 }
 0x17f   :  { %5442 = vst [vmem:[#allocation24_spill] sm:$0xff] %v4182_v41  ;;  %v4188_v2 = vadd.f32 %v1053_v39, %v810_v36  ;;  %1481 = vadd.xlane.f32.xlu0 %v1480_v1  ;;  %1233 = vadd.xlane.f32.xlu1 %v1232_v24  ;;  %v812_v30 = vpop.f32.mrb[51].mxu1  ;;  %v1484_v0 = vadd.f32 %v1483_v46, %v1353_v34 }
 0x180   :  { %5443 = vst [vmem:[#allocation25_spill] sm:$0xff] %v4185_v14  ;;  %v4192_v8 = vadd.f32 %v1055_v32, %v812_v30  ;;  %v1235_v48 = vsel %vm1138_vm1, %v4185_v14, 0.0  ;;  %v1356_v45 = vmul.f32 %v4185_v14, %v4185_v14  ;;  %v1355_v39 = vmul.f32 %v4182_v41, %v4182_v41 }
 0x181   :  { %5444 = vst [vmem:[#allocation26_spill] sm:$0xff] %v4188_v2  ;;  %v1236_v40 = vadd.f32 %v1235_v48, %v4182_v41 }
 0x182   :  { %5445 = vst [vmem:[#allocation27_spill] sm:$0xff] %v4192_v8  ;;  %v1487_v53 = vsel %vm1138_vm1, %v1356_v45, 0.0  ;;  %v1239_v5 = vsel %vm1138_vm1, %v4192_v8, 0.0  ;;  %v1358_v32 = vmul.f32 %v4192_v8, %v4192_v8 }
 0x183   :  { %1485 = vadd.xlane.f32.xlu1 %v1484_v0  ;;  %1237 = vadd.xlane.f32.xlu0 %v1236_v40  ;;  %v1069_v62 = vpop.f32.mrb[56].mxu0  ;;  %v1488_v30 = vadd.f32 %v1487_v53, %v1355_v39  ;;  %v1240_v34 = vadd.f32 %v1239_v5, %v4188_v2 }
 0x184   :  { %v816_v1 = vpop.f32.mrb[52].mxu1  ;;  %v1071_v24 = vpop.f32.mrb[57].mxu0  ;;  %v1491_v41 = vsel %vm1138_vm1, %v1358_v32, 0.0 }
 0x185   :  { %v4206_v36 = vadd.f32 %v1059_v63, %v816_v1  ;;  %v818_v46 = vpop.f32.mrb[53].mxu1  ;;  %v1073_v48 = vpop.f32.mrb[58].mxu0  ;;  %v1357_v63 = vmul.f32 %v4188_v2, %v4188_v2 }
 0x186   :  { %v4209_v14 = vadd.f32 %v1061_v57, %v818_v46  ;;  %v820_v45 = vpop.f32.mrb[54].mxu1  ;;  %v1075_v59 = vpop.f32.mrb[59].mxu0 }
 0x187   :  { %5446 = vst [vmem:[#allocation28_spill] sm:$0xff] %v4206_v36  ;;  %v4212_v29 = vadd.f32 %v1063_v51, %v820_v45  ;;  %1489 = vadd.xlane.f32.xlu0 %v1488_v30  ;;  %1241 = vadd.xlane.f32.xlu1 %v1240_v34  ;;  %v822_v0 = vpop.f32.mrb[55].mxu1  ;;  %v1492_v53 = vadd.f32 %v1491_v41, %v1357_v63 }
 0x188   :  { %5447 = vst [vmem:[#allocation29_spill] sm:$0xff] %v4209_v14  ;;  %v4216_v40 = vadd.f32 %v1065_v44, %v822_v0  ;;  %v1243_v39 = vsel %vm1138_vm1, %v4209_v14, 0.0  ;;  %v1360_v57 = vmul.f32 %v4209_v14, %v4209_v14  ;;  %v1359_v51 = vmul.f32 %v4206_v36, %v4206_v36 }
 0x189   :  { %5448 = vst [vmem:[#allocation30_spill] sm:$0xff] %v4212_v29  ;;  %v1244_v5 = vadd.f32 %v1243_v39, %v4206_v36 }
 0x18a   :  { %5449 = vst [vmem:[#allocation31_spill] sm:$0xff] %v4216_v40  ;;  %v1495_v32 = vsel %vm1138_vm1, %v1360_v57, 0.0  ;;  %v1247_v1 = vsel %vm1138_vm1, %v4216_v40, 0.0  ;;  %v1362_v44 = vmul.f32 %v4216_v40, %v4216_v40 }
 0x18b   :  { %1493 = vadd.xlane.f32.xlu1 %v1492_v53  ;;  %1245 = vadd.xlane.f32.xlu0 %v1244_v5  ;;  %v1079_v46 = vpop.f32.mrb[60].mxu0  ;;  %v1496_v0 = vadd.f32 %v1495_v32, %v1359_v51  ;;  %v1248_v63 = vadd.f32 %v1247_v1, %v4212_v29 }
 0x18c   :  { %v826_v30 = vpop.f32.mrb[56].mxu1  ;;  %v1081_v34 = vpop.f32.mrb[61].mxu0  ;;  %v1499_v36 = vsel %vm1138_vm1, %v1362_v44, 0.0 }
 0x18d   :  { %v4230_v45 = vadd.f32 %v1069_v62, %v826_v30  ;;  %v828_v41 = vpop.f32.mrb[57].mxu1  ;;  %v1083_v39 = vpop.f32.mrb[62].mxu0  ;;  %v1361_v62 = vmul.f32 %v4212_v29, %v4212_v29 }
 0x18e   :  { %v4233_v14 = vadd.f32 %v1071_v24, %v828_v41  ;;  %v830_v57 = vpop.f32.mrb[58].mxu1  ;;  %v1085_v8 = vpop.f32.mrb[63].mxu0 }
 0x18f   :  { %5450 = vst [vmem:[#allocation32_spill] sm:$0xff] %v4230_v45  ;;  %v4236_v2 = vadd.f32 %v1073_v48, %v830_v57  ;;  %1497 = vadd.xlane.f32.xlu0 %v1496_v0  ;;  %1249 = vadd.xlane.f32.xlu1 %v1248_v63  ;;  %v832_v53 = vpop.f32.mrb[59].mxu1  ;;  %v1500_v32 = vadd.f32 %v1499_v36, %v1361_v62 }
 0x190   :  { %5451 = vst [vmem:[#allocation33_spill] sm:$0xff] %v4233_v14  ;;  %v4240_v5 = vadd.f32 %v1075_v59, %v832_v53  ;;  %v1251_v51 = vsel %vm1138_vm1, %v4233_v14, 0.0  ;;  %v1364_v24 = vmul.f32 %v4233_v14, %v4233_v14  ;;  %v1363_v48 = vmul.f32 %v4230_v45, %v4230_v45 }
 0x191   :  { %5452 = vst [vmem:[#allocation34_spill] sm:$0xff] %v4236_v2  ;;  %v1252_v1 = vadd.f32 %v1251_v51, %v4230_v45 }
 0x192   :  { %5453 = vst [vmem:[#allocation35_spill] sm:$0xff] %v4240_v5  ;;  %v1503_v44 = vsel %vm1138_vm1, %v1364_v24, 0.0  ;;  %v1255_v30 = vsel %vm1138_vm1, %v4240_v5, 0.0  ;;  %v1366_v59 = vmul.f32 %v4240_v5, %v4240_v5 }
 0x193   :  { %1501 = vadd.xlane.f32.xlu1 %v1500_v32  ;;  %1253 = vadd.xlane.f32.xlu0 %v1252_v1  ;;  %v1089_v41 = vpop.f32.mrb[64].mxu0  ;;  %v1504_v53 = vadd.f32 %v1503_v44, %v1363_v48  ;;  %v1256_v62 = vadd.f32 %v1255_v30, %v4236_v2 }
 0x194   :  { %v836_v0 = vpop.f32.mrb[60].mxu1  ;;  %v1091_v63 = vpop.f32.mrb[65].mxu0  ;;  %v1507_v45 = vsel %vm1138_vm1, %v1366_v59, 0.0 }
 0x195   :  { %v4254_v57 = vadd.f32 %v1079_v46, %v836_v0  ;;  %v838_v36 = vpop.f32.mrb[61].mxu1  ;;  %v1093_v51 = vpop.f32.mrb[66].mxu0  ;;  %v1365_v46 = vmul.f32 %v4236_v2, %v4236_v2 }
 0x196   :  { %v4257_v14 = vadd.f32 %v1081_v34, %v838_v36  ;;  %v840_v24 = vpop.f32.mrb[62].mxu1  ;;  %v1095_v40 = vpop.f32.mrb[67].mxu0 }
 0x197   :  { %5454 = vst [vmem:[#allocation36_spill] sm:$0xff] %v4254_v57  ;;  %v4260_v29 = vadd.f32 %v1083_v39, %v840_v24  ;;  %1505 = vadd.xlane.f32.xlu0 %v1504_v53  ;;  %1257 = vadd.xlane.f32.xlu1 %v1256_v62  ;;  %v842_v32 = vpop.f32.mrb[63].mxu1  ;;  %v1508_v44 = vadd.f32 %v1507_v45, %v1365_v46 }
 0x198   :  { %5455 = vst [vmem:[#allocation37_spill] sm:$0xff] %v4257_v14  ;;  %v4264_v1 = vadd.f32 %v1085_v8, %v842_v32  ;;  %v1259_v48 = vsel %vm1138_vm1, %v4257_v14, 0.0  ;;  %v1368_v34 = vmul.f32 %v4257_v14, %v4257_v14  ;;  %v1367_v39 = vmul.f32 %v4254_v57, %v4254_v57 }
 0x199   :  { %5456 = vst [vmem:[#allocation38_spill] sm:$0xff] %v4260_v29  ;;  %v1260_v30 = vadd.f32 %v1259_v48, %v4254_v57 }
 0x19a   :  { %5457 = vst [vmem:[#allocation39_spill] sm:$0xff] %v4264_v1  ;;  %v1511_v59 = vsel %vm1138_vm1, %v1368_v34, 0.0  ;;  %v1263_v0 = vsel %vm1138_vm1, %v4264_v1, 0.0  ;;  %v1370_v8 = vmul.f32 %v4264_v1, %v4264_v1 }
 0x19b   :  { %1509 = vadd.xlane.f32.xlu1 %v1508_v44  ;;  %1261 = vadd.xlane.f32.xlu0 %v1260_v30  ;;  %v1099_v36 = vpop.f32.mrb[68].mxu0  ;;  %v1512_v32 = vadd.f32 %v1511_v59, %v1367_v39  ;;  %v1264_v46 = vadd.f32 %v1263_v0, %v4260_v29 }
 0x19c   :  { %v846_v53 = vpop.f32.mrb[64].mxu1  ;;  %v1101_v62 = vpop.f32.mrb[69].mxu0  ;;  %v1515_v57 = vsel %vm1138_vm1, %v1370_v8, 0.0 }
 0x19d   :  { %v4278_v24 = vadd.f32 %v1089_v41, %v846_v53  ;;  %v848_v45 = vpop.f32.mrb[65].mxu1  ;;  %v1103_v48 = vpop.f32.mrb[70].mxu0  ;;  %v1369_v41 = vmul.f32 %v4260_v29, %v4260_v29 }
 0x19e   :  { %v4281_v14 = vadd.f32 %v1091_v63, %v848_v45  ;;  %v850_v34 = vpop.f32.mrb[66].mxu1  ;;  %v1105_v5 = vpop.f32.mrb[71].mxu0 }
 0x19f   :  { %5458 = vst [vmem:[#allocation40_spill] sm:$0xff] %v4278_v24  ;;  %v4284_v2 = vadd.f32 %v1093_v51, %v850_v34  ;;  %1513 = vadd.xlane.f32.xlu0 %v1512_v32  ;;  %1265 = vadd.xlane.f32.xlu1 %v1264_v46  ;;  %v852_v44 = vpop.f32.mrb[67].mxu1  ;;  %v1516_v59 = vadd.f32 %v1515_v57, %v1369_v41 }
 0x1a0   :  { %5459 = vst [vmem:[#allocation41_spill] sm:$0xff] %v4281_v14  ;;  %v4288_v30 = vadd.f32 %v1095_v40, %v852_v44  ;;  %v1267_v39 = vsel %vm1138_vm1, %v4281_v14, 0.0  ;;  %v1372_v63 = vmul.f32 %v4281_v14, %v4281_v14  ;;  %v1371_v51 = vmul.f32 %v4278_v24, %v4278_v24 }
 0x1a1   :  { %5460 = vst [vmem:[#allocation42_spill] sm:$0xff] %v4284_v2  ;;  %v1268_v0 = vadd.f32 %v1267_v39, %v4278_v24 }
 0x1a2   :  { %5461 = vst [vmem:[#allocation43_spill] sm:$0xff] %v4288_v30  ;;  %v1519_v8 = vsel %vm1138_vm1, %v1372_v63, 0.0  ;;  %v1271_v53 = vsel %vm1138_vm1, %v4288_v30, 0.0  ;;  %v1374_v40 = vmul.f32 %v4288_v30, %v4288_v30 }
 0x1a3   :  { %1517 = vadd.xlane.f32.xlu1 %v1516_v59  ;;  %1269 = vadd.xlane.f32.xlu0 %v1268_v0  ;;  %v1109_v45 = vpop.f32.mrb[72].mxu0  ;;  %v1520_v44 = vadd.f32 %v1519_v8, %v1371_v51  ;;  %v1272_v41 = vadd.f32 %v1271_v53, %v4284_v2 }
 0x1a4   :  { %v856_v32 = vpop.f32.mrb[68].mxu1  ;;  %v1111_v46 = vpop.f32.mrb[73].mxu0  ;;  %v1523_v24 = vsel %vm1138_vm1, %v1374_v40, 0.0 }
 0x1a5   :  { %v4302_v34 = vadd.f32 %v1099_v36, %v856_v32  ;;  %v858_v57 = vpop.f32.mrb[69].mxu1  ;;  %v1113_v39 = vpop.f32.mrb[74].mxu0  ;;  %v1373_v36 = vmul.f32 %v4284_v2, %v4284_v2 }
 0x1a6   :  { %v4305_v14 = vadd.f32 %v1101_v62, %v858_v57  ;;  %v860_v63 = vpop.f32.mrb[70].mxu1  ;;  %v1115_v1 = vpop.f32.mrb[75].mxu0 }
 0x1a7   :  { %5462 = vst [vmem:[#allocation44_spill] sm:$0xff] %v4302_v34  ;;  %v4308_v29 = vadd.f32 %v1103_v48, %v860_v63  ;;  %1521 = vadd.xlane.f32.xlu0 %v1520_v44  ;;  %1273 = vadd.xlane.f32.xlu1 %v1272_v41  ;;  %v862_v59 = vpop.f32.mrb[71].mxu1  ;;  %v1524_v8 = vadd.f32 %v1523_v24, %v1373_v36 }
 0x1a8   :  { %5463 = vst [vmem:[#allocation45_spill] sm:$0xff] %v4305_v14  ;;  %v4312_v0 = vadd.f32 %v1105_v5, %v862_v59  ;;  %v1275_v51 = vsel %vm1138_vm1, %v4305_v14, 0.0  ;;  %v1376_v62 = vmul.f32 %v4305_v14, %v4305_v14  ;;  %v1375_v48 = vmul.f32 %v4302_v34, %v4302_v34 }
 0x1a9   :  { %5464 = vst [vmem:[#allocation46_spill] sm:$0xff] %v4308_v29  ;;  %v1276_v53 = vadd.f32 %v1275_v51, %v4302_v34 }
 0x1aa   :  { %5465 = vst [vmem:[#allocation47_spill] sm:$0xff] %v4312_v0  ;;  %v1527_v40 = vsel %vm1138_vm1, %v1376_v62, 0.0  ;;  %v1279_v32 = vsel %vm1138_vm1, %v4312_v0, 0.0  ;;  %v1378_v5 = vmul.f32 %v4312_v0, %v4312_v0 }
 0x1ab   :  { %1525 = vadd.xlane.f32.xlu1 %v1524_v8  ;;  %1277 = vadd.xlane.f32.xlu0 %v1276_v53  ;;  %v1119_v57 = vpop.f32.mrb[76].mxu0  ;;  %v1528_v59 = vadd.f32 %v1527_v40, %v1375_v48  ;;  %v1280_v36 = vadd.f32 %v1279_v32, %v4308_v29 }
 0x1ac   :  { %v866_v44 = vpop.f32.mrb[72].mxu1  ;;  %v1121_v41 = vpop.f32.mrb[77].mxu0  ;;  %v1531_v34 = vsel %vm1138_vm1, %v1378_v5, 0.0 }
 0x1ad   :  { %v4326_v63 = vadd.f32 %v1109_v45, %v866_v44  ;;  %v868_v24 = vpop.f32.mrb[73].mxu1  ;;  %v1123_v51 = vpop.f32.mrb[78].mxu0  ;;  %v1377_v45 = vmul.f32 %v4308_v29, %v4308_v29 }
 0x1ae   :  { %v4329_v14 = vadd.f32 %v1111_v46, %v868_v24  ;;  %v870_v62 = vpop.f32.mrb[74].mxu1  ;;  %v1125_v30 = vpop.f32.mrb[79].mxu0 }
 0x1af   :  { %5466 = vst [vmem:[#allocation48_spill] sm:$0xff] %v4326_v63  ;;  %v4332_v2 = vadd.f32 %v1113_v39, %v870_v62  ;;  %1529 = vadd.xlane.f32.xlu0 %v1528_v59  ;;  %1281 = vadd.xlane.f32.xlu1 %v1280_v36  ;;  %v872_v8 = vpop.f32.mrb[75].mxu1  ;;  %v1532_v32 = vadd.f32 %v1531_v34, %v1377_v45 }
 0x1b0   :  { %5467 = vst [vmem:[#allocation49_spill] sm:$0xff] %v4329_v14  ;;  %v4336_v53 = vadd.f32 %v1115_v1, %v872_v8  ;;  %v1142_v48 = vpop.xlane.xlu0 %1141  ;;  %v1283_v40 = vsel %vm1138_vm1, %v4329_v14, 0.0  ;;  %v1380_v46 = vmul.f32 %v4329_v14, %v4329_v14  ;;  %v1379_v39 = vmul.f32 %v4326_v63, %v4326_v63 }
 0x1b1   :  { %5468 = vst [vmem:[#allocation50_spill] sm:$0xff] %v4332_v2  ;;  %v1284_v5 = vadd.f32 %v1283_v40, %v4326_v63 }
 0x1b2   :  { %5469 = vst [vmem:[#allocation51_spill] sm:$0xff] %v4336_v53  ;;  %v1535_v44 = vsel %vm1138_vm1, %v1380_v46, 0.0  ;;  %v1287_v24 = vsel %vm1138_vm1, %v4336_v53, 0.0  ;;  %v1382_v1 = vmul.f32 %v4336_v53, %v4336_v53 }
 0x1b3   :  { %1533 = vadd.xlane.f32.xlu1 %v1532_v32  ;;  %1285 = vadd.xlane.f32.xlu0 %v1284_v5  ;;  %v1129_v59 = vpop.f32.mrb[80].mxu0  ;;  %v1536_v34 = vadd.f32 %v1535_v44, %v1379_v39  ;;  %v1288_v45 = vadd.f32 %v1287_v24, %v4332_v2  ;;  %v1381_v32 = vmul.f32 %v4332_v2, %v4332_v2 }
 0x1b4   :  { %v1398_v36 = vpop.xlane.xlu1 %1397  ;;  %v1146_v62 = vpop.xlane.xlu0 %1145  ;;  %v1539_v46 = vsel %vm1138_vm1, %v1382_v1, 0.0 }
 0x1b5   :  { %v876_v8 = vpop.f32.mrb[76].mxu1  ;;  %v1131_v40 = vpop.f32.mrb[81].mxu0 }
 0x1b6   :  { %v4351_v14 = vadd.f32 %v1119_v57, %v876_v8  ;;  %v878_v63 = vpop.f32.mrb[77].mxu1  ;;  %v1133_v0 = vpop.f32.mrb[82].mxu0  ;;  %v1540_v8 = vadd.f32 %v1539_v46, %v1381_v32 }
 0x1b7   :  { %v4354_v29 = vadd.f32 %v1121_v41, %v878_v63  ;;  %v880_v54 = vpop.f32.mrb[78].mxu1  ;;  %1537 = vadd.xlane.f32.xlu0 %v1536_v34  ;;  %1289 = vadd.xlane.f32.xlu1 %v1288_v45  ;;  %v1135_v5 = vpop.f32.mrb[83].mxu0  ;;  %v4364_v41 = vmul.f32 0.0051020407, %v1142_v48 }
 0x1b8   :  { %5470 = vst [vmem:[#allocation52_spill] sm:$0xff] %v4351_v14  ;;  %v4358_v53 = vadd.f32 %v1123_v51, %v880_v54  ;;  %v882_v39 = vpop.f32.mrb[79].mxu1  ;;  %v1394_v44 = vpop.xlane.xlu0 %1393  ;;  %v1383_v34 = vmul.f32 %v4351_v14, %v4351_v14  ;;  %v4371_v51 = vmul.f32 0.0051020407, %v1146_v62 }
 0x1b9   :  { %5471 = vst [vmem:[#allocation53_spill] sm:$0xff] %v4354_v29  ;;  %v4360_v24 = vadd.f32 %v1125_v30, %v882_v39  ;;  %v1150_v57 = vpop.xlane.xlu1 %1149  ;;  %v1291_v1 = vsel %vm1138_vm1, %v4354_v29, 0.0  ;;  %v1384_v54 = vmul.f32 %v4354_v29, %v4354_v29  ;;  %v1602_v46 = vmul.f32 0.0051020407, %v1394_v44 }
 0x1ba   :  { %5472 = vst [vmem:[#allocation54_spill] sm:$0xff] %v4358_v53  ;;  %v1292_v63 = vadd.f32 %v1291_v1, %v4351_v14 }
 0x1bb   :  { %5473 = vst [vmem:[#allocation55_spill] sm:$0xff] %v4360_v24  ;;  %1541 = vadd.xlane.f32.xlu1 %v1540_v8  ;;  %v1295_v30 = vsel %vm1138_vm1, %v4360_v24, 0.0  ;;  %v1386_v45 = vmul.f32 %v4360_v24, %v4360_v24  ;;  %v1543_v39 = vsel %vm1138_vm1, %v1384_v54, 0.0  ;;  %v1644_v8 = vmul.f32 %v4364_v41, %v4364_v41 }
 0x1bc   :  { %1293 = vadd.xlane.f32.xlu0 %v1292_v63  ;;  %v1402_v48 = vpop.xlane.xlu0 %1401  ;;  %v886_v32 = vpop.f32.mrb[80].mxu1  ;;  %v1296_v62 = vadd.f32 %v1295_v30, %v4358_v53  ;;  %v1544_v17 = vadd.f32 %v1543_v39, %v1383_v34  ;;  %v1645_v63 = vmul.f32 %v4371_v51, %v4371_v51  ;;  %v1385_v54 = vmul.f32 %v4358_v53, %v4358_v53 }
 0x1bd   :  { %v1154_v1 = vpop.xlane.xlu1 %1153  ;;  %v4378_v14 = vadd.f32 %v1129_v59, %v886_v32  ;;  %v888_v2 = vpop.f32.mrb[81].mxu1  ;;  %v1547_v44 = vsel %vm1138_vm1, %v1386_v45, 0.0  ;;  %v1603_v30 = vmul.f32 0.0051020407, %v1398_v36  ;;  %v1686_v32 = vsub.f32 %v1602_v46, %v1644_v8 }
 0x1be   :  { %v4383_v29 = vadd.f32 %v1131_v40, %v888_v2  ;;  %v890_v28 = vpop.f32.mrb[82].mxu1  ;;  %v4396_v34 = vmul.f32 0.0051020407, %v1154_v1  ;;  %v1548_v39 = vadd.f32 %v1547_v44, %v1385_v54 }
 0x1bf   :  { %5474 = vst [vmem:[#allocation56_spill] sm:$0xff] %v4378_v14  ;;  %v4388_v24 = vadd.f32 %v1133_v0, %v890_v28  ;;  %1297 = vadd.xlane.f32.xlu1 %v1296_v62  ;;  %v892_v59 = vpop.f32.mrb[83].mxu1  ;;  %v1387_v36 = vmul.f32 %v4378_v14, %v4378_v14  ;;  %v1687_v46 = vsub.f32 %v1603_v30, %v1645_v63  ;;  %v1728_v44 = vadd.f32 1e-05, %v1686_v32 }
 0x1c0   :  { %5475 = vst [vmem:[#allocation57_spill] sm:$0xff] %v4383_v29  ;;  %1545 = vadd.xlane.f32.xlu0 %v1544_v17  ;;  %v4392_v22 = vadd.f32 %v1135_v5, %v892_v59  ;;  %v1158_v2 = vpop.xlane.xlu0 %1157  ;;  %v1299_v40 = vsel %vm1138_vm1, %v4383_v29, 0.0  ;;  %v1388_v0 = vmul.f32 %v4383_v29, %v4383_v29  ;;  %v1647_v59 = vmul.f32 %v4396_v34, %v4396_v34 }
 0x1c1   :  { %5476 = vst [vmem:[#allocation58_spill] sm:$0xff] %v4388_v24  ;;  %v1406_v45 = vpop.xlane.xlu1 %1405  ;;  %v1300_v28 = vadd.f32 %v1299_v40, %v4378_v14  ;;  %v4414_v63 = vmul.f32 0.0051020407, %v1150_v57  ;;  %2806 = vrsqrt.f32 %v1728_v44 }
 0x1c2   :  { %5477 = vst [vmem:[#allocation59_spill] sm:$0xff] %v4392_v22  ;;  %v1303_v17 = vsel %vm1138_vm1, %v4392_v22, 0.0  ;;  %v1390_v5 = vmul.f32 %v4392_v22, %v4392_v22  ;;  %v1605_v62 = vmul.f32 0.0051020407, %v1406_v45  ;;  %v1551_v1 = vsel %vm1138_vm1, %v1388_v0, 0.0 }
 0x1c3   :  { %1549 = vadd.xlane.f32.xlu1 %v1548_v39  ;;  %v1304_v40 = vadd.f32 %v1303_v17, %v4388_v24  ;;  %v1552_v14 = vadd.f32 %v1551_v1, %v1387_v36  ;;  %v1729_v22 = vadd.f32 1e-05, %v1687_v46  ;;  %v1389_v45 = vmul.f32 %v4388_v24, %v4388_v24 }
 0x1c4   :  { %1301 = vadd.xlane.f32.xlu0 %v1300_v28  ;;  %v1410_v8 = vpop.xlane.xlu0 %1409  ;;  %v1555_v53 = vsel %vm1138_vm1, %v1390_v5, 0.0  ;;  %v1689_v30 = vsub.f32 %v1605_v62, %v1647_v59  ;;  %v1604_v39 = vmul.f32 0.0051020407, %v1402_v48  ;;  %v1646_v57 = vmul.f32 %v4414_v63, %v4414_v63 }
 0x1c5   :  { %v1162_v54 = vpop.xlane.xlu1 %1161  ;;  %v1556_v0 = vadd.f32 %v1555_v53, %v1389_v45  ;;  %2808 = vrsqrt.f32 %v1729_v22 }
 0x1c6   :  { %v4411_v29 = vmul.f32 0.0051020407, %v1162_v54  ;;  %v1731_v5 = vadd.f32 1e-05, %v1689_v30  ;;  %v1688_v1 = vsub.f32 %v1604_v39, %v1646_v57  ;;  %v1812_v30 = vld [vmem:[%s5359_s3] sm:$0xff] }
 0x1c7   :  { %1305 = vadd.xlane.f32.xlu1 %v1304_v40  ;;  %v1606_v57 = vmul.f32 0.0051020407, %v1410_v8 }
 0x1c8   :  { %1553 = vadd.xlane.f32.xlu0 %v1552_v14  ;;  %v4418_v32 = vpop.xlane.xlu0 %1165  ;;  %v1649_v36 = vmul.f32 %v4411_v29, %v4411_v29  ;;  %2810 = vrsqrt.f32 %v1731_v5  ;;  %v1730_v53 = vadd.f32 1e-05, %v1688_v1 }
 0x1c9   :  { %v1414_v28 = vpop.xlane.xlu1 %1413 }
 0x1ca   :  { %v1607_v17 = vmul.f32 0.0051020407, %v1414_v28  ;;  %v4430_v28 = vmul.f32 0.0051020407, %v1158_v2 }
 0x1cb   :  { %1557 = vadd.xlane.f32.xlu1 %v1556_v0  ;;  %v2807_v45 = vpop.eup %2806 }
 0x1cc   :  { %v1691_v46 = vsub.f32 %v1607_v17, %v1649_v36  ;;  %v1418_v62 = vpop.xlane.xlu0 %1417  ;;  %v1813_v17 = vld [vmem:[%s5359_s3 + $0x8] sm:$0xff]  ;;  %v1854_v2 = vmul.f32 %v2807_v45, %v1812_v30  ;;  %v1896_v30 = vld [vmem:[%s5360_s4] sm:$0xff] }
 0x1cd   :  { %v1170_v14 = vpop.xlane.xlu1 %1169 }
 0x1ce   :  { %v4424_v59 = vmul.f32 0.0051020407, %v1170_v14  ;;  %v1733_v48 = vadd.f32 1e-05, %v1691_v46  ;;  %v1648_v14 = vmul.f32 %v4430_v28, %v4430_v28  ;;  %v1938_v45 = vmul.f32 %v1854_v2, %v4364_v41  ;;  %v1817_v41 = vld [vmem:[%s5359_s3 + $0x28] sm:$0xff] }
 0x1cf   :  { %v2809_v36 = vpop.eup %2808 }
 0x1d0   :  { %v4426_v44 = vpop.xlane.xlu0 %1173  ;;  %v1651_v22 = vmul.f32 %v4424_v59, %v4424_v59  ;;  %2812 = vrsqrt.f32 %v1733_v48  ;;  %v1855_v48 = vmul.f32 %v2809_v36, %v1813_v17 }
 0x1d1   :  { %v1422_v54 = vpop.xlane.xlu1 %1421  ;;  %2814 = vrsqrt.f32 %v1730_v53  ;;  %v1815_v53 = vld [vmem:[%s5359_s3 + $0x18] sm:$0xff] }
 0x1d2   :  { %v1609_v40 = vmul.f32 0.0051020407, %v1422_v54  ;;  %v1939_v36 = vmul.f32 %v1855_v48, %v4371_v51  ;;  %v1980_v51 = vsub.f32 %v1896_v30, %v1938_v45  ;;  %v1819_v45 = vld [vmem:[%s5359_s3 + $0x38] sm:$0xff] }
 0x1d4   :  { %v1693_v39 = vsub.f32 %v1609_v40, %v1651_v22  ;;  %v4435_v0 = vpop.xlane.xlu0 %1425  ;;  %v2811_v22 = vpop.eup %2810  ;;  %v1690_v40 = vsub.f32 %v1606_v57, %v1648_v14 }
 0x1d5   :  { %v1178_v5 = vpop.xlane.xlu1 %1177  ;;  %v1857_v57 = vmul.f32 %v2811_v22, %v1815_v53  ;;  %v1814_v22 = vld [vmem:[%s5359_s3 + $0x10] sm:$0xff] }
 0x1d6   :  { %v1735_v46 = vadd.f32 1e-05, %v1693_v39  ;;  %v4440_v1 = vmul.f32 0.0051020407, %v1178_v5  ;;  %v1732_v14 = vadd.f32 1e-05, %v1690_v40 }
 0x1d8   :  { %2816 = vrsqrt.f32 %v1735_v46  ;;  %v4444_v54 = vpop.xlane.xlu0 %1181  ;;  %v1653_v8 = vmul.f32 %v4440_v1, %v4440_v1 }
 0x1d9   :  { %v1430_v24 = vpop.xlane.xlu1 %1429 }
 0x1da   :  { %v1611_v39 = vmul.f32 0.0051020407, %v1430_v24  ;;  %v2813_v46 = vpop.eup %2812  ;;  %v1897_v24 = vld [vmem:[%s5360_s4 + $0x8] sm:$0xff] }
 0x1db   :  { %v1981_v53 = vsub.f32 %v1897_v24, %v1939_v36 }
 0x1dc   :  { %v1695_v17 = vsub.f32 %v1611_v39, %v1653_v8  ;;  %v4456_v5 = vpop.xlane.xlu0 %1433  ;;  %2029 = vperm.xlu1 %2805, %v1855_v48   ;;  %v2815_v8 = vpop.eup %2814  ;;  %v4467_v48 = vmul.f32 0.0051020407, %v4418_v32  ;;  %v1941_v39 = vmul.f32 %v1857_v57, %v4396_v34  ;;  %v1899_v32 = vld [vmem:[%s5360_s4 + $0x18] sm:$0xff] }
 0x1dd   :  { %v1186_v9 = vpop.xlane.xlu1 %1185  ;;  %v1856_v34 = vmul.f32 %v2815_v8, %v1814_v22  ;;  %v4497_v8 = vmul.f32 0.0051020407, %v4426_v44 }
 0x1de   :  { %v1737_v49 = vadd.f32 1e-05, %v1695_v17  ;;  %v4464_v43 = vmul.f32 0.0051020407, %v1186_v9  ;;  %2024 = vperm.xlu0 %2804, %v1854_v2   ;;  %v4475_v17 = vmul.f32 %v2813_v46, %v1817_v41  ;;  %v1608_v9 = vmul.f32 0.0051020407, %v1418_v62 }
 0x1df   :  { %v1650_v46 = vmul.f32 %v4467_v48, %v4467_v48  ;;  %v1983_v24 = vsub.f32 %v1899_v32, %v1941_v39  ;;  %v1940_v39 = vmul.f32 %v1856_v34, %v4414_v63  ;;  %v1903_v63 = vld [vmem:[%s5360_s4 + $0x38] sm:$0xff] }
 0x1e0   :  { %2818 = vrsqrt.f32 %v1737_v49  ;;  %v4472_v40 = vpop.xlane.xlu0 %1189  ;;  %2318 = vperm.xlu1 %2805, %v1980_v51   ;;  %v1655_v30 = vmul.f32 %v4464_v43, %v4464_v43  ;;  %v1943_v41 = vmul.f32 %v4475_v17, %v4411_v29  ;;  %v1898_v29 = vld [vmem:[%s5360_s4 + $0x10] sm:$0xff] }
 0x1e1   :  { %2820 = vrsqrt.f32 %v1732_v14  ;;  %v1438_v2 = vpop.xlane.xlu1 %1437  ;;  %v1692_v18 = vsub.f32 %v1608_v9, %v1650_v46  ;;  %v1610_v9 = vmul.f32 0.0051020407, %v4435_v0  ;;  %v1652_v0 = vmul.f32 %v4497_v8, %v4497_v8  ;;  %v1816_v46 = vld [vmem:[%s5359_s3 + $0x20] sm:$0xff] }
 0x1e2   :  { %v2817_v49 = vpop.eup %2816  ;;  %v1613_v36 = vmul.f32 0.0051020407, %v1438_v2  ;;  %2323 = vperm.xlu0 %2804, %v1981_v53   ;;  %v1901_v53 = vld [vmem:[%s5360_s4 + $0x28] sm:$0xff] }
 0x1e3   :  { %v4491_v51 = vmul.f32 %v2817_v49, %v1819_v45  ;;  %v1985_v45 = vsub.f32 %v1901_v53, %v1943_v41  ;;  %v1734_v49 = vadd.f32 1e-05, %v1692_v18 }
 0x1e4   :  { %v1697_v62 = vsub.f32 %v1613_v36, %v1655_v30  ;;  %v4487_v14 = vpop.xlane.xlu0 %1441  ;;  %2034 = vperm.xlu1 %2805, %v1856_v34   ;;  %v1821_v30 = vld [vmem:[%s5359_s3 + $0x48] sm:$0xff] }
 0x1e5   :  { %v1194_v4 = vpop.xlane.xlu1 %1193  ;;  %v1945_v44 = vmul.f32 %v4491_v51, %v4424_v59  ;;  %v1982_v59 = vsub.f32 %v1898_v29, %v1940_v39  ;;  %v4528_v39 = vmul.f32 0.0051020407, %v4444_v54 }
 0x1e6   :  { %v1739_v22 = vadd.f32 1e-05, %v1697_v62  ;;  %v4499_v2 = vmul.f32 0.0051020407, %v1194_v4  ;;  %2333 = vperm.xlu0 %2804, %v1983_v24   ;;  %v1694_v62 = vsub.f32 %v1610_v9, %v1652_v0 }
 0x1e7   :  { %v1987_v53 = vsub.f32 %v1903_v63, %v1945_v44  ;;  %v1612_v44 = vmul.f32 0.0051020407, %v4456_v5  ;;  %v1900_v5 = vld [vmem:[%s5360_s4 + $0x20] sm:$0xff] }
 0x1e8   :  { %2822 = vrsqrt.f32 %v1739_v22  ;;  %v4506_v32 = vpop.xlane.xlu0 %1197  ;;  %2039 = vperm.xlu1 %2805, %v1857_v57   ;;  %v1657_v57 = vmul.f32 %v4499_v2, %v4499_v2  ;;  %v1736_v29 = vadd.f32 1e-05, %v1694_v62 }
 0x1e9   :  { %v1446_v4 = vpop.xlane.xlu1 %1445  ;;  %2824 = vrsqrt.f32 %v1734_v49  ;;  %v1823_v49 = vld [vmem:[%s5359_s3 + $0x58] sm:$0xff] }
 0x1ea   :  { %v2819_v36 = vpop.eup %2818  ;;  %v1615_v34 = vmul.f32 0.0051020407, %v1446_v4  ;;  %2343 = vperm.xlu0 %2804, %v1985_v45  }
 0x1eb   :  { %v2821_v18 = vpop.eup %2820  ;;  %v1863_v22 = vmul.f32 %v2819_v36, %v1821_v30 }
 0x1ec   :  { %v1699_v24 = vsub.f32 %v1615_v34, %v1657_v57  ;;  %v4523_v41 = vpop.xlane.xlu0 %1449  ;;  %2328 = vperm.xlu1 %2805, %v1982_v59   ;;  %v1858_v45 = vmul.f32 %v2821_v18, %v1816_v46 }
 0x1ed   :  { %v1202_v16 = vpop.xlane.xlu1 %1201  ;;  %v1947_v9 = vmul.f32 %v1863_v22, %v4440_v1  ;;  %v1654_v1 = vmul.f32 %v4528_v39, %v4528_v39 }
 0x1ee   :  { %v1741_v6 = vadd.f32 1e-05, %v1699_v24  ;;  %v4525_v20 = vmul.f32 0.0051020407, %v1202_v16  ;;  %2353 = vperm.xlu0 %2804, %v1987_v53   ;;  %v1905_v16 = vld [vmem:[%s5360_s4 + $0x48] sm:$0xff]  ;;  %v1942_v36 = vmul.f32 %v1858_v45, %v4430_v28 }
 0x1ef   :  { %v1989_v34 = vsub.f32 %v1905_v16, %v1947_v9  ;;  %v1696_v18 = vsub.f32 %v1612_v44, %v1654_v1  ;;  %v1614_v44 = vmul.f32 0.0051020407, %v4487_v14  ;;  %v1907_v16 = vld [vmem:[%s5360_s4 + $0x58] sm:$0xff] }
 0x1f0   :  { %2826 = vrsqrt.f32 %v1741_v6  ;;  %v4530_v4 = vpop.xlane.xlu0 %1205  ;;  %2044 = vperm.xlu1 %2805, %v1858_v45   ;;  %v1659_v6 = vmul.f32 %v4525_v20, %v4525_v20  ;;  %v1984_v24 = vsub.f32 %v1900_v5, %v1942_v36  ;;  %v1818_v45 = vld [vmem:[%s5359_s3 + $0x30] sm:$0xff] }
 0x1f1   :  { %v1454_v63 = vpop.xlane.xlu1 %1453  ;;  %2828 = vrsqrt.f32 %v1736_v29  ;;  %v1738_v9 = vadd.f32 1e-05, %v1696_v18 }
 0x1f2   :  { %v2823_v54 = vpop.eup %2822  ;;  %v1617_v30 = vmul.f32 0.0051020407, %v1454_v63  ;;  %2069 = vperm.xlu0 %2804, %v1863_v22   ;;  %v4554_v22 = vmul.f32 0.0051020407, %v4472_v40  ;;  %v1825_v40 = vld [vmem:[%s5359_s3 + $0x68] sm:$0xff] }
 0x1f3   :  { %v1865_v59 = vmul.f32 %v2823_v54, %v1823_v49  ;;  %v2825_v53 = vpop.eup %2824 }
 0x1f4   :  { %v1701_v0 = vsub.f32 %v1617_v30, %v1659_v6  ;;  %v4548_v57 = vpop.xlane.xlu0 %1457  ;;  %2049 = vperm.xlu1 %2805, %v4475_v17   ;;  %v1860_v30 = vmul.f32 %v2825_v53, %v1818_v45  ;;  %v4582_v53 = vmul.f32 0.0051020407, %v4506_v32  ;;  %v1902_v45 = vld [vmem:[%s5360_s4 + $0x30] sm:$0xff]  ;;  %v1909_v32 = vld [vmem:[%s5360_s4 + $0x68] sm:$0xff] }
 0x1f5   :  { %v1210_v46 = vpop.xlane.xlu1 %1209  ;;  %v1949_v17 = vmul.f32 %v1865_v59, %v4464_v43  ;;  %v1656_v43 = vmul.f32 %v4554_v22, %v4554_v22 }
 0x1f6   :  { %v1743_v62 = vadd.f32 1e-05, %v1701_v0  ;;  %v4551_v28 = vmul.f32 0.0051020407, %v1210_v46  ;;  %2363 = vperm.xlu0 %2804, %v1989_v34  }
 0x1f7   :  { %v1991_v1 = vsub.f32 %v1907_v16, %v1949_v17  ;;  %v1698_v0 = vsub.f32 %v1614_v44, %v1656_v43 }
 0x1f8   :  { %2830 = vrsqrt.f32 %v1743_v62  ;;  %v4559_v29 = vpop.xlane.xlu0 %1213  ;;  %2338 = vperm.xlu1 %2805, %v1984_v24   ;;  %v1661_v54 = vmul.f32 %v4551_v28, %v4551_v28  ;;  %v1820_v24 = vld [vmem:[%s5359_s3 + $0x40] sm:$0xff] }
 0x1f9   :  { %v1462_v63 = vpop.xlane.xlu1 %1461  ;;  %2832 = vrsqrt.f32 %v1738_v9  ;;  %v1740_v44 = vadd.f32 1e-05, %v1698_v0 }
 0x1fa   :  { %v2827_v49 = vpop.eup %2826  ;;  %v1619_v6 = vmul.f32 0.0051020407, %v1462_v63  ;;  %2079 = vperm.xlu0 %2804, %v1865_v59   ;;  %v1944_v59 = vmul.f32 %v1860_v30, %v4467_v48  ;;  %v1616_v48 = vmul.f32 0.0051020407, %v4523_v41  ;;  %v1658_v41 = vmul.f32 %v4582_v53, %v4582_v53 }
 0x1fb   :  { %v1867_v5 = vmul.f32 %v2827_v49, %v1825_v40  ;;  %v2829_v18 = vpop.eup %2828  ;;  %v1827_v40 = vld [vmem:[%s5359_s3 + $0x78] sm:$0xff] }
 0x1fc   :  { %v1703_v14 = vsub.f32 %v1619_v6, %v1661_v54  ;;  %v4573_v36 = vpop.xlane.xlu0 %1465  ;;  %2054 = vperm.xlu1 %2805, %v1860_v30   ;;  %v1862_v16 = vmul.f32 %v2829_v18, %v1820_v24 }
 0x1fd   :  { %v1218_v34 = vpop.xlane.xlu1 %1217  ;;  %v1951_v9 = vmul.f32 %v1867_v5, %v4499_v2  ;;  %v1986_v2 = vsub.f32 %v1902_v45, %v1944_v59  ;;  %v1822_v45 = vld [vmem:[%s5359_s3 + $0x50] sm:$0xff] }
 0x1fe   :  { %v1745_v46 = vadd.f32 1e-05, %v1703_v14  ;;  %v4575_v62 = vmul.f32 0.0051020407, %v1218_v34  ;;  %2373 = vperm.xlu0 %2804, %v1991_v1   ;;  %v1700_v1 = vsub.f32 %v1616_v48, %v1658_v41  ;;  %v1904_v34 = vld [vmem:[%s5360_s4 + $0x40] sm:$0xff]  ;;  %v1946_v18 = vmul.f32 %v1862_v16, %v4497_v8 }
 0x1ff   :  { %v1993_v43 = vsub.f32 %v1909_v32, %v1951_v9  ;;  %v1618_v9 = vmul.f32 0.0051020407, %v4548_v57  ;;  %v1911_v32 = vld [vmem:[%s5360_s4 + $0x78] sm:$0xff] }
 0x200   :  { %2834 = vrsqrt.f32 %v1745_v46  ;;  %v4587_v17 = vpop.xlane.xlu0 %1221  ;;  %2059 = vperm.xlu1 %2805, %v4491_v51   ;;  %v1663_v54 = vmul.f32 %v4575_v62, %v4575_v62  ;;  %v1742_v48 = vadd.f32 1e-05, %v1700_v1 }
 0x201   :  { %v1470_v63 = vpop.xlane.xlu1 %1469  ;;  %2836 = vrsqrt.f32 %v1740_v44 }
 0x202   :  { %v2831_v49 = vpop.eup %2830  ;;  %v1621_v51 = vmul.f32 0.0051020407, %v1470_v63  ;;  %2089 = vperm.xlu0 %2804, %v1867_v5   ;;  %v4609_v5 = vmul.f32 0.0051020407, %v4530_v4  ;;  %v1988_v63 = vsub.f32 %v1904_v34, %v1946_v18 }
 0x203   :  { %v1869_v14 = vmul.f32 %v2831_v49, %v1827_v40  ;;  %v2833_v24 = vpop.eup %2832  ;;  %v1829_v40 = vld [vmem:[%s5359_s3 + $0x88] sm:$0xff] }
 0x204   :  { %v1705_v6 = vsub.f32 %v1621_v51, %v1663_v54  ;;  %v4602_v30 = vpop.xlane.xlu0 %1473  ;;  %2348 = vperm.xlu1 %2805, %v1986_v2   ;;  %v1660_v57 = vmul.f32 %v4609_v5, %v4609_v5 }
 0x205   :  { %v1226_v0 = vpop.xlane.xlu1 %1225  ;;  %v1953_v8 = vmul.f32 %v1869_v14, %v4525_v20  ;;  %v1864_v20 = vmul.f32 %v2833_v24, %v1822_v45  ;;  %v1824_v24 = vld [vmem:[%s5359_s3 + $0x60] sm:$0xff] }
 0x206   :  { %v1747_v46 = vadd.f32 1e-05, %v1705_v6  ;;  %v4611_v59 = vmul.f32 0.0051020407, %v1226_v0  ;;  %2383 = vperm.xlu0 %2804, %v1993_v43   ;;  %v1702_v51 = vsub.f32 %v1618_v9, %v1660_v57 }
 0x207   :  { %v1995_v6 = vsub.f32 %v1911_v32, %v1953_v8  ;;  %v1948_v18 = vmul.f32 %v1864_v20, %v4528_v39  ;;  %v1620_v39 = vmul.f32 0.0051020407, %v4573_v36 }
 0x208   :  { %2838 = vrsqrt.f32 %v1747_v46  ;;  %v4617_v44 = vpop.xlane.xlu0 %1229  ;;  %2064 = vperm.xlu1 %2805, %v1862_v16   ;;  %v1665_v16 = vmul.f32 %v4611_v59, %v4611_v59  ;;  %v1744_v45 = vadd.f32 1e-05, %v1702_v51 }
 0x209   :  { %v1478_v4 = vpop.xlane.xlu1 %1477  ;;  %2840 = vrsqrt.f32 %v1742_v48 }
 0x20a   :  { %v2835_v49 = vpop.eup %2834  ;;  %v1623_v54 = vmul.f32 0.0051020407, %v1478_v4  ;;  %2099 = vperm.xlu0 %2804, %v1869_v14   ;;  %v4636_v4 = vmul.f32 0.0051020407, %v4559_v29  ;;  %v1906_v14 = vld [vmem:[%s5360_s4 + $0x50] sm:$0xff]  ;;  %v1913_v29 = vld [vmem:[%s5360_s4 + $0x88] sm:$0xff] }
 0x20b   :  { %v1871_v43 = vmul.f32 %v2835_v49, %v1829_v40  ;;  %v2837_v46 = vpop.eup %2836  ;;  %v1990_v57 = vsub.f32 %v1906_v14, %v1948_v18  ;;  %v1908_v14 = vld [vmem:[%s5360_s4 + $0x60] sm:$0xff] }
 0x20c   :  { %v1707_v2 = vsub.f32 %v1623_v54, %v1665_v16  ;;  %v4630_v41 = vpop.xlane.xlu0 %1481  ;;  %2358 = vperm.xlu1 %2805, %v1988_v63   ;;  %v1831_v63 = vld [vmem:[%s5359_s3 + $0x98] sm:$0xff]  ;;  %v1866_v16 = vmul.f32 %v2837_v46, %v1824_v24  ;;  %v4664_v46 = vmul.f32 0.0051020407, %v4587_v17  ;;  %v1826_v24 = vld [vmem:[%s5359_s3 + $0x70] sm:$0xff] }
 0x20d   :  { %v1234_v1 = vpop.xlane.xlu1 %1233  ;;  %v1955_v8 = vmul.f32 %v1871_v43, %v4551_v28  ;;  %v1662_v28 = vmul.f32 %v4636_v4, %v4636_v4  ;;  %v1915_v17 = vld [vmem:[%s5360_s4 + $0x98] sm:$0xff] }
 0x20e   :  { %v1749_v0 = vadd.f32 1e-05, %v1707_v2  ;;  %v4632_v34 = vmul.f32 0.0051020407, %v1234_v1  ;;  %2393 = vperm.xlu0 %2804, %v1995_v6  }
 0x20f   :  { %v1704_v2 = vsub.f32 %v1620_v39, %v1662_v28 }
 0x210   :  { %2842 = vrsqrt.f32 %v1749_v0  ;;  %v4644_v9 = vpop.xlane.xlu0 %1237  ;;  %2074 = vperm.xlu1 %2805, %v1864_v20   ;;  %v1667_v40 = vmul.f32 %v4632_v34, %v4632_v34  ;;  %v1997_v20 = vsub.f32 %v1913_v29, %v1955_v8  ;;  %v1833_v29 = vld [vmem:[%s5359_s3 + $0xa8] sm:$0xff] }
 0x211   :  { %v1486_v48 = vpop.xlane.xlu1 %1485  ;;  %2844 = vrsqrt.f32 %v1744_v45  ;;  %v1746_v39 = vadd.f32 1e-05, %v1704_v2 }
 0x212   :  { %v2839_v32 = vpop.eup %2838  ;;  %v1625_v49 = vmul.f32 0.0051020407, %v1486_v48  ;;  %2109 = vperm.xlu0 %2804, %v1871_v43   ;;  %v1950_v43 = vmul.f32 %v1866_v16, %v4554_v22  ;;  %v1622_v22 = vmul.f32 0.0051020407, %v4602_v30  ;;  %v1664_v30 = vmul.f32 %v4664_v46, %v4664_v46 }
 0x213   :  { %v1873_v51 = vmul.f32 %v2839_v32, %v1831_v63  ;;  %v2841_v18 = vpop.eup %2840 }
 0x214   :  { %v1709_v36 = vsub.f32 %v1625_v49, %v1667_v40  ;;  %v4658_v54 = vpop.xlane.xlu0 %1489  ;;  %2368 = vperm.xlu1 %2805, %v1990_v57   ;;  %v1992_v49 = vsub.f32 %v1908_v14, %v1950_v43  ;;  %v1828_v43 = vld [vmem:[%s5359_s3 + $0x80] sm:$0xff]  ;;  %v1910_v14 = vld [vmem:[%s5360_s4 + $0x70] sm:$0xff] }
 0x215   :  { %v1242_v6 = vpop.xlane.xlu1 %1241  ;;  %v1957_v8 = vmul.f32 %v1873_v51, %v4575_v62  ;;  %v1868_v62 = vmul.f32 %v2841_v18, %v1826_v24  ;;  %v4695_v18 = vmul.f32 0.0051020407, %v4617_v44 }
 0x216   :  { %v1751_v1 = vadd.f32 1e-05, %v1709_v36  ;;  %v4660_v0 = vmul.f32 0.0051020407, %v1242_v6  ;;  %2403 = vperm.xlu0 %2804, %v1997_v20   ;;  %v1706_v20 = vsub.f32 %v1622_v22, %v1664_v30 }
 0x217   :  { %v1999_v28 = vsub.f32 %v1915_v17, %v1957_v8  ;;  %v1835_v17 = vld [vmem:[%s5359_s3 + $0xb8] sm:$0xff] }
 0x218   :  { %2846 = vrsqrt.f32 %v1751_v1  ;;  %v4672_v45 = vpop.xlane.xlu0 %1245  ;;  %2084 = vperm.xlu1 %2805, %v1866_v16   ;;  %v1669_v32 = vmul.f32 %v4660_v0, %v4660_v0 }
 0x219   :  { %v1494_v48 = vpop.xlane.xlu1 %1493  ;;  %2848 = vrsqrt.f32 %v1746_v39  ;;  %v1748_v39 = vadd.f32 1e-05, %v1706_v20  ;;  %v1912_v20 = vld [vmem:[%s5360_s4 + $0x80] sm:$0xff] }
 0x21a   :  { %v2843_v63 = vpop.eup %2842  ;;  %v1627_v40 = vmul.f32 0.0051020407, %v1494_v48  ;;  %2119 = vperm.xlu0 %2804, %v1873_v51   ;;  %v1952_v51 = vmul.f32 %v1868_v62, %v4582_v53  ;;  %v1624_v53 = vmul.f32 0.0051020407, %v4630_v41  ;;  %v1917_v48 = vld [vmem:[%s5360_s4 + $0xa8] sm:$0xff]  ;;  %v1666_v41 = vmul.f32 %v4695_v18, %v4695_v18 }
 0x21b   :  { %v1875_v36 = vmul.f32 %v2843_v63, %v1833_v29  ;;  %v2845_v6 = vpop.eup %2844 }
 0x21c   :  { %v1711_v57 = vsub.f32 %v1627_v40, %v1669_v32  ;;  %v4686_v16 = vpop.xlane.xlu0 %1497  ;;  %2378 = vperm.xlu1 %2805, %v1992_v49   ;;  %v1870_v44 = vmul.f32 %v2845_v6, %v1828_v43  ;;  %v1830_v43 = vld [vmem:[%s5359_s3 + $0x90] sm:$0xff] }
 0x21d   :  { %v1250_v2 = vpop.xlane.xlu1 %1249  ;;  %v1959_v8 = vmul.f32 %v1875_v36, %v4611_v59  ;;  %v1994_v59 = vsub.f32 %v1910_v14, %v1952_v51  ;;  %v1626_v14 = vmul.f32 0.0051020407, %v4658_v54 }
 0x21e   :  { %v1753_v1 = vadd.f32 1e-05, %v1711_v57  ;;  %v4688_v11 = vmul.f32 0.0051020407, %v1250_v2  ;;  %2413 = vperm.xlu0 %2804, %v1999_v28   ;;  %v1708_v57 = vsub.f32 %v1624_v53, %v1666_v41  ;;  %v1954_v2 = vmul.f32 %v1870_v44, %v4609_v5 }
 0x220   :  { %2850 = vrsqrt.f32 %v1753_v1  ;;  %v4700_v24 = vpop.xlane.xlu0 %1253  ;;  %2094 = vperm.xlu1 %2805, %v1868_v62   ;;  %v1671_v63 = vmul.f32 %v4688_v11, %v4688_v11  ;;  %v2001_v62 = vsub.f32 %v1917_v48, %v1959_v8  ;;  %v1996_v53 = vsub.f32 %v1912_v20, %v1954_v2  ;;  %v1837_v48 = vld [vmem:[%s5359_s3 + $0xc8] sm:$0xff] }
 0x221   :  { %v1502_v22 = vpop.xlane.xlu1 %1501  ;;  %2852 = vrsqrt.f32 %v1748_v39  ;;  %v1750_v39 = vadd.f32 1e-05, %v1708_v57 }
 0x222   :  { %v2847_v29 = vpop.eup %2846  ;;  %v1629_v32 = vmul.f32 0.0051020407, %v1502_v22  ;;  %2129 = vperm.xlu0 %2804, %v1875_v36   ;;  %v4721_v36 = vmul.f32 0.0051020407, %v4644_v9  ;;  %v1919_v22 = vld [vmem:[%s5360_s4 + $0xb8] sm:$0xff] }
 0x223   :  { %v1877_v30 = vmul.f32 %v2847_v29, %v1835_v17  ;;  %v2849_v51 = vpop.eup %2848 }
 0x224   :  { %v1713_v40 = vsub.f32 %v1629_v32, %v1671_v63  ;;  %v4714_v49 = vpop.xlane.xlu0 %1505  ;;  %2388 = vperm.xlu1 %2805, %v1994_v59   ;;  %v1668_v54 = vmul.f32 %v4721_v36, %v4721_v36 }
 0x225   :  { %v1258_v28 = vpop.xlane.xlu1 %1257  ;;  %v1961_v5 = vmul.f32 %v1877_v30, %v4632_v34  ;;  %v1872_v34 = vmul.f32 %v2849_v51, %v1830_v43  ;;  %v1832_v51 = vld [vmem:[%s5359_s3 + $0xa0] sm:$0xff] }
 0x226   :  { %v1755_v6 = vadd.f32 1e-05, %v1713_v40  ;;  %v4723_v1 = vmul.f32 0.0051020407, %v1258_v28  ;;  %2423 = vperm.xlu0 %2804, %v2001_v62   ;;  %v1710_v63 = vsub.f32 %v1626_v14, %v1668_v54 }
 0x227   :  { %v2003_v41 = vsub.f32 %v1919_v22, %v1961_v5  ;;  %v1956_v20 = vmul.f32 %v1872_v34, %v4636_v4  ;;  %v1628_v4 = vmul.f32 0.0051020407, %v4686_v16 }
 0x228   :  { %2854 = vrsqrt.f32 %v1755_v6  ;;  %v4729_v8 = vpop.xlane.xlu0 %1261  ;;  %2104 = vperm.xlu1 %2805, %v1870_v44   ;;  %v1673_v44 = vmul.f32 %v4723_v1, %v4723_v1  ;;  %v4748_v6 = vmul.f32 0.0051020407, %v4672_v45  ;;  %v1752_v43 = vadd.f32 1e-05, %v1710_v63  ;;  %v1921_v45 = vld [vmem:[%s5360_s4 + $0xc8] sm:$0xff] }
 0x229   :  { %v1510_v9 = vpop.xlane.xlu1 %1509  ;;  %2856 = vrsqrt.f32 %v1750_v39 }
 0x22a   :  { %v2851_v17 = vpop.eup %2850  ;;  %v1631_v29 = vmul.f32 0.0051020407, %v1510_v9  ;;  %2139 = vperm.xlu0 %2804, %v1877_v30   ;;  %v1914_v30 = vld [vmem:[%s5360_s4 + $0x90] sm:$0xff]  ;;  %v1839_v9 = vld [vmem:[%s5359_s3 + $0xd8] sm:$0xff] }
 0x22b   :  { %v1879_v40 = vmul.f32 %v2851_v17, %v1837_v48  ;;  %v2853_v2 = vpop.eup %2852  ;;  %v1998_v17 = vsub.f32 %v1914_v30, %v1956_v20  ;;  %v4776_v20 = vmul.f32 0.0051020407, %v4700_v24  ;;  %v1834_v30 = vld [vmem:[%s5359_s3 + $0xb0] sm:$0xff]  ;;  %v1923_v24 = vld [vmem:[%s5360_s4 + $0xd8] sm:$0xff] }
 0x22c   :  { %v1715_v32 = vsub.f32 %v1631_v29, %v1673_v44  ;;  %v4742_v59 = vpop.xlane.xlu0 %1513  ;;  %2398 = vperm.xlu1 %2805, %v1996_v53   ;;  %v1874_v54 = vmul.f32 %v2853_v2, %v1832_v51  ;;  %v1916_v2 = vld [vmem:[%s5360_s4 + $0xa0] sm:$0xff] }
 0x22d   :  { %v1266_v62 = vpop.xlane.xlu1 %1265  ;;  %v1963_v5 = vmul.f32 %v1879_v40, %v4660_v0  ;;  %v1670_v0 = vmul.f32 %v4748_v6, %v4748_v6 }
 0x22e   :  { %v1757_v57 = vadd.f32 1e-05, %v1715_v32  ;;  %v4744_v28 = vmul.f32 0.0051020407, %v1266_v62  ;;  %2433 = vperm.xlu0 %2804, %v2003_v41  }
 0x22f   :  { %v2005_v29 = vsub.f32 %v1921_v45, %v1963_v5  ;;  %v1712_v63 = vsub.f32 %v1628_v4, %v1670_v0 }
 0x230   :  { %2858 = vrsqrt.f32 %v1757_v57  ;;  %v4756_v14 = vpop.xlane.xlu0 %1269  ;;  %2114 = vperm.xlu1 %2805, %v1872_v34   ;;  %v1675_v22 = vmul.f32 %v4744_v28, %v4744_v28 }
 0x231   :  { %v1518_v39 = vpop.xlane.xlu1 %1517  ;;  %2860 = vrsqrt.f32 %v1752_v43  ;;  %v1754_v5 = vadd.f32 1e-05, %v1712_v63 }
 0x232   :  { %v2855_v53 = vpop.eup %2854  ;;  %v1633_v48 = vmul.f32 0.0051020407, %v1518_v39  ;;  %2149 = vperm.xlu0 %2804, %v1879_v40   ;;  %v1958_v40 = vmul.f32 %v1874_v54, %v4664_v46  ;;  %v1630_v46 = vmul.f32 0.0051020407, %v4714_v49  ;;  %v1841_v39 = vld [vmem:[%s5359_s3 + $0xe8] sm:$0xff]  ;;  %v1672_v49 = vmul.f32 %v4776_v20, %v4776_v20 }
 0x233   :  { %v1881_v34 = vmul.f32 %v2855_v53, %v1839_v9  ;;  %v2857_v57 = vpop.eup %2856 }
 0x234   :  { %v1717_v16 = vsub.f32 %v1633_v48, %v1675_v22  ;;  %v4770_v44 = vpop.xlane.xlu0 %1521  ;;  %2408 = vperm.xlu1 %2805, %v1998_v17   ;;  %v2000_v22 = vsub.f32 %v1916_v2, %v1958_v40  ;;  %v1632_v2 = vmul.f32 0.0051020407, %v4742_v59 }
 0x235   :  { %v1274_v32 = vpop.xlane.xlu1 %1273  ;;  %v1965_v43 = vmul.f32 %v1881_v34, %v4688_v11  ;;  %v1876_v11 = vmul.f32 %v2857_v57, %v1834_v30  ;;  %v1836_v57 = vld [vmem:[%s5359_s3 + $0xc0] sm:$0xff]  ;;  %v1918_v30 = vld [vmem:[%s5360_s4 + $0xb0] sm:$0xff] }
 0x236   :  { %v1759_v41 = vadd.f32 1e-05, %v1717_v16  ;;  %v4772_v62 = vmul.f32 0.0051020407, %v1274_v32  ;;  %2443 = vperm.xlu0 %2804, %v2005_v29   ;;  %v1714_v16 = vsub.f32 %v1630_v46, %v1672_v49  ;;  %v4801_v29 = vmul.f32 0.0051020407, %v4729_v8 }
 0x237   :  { %v1960_v40 = vmul.f32 %v1876_v11, %v4695_v18 }
 0x238   :  { %2862 = vrsqrt.f32 %v1759_v41  ;;  %v4784_v51 = vpop.xlane.xlu0 %1277  ;;  %2124 = vperm.xlu1 %2805, %v1874_v54   ;;  %v1677_v9 = vmul.f32 %v4772_v62, %v4772_v62  ;;  %v2007_v54 = vsub.f32 %v1923_v24, %v1965_v43  ;;  %v1674_v18 = vmul.f32 %v4801_v29, %v4801_v29  ;;  %v1843_v24 = vld [vmem:[%s5359_s3 + $0xf8] sm:$0xff] }
 0x239   :  { %v1526_v4 = vpop.xlane.xlu1 %1525  ;;  %2864 = vrsqrt.f32 %v1754_v5  ;;  %v1756_v5 = vadd.f32 1e-05, %v1714_v16  ;;  %v1920_v16 = vld [vmem:[%s5360_s4 + $0xc0] sm:$0xff] }
 0x23a   :  { %v2859_v45 = vpop.eup %2858  ;;  %v1635_v53 = vmul.f32 0.0051020407, %v1526_v4  ;;  %2159 = vperm.xlu0 %2804, %v1881_v34   ;;  %v1925_v4 = vld [vmem:[%s5360_s4 + $0xe8] sm:$0xff] }
 0x23b   :  { %v1883_v0 = vmul.f32 %v2859_v45, %v1841_v39  ;;  %v2861_v32 = vpop.eup %2860 }
 0x23c   :  { %v1719_v48 = vsub.f32 %v1635_v53, %v1677_v9  ;;  %v4798_v17 = vpop.xlane.xlu0 %1529  ;;  %2418 = vperm.xlu1 %2805, %v2000_v22   ;;  %v1878_v59 = vmul.f32 %v2861_v32, %v1836_v57  ;;  %v1716_v53 = vsub.f32 %v1632_v2, %v1674_v18  ;;  %v4833_v32 = vmul.f32 0.0051020407, %v4756_v14  ;;  %v1838_v2 = vld [vmem:[%s5359_s3 + $0xd0] sm:$0xff]  ;;  %v1927_v18 = vld [vmem:[%s5360_s4 + $0xf8] sm:$0xff] }
 0x23d   :  { %v1282_v63 = vpop.xlane.xlu1 %1281  ;;  %v1967_v43 = vmul.f32 %v1883_v0, %v4723_v1  ;;  %v2002_v1 = vsub.f32 %v1918_v30, %v1960_v40  ;;  %v1634_v30 = vmul.f32 0.0051020407, %v4770_v44 }
 0x23e   :  { %v1761_v41 = vadd.f32 1e-05, %v1719_v48  ;;  %v4803_v34 = vmul.f32 0.0051020407, %v1282_v63  ;;  %2453 = vperm.xlu0 %2804, %v2007_v54   ;;  %v1962_v63 = vmul.f32 %v1878_v59, %v4721_v36  ;;  %v1758_v57 = vadd.f32 1e-05, %v1716_v53 }
 0x23f   :  { %v2009_v49 = vsub.f32 %v1925_v4, %v1967_v43  ;;  %v1676_v44 = vmul.f32 %v4833_v32, %v4833_v32 }
 0x240   :  { %2866 = vrsqrt.f32 %v1761_v41  ;;  %v4813_v8 = vpop.xlane.xlu0 %1285  ;;  %2134 = vperm.xlu1 %2805, %v1876_v11   ;;  %v1679_v45 = vmul.f32 %v4803_v34, %v4803_v34  ;;  %v2004_v14 = vsub.f32 %v1920_v16, %v1962_v63 }
 0x241   :  { %v1534_v46 = vpop.xlane.xlu1 %1533  ;;  %2868 = vrsqrt.f32 %v1756_v5 }
 0x242   :  { %v2863_v39 = vpop.eup %2862  ;;  %v1637_v9 = vmul.f32 0.0051020407, %v1534_v46  ;;  %2169 = vperm.xlu0 %2804, %v1883_v0   ;;  %v1845_v46 = vld [vmem:[%s5359_s3 + $0x108] sm:$0xff] }
 0x243   :  { %v1885_v48 = vmul.f32 %v2863_v39, %v1843_v24  ;;  %v2865_v40 = vpop.eup %2864  ;;  %v1718_v39 = vsub.f32 %v1634_v30, %v1676_v44  ;;  %v1636_v30 = vmul.f32 0.0051020407, %v4798_v17 }
 0x244   :  { %v1721_v22 = vsub.f32 %v1637_v9, %v1679_v45  ;;  %v4826_v11 = vpop.xlane.xlu0 %1537  ;;  %2428 = vperm.xlu1 %2805, %v2002_v1   ;;  %v1880_v24 = vmul.f32 %v2865_v40, %v1838_v2  ;;  %v1840_v40 = vld [vmem:[%s5359_s3 + $0xe0] sm:$0xff] }
 0x245   :  { %v1290_v54 = vpop.xlane.xlu1 %1289  ;;  %v1969_v43 = vmul.f32 %v1885_v48, %v4744_v28 }
 0x246   :  { %v1763_v0 = vadd.f32 1e-05, %v1721_v22  ;;  %v4835_v41 = vmul.f32 0.0051020407, %v1290_v54  ;;  %2463 = vperm.xlu0 %2804, %v2009_v49   ;;  %v1964_v16 = vmul.f32 %v1880_v24, %v4748_v6 }
 0x247   :  { %v2011_v9 = vsub.f32 %v1927_v18, %v1969_v43  ;;  %v1847_v43 = vld [vmem:[%s5359_s3 + $0x118] sm:$0xff] }
 0x248   :  { %2870 = vrsqrt.f32 %v1763_v0  ;;  %2144 = vperm.xlu1 %2805, %v1878_v59   ;;  %v1681_v59 = vmul.f32 %v4835_v41, %v4835_v41  ;;  %v4860_v0 = vmul.f32 0.0051020407, %v4784_v51  ;;  %v1929_v51 = vld [vmem:[%s5360_s4 + $0x108] sm:$0xff] }
 0x249   :  { %v1542_v36 = vpop.xlane.xlu1 %1541  ;;  %v4842_v5 = vpop.xlane.xlu0 %1293  ;;  %2872 = vrsqrt.f32 %v1758_v57  ;;  %v1760_v57 = vadd.f32 1e-05, %v1718_v39 }
 0x24a   :  { %v2867_v4 = vpop.eup %2866  ;;  %v1639_v28 = vmul.f32 0.0051020407, %v1542_v36  ;;  %2179 = vperm.xlu0 %2804, %v1885_v48   ;;  %v1922_v48 = vld [vmem:[%s5360_s4 + $0xd0] sm:$0xff] }
 0x24b   :  { %v1887_v1 = vmul.f32 %v2867_v4, %v1845_v46  ;;  %v2869_v63 = vpop.eup %2868  ;;  %v2006_v46 = vsub.f32 %v1922_v48, %v1964_v16  ;;  %v1842_v16 = vld [vmem:[%s5359_s3 + $0xf0] sm:$0xff]  ;;  %v1924_v48 = vld [vmem:[%s5360_s4 + $0xe0] sm:$0xff] }
 0x24c   :  { %v1723_v45 = vsub.f32 %v1639_v28, %v1681_v59  ;;  %2438 = vperm.xlu1 %2805, %v2004_v14   ;;  %v1882_v4 = vmul.f32 %v2869_v63, %v1840_v40  ;;  %v1638_v63 = vmul.f32 0.0051020407, %v4826_v11  ;;  %v1849_v40 = vld [vmem:[%s5359_s3 + $0x128] sm:$0xff]  ;;  %v1931_v11 = vld [vmem:[%s5360_s4 + $0x118] sm:$0xff] }
 0x24d   :  { %v4854_v53 = vpop.xlane.xlu0 %1545  ;;  %v1298_v22 = vpop.xlane.xlu1 %1297  ;;  %v1971_v2 = vmul.f32 %v1887_v1, %v4772_v62  ;;  %v1678_v62 = vmul.f32 %v4860_v0, %v4860_v0 }
 0x24e   :  { %v1765_v49 = vadd.f32 1e-05, %v1723_v45  ;;  %v4856_v54 = vmul.f32 0.0051020407, %v1298_v22  ;;  %2473 = vperm.xlu0 %2804, %v2011_v9   ;;  %v4883_v45 = vmul.f32 0.0051020407, %v4813_v8 }
 0x24f   :  { %v2013_v59 = vsub.f32 %v1929_v51, %v1971_v2  ;;  %v1720_v39 = vsub.f32 %v1636_v30, %v1678_v62 }
 0x250   :  { %2874 = vrsqrt.f32 %v1765_v49  ;;  %2154 = vperm.xlu1 %2805, %v1880_v24   ;;  %v1683_v14 = vmul.f32 %v4856_v54, %v4856_v54  ;;  %v1966_v49 = vmul.f32 %v1882_v4, %v4776_v20  ;;  %v1680_v20 = vmul.f32 %v4883_v45, %v4883_v45 }
 0x251   :  { %v1550_v6 = vpop.xlane.xlu1 %1549  ;;  %v4880_v17 = vpop.xlane.xlu0 %1301  ;;  %2876 = vrsqrt.f32 %v1760_v57  ;;  %v1762_v57 = vadd.f32 1e-05, %v1720_v39 }
 0x252   :  { %v2871_v36 = vpop.eup %2870  ;;  %v1641_v18 = vmul.f32 0.0051020407, %v1550_v6  ;;  %2189 = vperm.xlu0 %2804, %v1887_v1  }
 0x253   :  { %v1889_v28 = vmul.f32 %v2871_v36, %v1847_v43  ;;  %v2873_v24 = vpop.eup %2872  ;;  %v2008_v36 = vsub.f32 %v1924_v48, %v1966_v49  ;;  %v4914_v49 = vmul.f32 0.0051020407, %v4842_v5  ;;  %v1933_v5 = vld [vmem:[%s5360_s4 + $0x128] sm:$0xff] }
 0x254   :  { %v1725_v44 = vsub.f32 %v1641_v18, %v1683_v14  ;;  %2448 = vperm.xlu1 %2805, %v2006_v46   ;;  %v1884_v6 = vmul.f32 %v2873_v24, %v1842_v16  ;;  %v1722_v14 = vsub.f32 %v1638_v63, %v1680_v20  ;;  %v1926_v24 = vld [vmem:[%s5360_s4 + $0xf0] sm:$0xff] }
 0x255   :  { %v1306_v9 = vpop.xlane.xlu1 %1305  ;;  %v1973_v8 = vmul.f32 %v1889_v28, %v4803_v34  ;;  %v1554_v2 = vpop.xlane.xlu0 %1553 }
 0x256   :  { %v1767_v22 = vadd.f32 1e-05, %v1725_v44  ;;  %v4885_v1 = vmul.f32 0.0051020407, %v1306_v9  ;;  %2483 = vperm.xlu0 %2804, %v2013_v59   ;;  %v1968_v59 = vmul.f32 %v1884_v6, %v4801_v29 }
 0x258   :  { %2878 = vrsqrt.f32 %v1767_v22  ;;  %2164 = vperm.xlu1 %2805, %v1882_v4   ;;  %v1685_v43 = vmul.f32 %v4885_v1, %v4885_v1  ;;  %v2015_v4 = vsub.f32 %v1931_v11, %v1973_v8  ;;  %v1764_v22 = vadd.f32 1e-05, %v1722_v14 }
 0x259   :  { %v1558_v30 = vpop.xlane.xlu1 %1557  ;;  %2880 = vrsqrt.f32 %v1762_v57 }
 0x25a   :  { %v2875_v51 = vpop.eup %2874  ;;  %v1643_v34 = vmul.f32 0.0051020407, %v1558_v30  ;;  %2199 = vperm.xlu0 %2804, %v1889_v28   ;;  %v1844_v28 = vld [vmem:[%s5359_s3 + $0x100] sm:$0xff]  ;;  %v2010_v30 = vsub.f32 %v1926_v24, %v1968_v59  ;;  %v1846_v59 = vld [vmem:[%s5359_s3 + $0x110] sm:$0xff] }
 0x25b   :  { %v1891_v18 = vmul.f32 %v2875_v51, %v1849_v40  ;;  %v2877_v39 = vpop.eup %2876  ;;  %v1640_v40 = vmul.f32 0.0051020407, %v4854_v53  ;;  %v1682_v53 = vmul.f32 %v4914_v49, %v4914_v49 }
 0x25c   :  { %v1727_v46 = vsub.f32 %v1643_v34, %v1685_v43  ;;  %2458 = vperm.xlu1 %2805, %v2008_v36   ;;  %v4945_v36 = vmul.f32 0.0051020407, %v4880_v17 }
 0x25d   :  { %v2025_v62 = vpop.permute.xlu0 %2024  ;;  %v2030_v44 = vpop.permute.xlu1 %2029  ;;  %v1975_v63 = vmul.f32 %v1891_v18, %v4835_v41  ;;  %v1851_v41 = vld [vmem:[%s5359_s3 + $0x138] sm:$0xff]  ;;  %v1724_v34 = vsub.f32 %v1640_v40, %v1682_v53  ;;  %v1937_v53 = vld [vmem:[%s5360_s4 + $0x148] sm:$0xff] }
 0x25e   :  { %v1769_v9 = vadd.f32 1e-05, %v1727_v46  ;;  %2493 = vperm.xlu0 %2804, %v2015_v4   ;;  %v2232_v16 = vmul.f32 %v2025_v62, %v3898_v7  ;;  %v2233_v29 = vmul.f32 %v2025_v62, %v3900_v10  ;;  %v2234_v48 = vmul.f32 %v2030_v44, %v3902_v13 }
 0x25f   :  { %v2235_v8 = vmul.f32 %v2030_v44, %v3904_v15  ;;  %v1886_v7 = vmul.f32 %v2877_v39, %v1844_v28  ;;  %v1642_v62 = vmul.f32 0.0051020407, %v1554_v2  ;;  %v1928_v44 = vld [vmem:[%s5360_s4 + $0x100] sm:$0xff]  ;;  %v1766_v17 = vadd.f32 1e-05, %v1724_v34  ;;  %v1853_v2 = vld [vmem:[%s5359_s3 + $0x148] sm:$0xff] }
 0x260   :  { %2882 = vrsqrt.f32 %v1769_v9  ;;  %2174 = vperm.xlu1 %2805, %v1884_v6   ;;  %v2017_v6 = vsub.f32 %v1933_v5, %v1975_v63  ;;  %v1684_v9 = vmul.f32 %v4945_v36, %v4945_v36 }
 0x261   :  { %v2324_v57 = vpop.permute.xlu0 %2323  ;;  %v2319_v20 = vpop.permute.xlu1 %2318  ;;  %2884 = vrsqrt.f32 %v1764_v22  ;;  %v1970_v46 = vmul.f32 %v1886_v7, %v4833_v32  ;;  %v1935_v32 = vld [vmem:[%s5360_s4 + $0x138] sm:$0xff] }
 0x262   :  { %v2879_v10 = vpop.eup %2878  ;;  %v2528_v11 = vadd.f32 %v2324_v57, %v2234_v48  ;;  %v2529_v13 = vadd.f32 %v2324_v57, %v2235_v8  ;;  %v2526_v51 = vadd.f32 %v2319_v20, %v2232_v16  ;;  %v2527_v15 = vadd.f32 %v2319_v20, %v2233_v29  ;;  %2209 = vperm.xlu0 %2804, %v1891_v18  }
 0x263   :  { %v1893_v43 = vmul.f32 %v2879_v10, %v1851_v41  ;;  %v2881_v4 = vpop.eup %2880  ;;  %v1726_v48 = vsub.f32 %v1642_v62, %v1684_v9  ;;  %2886 = vrsqrt.f32 %v1766_v17  ;;  %v1848_v10 = vld [vmem:[%s5359_s3 + $0x120] sm:$0xff] }
 0x264   :  { %2612 = vst [vmem:[%s5361_s5 + $0x10] sm:$0xff] %v2528_v11  ;;  %2613 = vst.msk [vmem:[%s5361_s5 + $0x18] sm:$0xff] %vm1138_vm1, %v2529_v13  ;;  %2468 = vperm.xlu1 %2805, %v2010_v30   ;;  %v1888_v29 = vmul.f32 %v2881_v4, %v1846_v59  ;;  %v1930_v11 = vld [vmem:[%s5360_s4 + $0x110] sm:$0xff] }
 0x265   :  { %2610 = vst [vmem:[%s5361_s5] sm:$0xff] %v2526_v51  ;;  %2611 = vst.msk [vmem:[%s5361_s5 + $0x8] sm:$0xff] %vm1138_vm1, %v2527_v15  ;;  %v2334_v14 = vpop.permute.xlu0 %2333  ;;  %v2035_v18 = vpop.permute.xlu1 %2034  ;;  %v1977_v39 = vmul.f32 %v1893_v43, %v4856_v54  ;;  %v2012_v54 = vsub.f32 %v1928_v44, %v1970_v46  ;;  %v1768_v13 = vadd.f32 1e-05, %v1726_v48 }
 0x266   :  { %2503 = vperm.xlu0 %2804, %v2017_v6   ;;  %v2236_v8 = vmul.f32 %v2035_v18, %v3918_v26  ;;  %v2237_v40 = vmul.f32 %v2035_v18, %v3921_v31 }
 0x267   :  { %v2019_v30 = vsub.f32 %v1935_v32, %v1977_v39  ;;  %2888 = vrsqrt.f32 %v1768_v13 }
 0x268   :  { %2184 = vperm.xlu1 %2805, %v1886_v7  }
 0x269   :  { %v2344_v24 = vpop.permute.xlu0 %2343  ;;  %v2040_v28 = vpop.permute.xlu1 %2039 }
 0x26a   :  { %v2883_v22 = vpop.eup %2882  ;;  %v2238_v16 = vmul.f32 %v2040_v28, %v3924_v35  ;;  %v2239_v63 = vmul.f32 %v2040_v28, %v3928_v38  ;;  %2219 = vperm.xlu0 %2804, %v1893_v43   ;;  %v1972_v38 = vmul.f32 %v1888_v29, %v4860_v0 }
 0x26b   :  { %v1895_v5 = vmul.f32 %v2883_v22, %v1853_v2  ;;  %v2885_v35 = vpop.eup %2884 }
 0x26c   :  { %v2532_v57 = vadd.f32 %v2334_v14, %v2238_v16  ;;  %v2533_v20 = vadd.f32 %v2334_v14, %v2239_v63  ;;  %2478 = vperm.xlu1 %2805, %v2012_v54   ;;  %v1890_v6 = vmul.f32 %v2885_v35, %v1848_v10  ;;  %v2014_v43 = vsub.f32 %v1930_v11, %v1972_v38 }
 0x26d   :  { %v4967_v7 = vpop.permute.xlu0 %2353  ;;  %v2329_v41 = vpop.permute.xlu1 %2328  ;;  %v1979_v0 = vmul.f32 %v1895_v5, %v4885_v1 }
 0x26e   :  { %2616 = vst [vmem:[%s5361_s5 + $0x30] sm:$0xff] %v2532_v57  ;;  %2617 = vst.msk [vmem:[%s5361_s5 + $0x38] sm:$0xff] %vm1138_vm1, %v2533_v20  ;;  %v2530_v26 = vadd.f32 %v2329_v41, %v2236_v8  ;;  %v2531_v31 = vadd.f32 %v2329_v41, %v2237_v40  ;;  %2513 = vperm.xlu0 %2804, %v2019_v30   ;;  %v1974_v1 = vmul.f32 %v1890_v6, %v4883_v45  ;;  %v2887_v17 = vpop.eup %2886 }
 0x26f   :  { %v2021_v18 = vsub.f32 %v1937_v53, %v1979_v0 }
 0x270   :  { %2614 = vst [vmem:[%s5361_s5 + $0x20] sm:$0xff] %v2530_v26  ;;  %2615 = vst.msk [vmem:[%s5361_s5 + $0x28] sm:$0xff] %vm1138_vm1, %v2531_v31  ;;  %2194 = vperm.xlu1 %2805, %v1888_v29  }
 0x271   :  { %v2070_v51 = vpop.permute.xlu0 %2069  ;;  %v2045_v15 = vpop.permute.xlu1 %2044 }
 0x272   :  { %2229 = vperm.xlu0 %2804, %v1895_v5   ;;  %v2250_v34 = vmul.f32 %v2070_v51, %v3996_v52  ;;  %v2251_v14 = vmul.f32 %v2070_v51, %v4000_v3  ;;  %v1932_v52 = vld [vmem:[%s5360_s4 + $0x120] sm:$0xff]  ;;  %v1850_v3 = vld [vmem:[%s5359_s3 + $0x130] sm:$0xff]  ;;  %v2240_v9 = vmul.f32 %v2045_v15, %v3942_v50  ;;  %v2241_v45 = vmul.f32 %v2045_v15, %v3945_v55  ;;  %v2889_v29 = vpop.eup %2888 }
 0x273   :  { %v2016_v2 = vsub.f32 %v1932_v52, %v1974_v1  ;;  %v1892_v22 = vmul.f32 %v2887_v17, %v1850_v3  ;;  %v5481_v17 = vld [vmem:[#allocation3_spill] sm:$0xff] }
 0x274   :  { %2488 = vperm.xlu1 %2805, %v2014_v43  }
 0x275   :  { %v2364_v46 = vpop.permute.xlu0 %2363  ;;  %v2050_v4 = vpop.permute.xlu1 %2049  ;;  %v1976_v40 = vmul.f32 %v1892_v22, %v4914_v49 }
 0x276   :  { %v2544_v62 = vadd.f32 %v2364_v46, %v2250_v34  ;;  %v2545_v44 = vadd.f32 %v2364_v46, %v2251_v14  ;;  %v2242_v59 = vmul.f32 %v2050_v4, %v3948_v58  ;;  %v2243_v39 = vmul.f32 %v2050_v4, %v3952_v61  ;;  %2523 = vperm.xlu0 %2804, %v2021_v18  }
 0x278   :  { %2628 = vst [vmem:[%s5361_s5 + $0x90] sm:$0xff] %v2544_v62  ;;  %2629 = vst.msk [vmem:[%s5361_s5 + $0x98] sm:$0xff] %vm1138_vm1, %v2545_v44  ;;  %v2536_v58 = vadd.f32 %v2344_v24, %v2242_v59  ;;  %v2537_v61 = vadd.f32 %v2344_v24, %v2243_v39  ;;  %2204 = vperm.xlu1 %2805, %v1890_v6   ;;  %v5479_v62 = vld [vmem:[#allocation11_spill] sm:$0xff]  ;;  %v5480_v59 = vld [vmem:[#allocation2_spill] sm:$0xff] }
 0x279   :  { %v2080_v28 = vpop.permute.xlu0 %2079  ;;  %v2339_v32 = vpop.permute.xlu1 %2338 }
 0x27a   :  { %2620 = vst [vmem:[%s5361_s5 + $0x50] sm:$0xff] %v2536_v58  ;;  %2621 = vst.msk [vmem:[%s5361_s5 + $0x58] sm:$0xff] %vm1138_vm1, %v2537_v61  ;;  %v2534_v50 = vadd.f32 %v2339_v32, %v2240_v9  ;;  %v2535_v55 = vadd.f32 %v2339_v32, %v2241_v45  ;;  %v2254_v16 = vmul.f32 %v2080_v28, %v4020_v21  ;;  %v1852_v21 = vld [vmem:[%s5359_s3 + $0x140] sm:$0xff] }
 0x27b   :  { %v2255_v24 = vmul.f32 %v2080_v28, %v4024_v25  ;;  %v1934_v25 = vld [vmem:[%s5360_s4 + $0x130] sm:$0xff]  ;;  %v1894_v20 = vmul.f32 %v2889_v29, %v1852_v21 }
 0x27c   :  { %2618 = vst [vmem:[%s5361_s5 + $0x40] sm:$0xff] %v2534_v50  ;;  %2619 = vst.msk [vmem:[%s5361_s5 + $0x48] sm:$0xff] %vm1138_vm1, %v2535_v55  ;;  %2498 = vperm.xlu1 %2805, %v2016_v2   ;;  %v2018_v41 = vsub.f32 %v1934_v25, %v1976_v40  ;;  %v5482_v55 = vld [vmem:[#allocation14_spill] sm:$0xff] }
 0x27d   :  { %v2374_v63 = vpop.permute.xlu0 %2373  ;;  %v2055_v54 = vpop.permute.xlu1 %2054 }
 0x27e   :  { %v2548_v48 = vadd.f32 %v2374_v63, %v2254_v16  ;;  %v2549_v8 = vadd.f32 %v2374_v63, %v2255_v24  ;;  %v2244_v35 = vmul.f32 %v2055_v54, %v3966_v12  ;;  %v2245_v26 = vmul.f32 %v2055_v54, %v3969_v19  ;;  %v5484_v24 = vld [vmem:[#allocation4_spill] sm:$0xff]  ;;  %v5485_v54 = vld [vmem:[#allocation5_spill] sm:$0xff] }
 0x280   :  { %2632 = vst [vmem:[%s5361_s5 + $0xb0] sm:$0xff] %v2548_v48  ;;  %2633 = vst.msk [vmem:[%s5361_s5 + $0xb8] sm:$0xff] %vm1138_vm1, %v2549_v8  ;;  %2214 = vperm.xlu1 %2805, %v1892_v22   ;;  %v5483_v22 = vld [vmem:[#allocation15_spill] sm:$0xff] }
 0x281   :  { %v2090_v57 = vpop.permute.xlu0 %2089  ;;  %v2060_v49 = vpop.permute.xlu1 %2059 }
 0x282   :  { %v2246_v30 = vmul.f32 %v2060_v49, %v3972_v23  ;;  %v2247_v5 = vmul.f32 %v2060_v49, %v3976_v27  ;;  %v2258_v31 = vmul.f32 %v2090_v57, %v4044_v56  ;;  %v2259_v38 = vmul.f32 %v2090_v57, %v4048_v60  ;;  %v1936_v60 = vld [vmem:[%s5360_s4 + $0x140] sm:$0xff] }
 0x283   :  { %v1978_v23 = vmul.f32 %v1894_v20, %v4945_v36 }
 0x284   :  { %v2540_v10 = vadd.f32 %v4967_v7, %v2246_v30  ;;  %v2541_v11 = vadd.f32 %v4967_v7, %v2247_v5  ;;  %2508 = vperm.xlu1 %2805, %v2018_v41   ;;  %v5486_v30 = vld [vmem:[#allocation18_spill] sm:$0xff]  ;;  %v5487_v41 = vld [vmem:[#allocation19_spill] sm:$0xff] }
 0x285   :  { %v2384_v13 = vpop.permute.xlu0 %2383  ;;  %v2349_v0 = vpop.permute.xlu1 %2348  ;;  %v2020_v51 = vsub.f32 %v1936_v60, %v1978_v23  ;;  %v5490_v60 = vld [vmem:[#allocation22_spill] sm:$0xff] }
 0x286   :  { %2624 = vst [vmem:[%s5361_s5 + $0x70] sm:$0xff] %v2540_v10  ;;  %2625 = vst.msk [vmem:[%s5361_s5 + $0x78] sm:$0xff] %vm1138_vm1, %v2541_v11  ;;  %v2552_v12 = vadd.f32 %v2384_v13, %v2258_v31  ;;  %v2553_v19 = vadd.f32 %v2384_v13, %v2259_v38  ;;  %v2538_v27 = vadd.f32 %v2349_v0, %v2244_v35  ;;  %v5489_v38 = vld [vmem:[#allocation7_spill] sm:$0xff] }
 0x287   :  { %v2539_v56 = vadd.f32 %v2349_v0, %v2245_v26  ;;  %v5488_v26 = vld [vmem:[#allocation6_spill] sm:$0xff] }
 0x288   :  { %2636 = vst [vmem:[%s5361_s5 + $0xd0] sm:$0xff] %v2552_v12  ;;  %2637 = vst.msk [vmem:[%s5361_s5 + $0xd8] sm:$0xff] %vm1138_vm1, %v2553_v19  ;;  %2224 = vperm.xlu1 %2805, %v1894_v20  }
 0x289   :  { %2622 = vst [vmem:[%s5361_s5 + $0x60] sm:$0xff] %v2538_v27  ;;  %2623 = vst.msk [vmem:[%s5361_s5 + $0x68] sm:$0xff] %vm1138_vm1, %v2539_v56  ;;  %v2100_v36 = vpop.permute.xlu0 %2099  ;;  %v2065_v7 = vpop.permute.xlu1 %2064 }
 0x28a   :  { %v2262_v15 = vmul.f32 %v2100_v36, %v4068_v33  ;;  %v2263_v53 = vmul.f32 %v2100_v36, %v4072_v37  ;;  %v2248_v6 = vmul.f32 %v2065_v7, %v3990_v42  ;;  %v2249_v43 = vmul.f32 %v2065_v7, %v3993_v47  ;;  %v5478_v33 = vld [vmem:[#allocation10_spill] sm:$0xff]  ;;  %v5491_v7 = vld [vmem:[#allocation23_spill] sm:$0xff] }
 0x28c   :  { %2518 = vperm.xlu1 %2805, %v2020_v51  }
 0x28d   :  { %v2394_v34 = vpop.permute.xlu0 %2393  ;;  %v2359_v14 = vpop.permute.xlu1 %2358 }
 0x28e   :  { %v2556_v18 = vadd.f32 %v2394_v34, %v2262_v15  ;;  %v2557_v46 = vadd.f32 %v2394_v34, %v2263_v53  ;;  %v2542_v4 = vadd.f32 %v2359_v14, %v2248_v6  ;;  %v2543_v1 = vadd.f32 %v2359_v14, %v2249_v43  ;;  %v5492_v15 = vld [vmem:[#allocation8_spill] sm:$0xff]  ;;  %v5493_v6 = vld [vmem:[#allocation9_spill] sm:$0xff] }
 0x290   :  { %2640 = vst [vmem:[%s5361_s5 + $0xf0] sm:$0xff] %v2556_v18  ;;  %2641 = vst.msk [vmem:[%s5361_s5 + $0xf8] sm:$0xff] %vm1138_vm1, %v2557_v46 }
 0x291   :  { %2626 = vst [vmem:[%s5361_s5 + $0x80] sm:$0xff] %v2542_v4  ;;  %2627 = vst.msk [vmem:[%s5361_s5 + $0x88] sm:$0xff] %vm1138_vm1, %v2543_v1  ;;  %v2110_v42 = vpop.permute.xlu0 %2109  ;;  %v2075_v47 = vpop.permute.xlu1 %2074 }
 0x292   :  { %v2266_v37 = vmul.f32 %v2110_v42, %v5478_v33  ;;  %v2267_v44 = vmul.f32 %v2110_v42, %v5479_v62  ;;  %v2252_v39 = vmul.f32 %v2075_v47, %v5480_v59  ;;  %v2253_v52 = vmul.f32 %v2075_v47, %v5481_v17  ;;  %v5494_v33 = vld [vmem:[#allocation26_spill] sm:$0xff]  ;;  %v5495_v62 = vld [vmem:[#allocation27_spill] sm:$0xff]  ;;  %v5496_v59 = vld [vmem:[#allocation12_spill] sm:$0xff] }
 0x293   :  { %v5497_v17 = vld [vmem:[#allocation13_spill] sm:$0xff] }
 0x295   :  { %v2404_v3 = vpop.permute.xlu0 %2403  ;;  %v2369_v9 = vpop.permute.xlu1 %2368 }
 0x296   :  { %v2560_v45 = vadd.f32 %v2404_v3, %v2266_v37  ;;  %v2561_v58 = vadd.f32 %v2404_v3, %v2267_v44  ;;  %v2546_v61 = vadd.f32 %v2369_v9, %v2252_v39  ;;  %v2547_v28 = vadd.f32 %v2369_v9, %v2253_v52 }
 0x298   :  { %2644 = vst [vmem:[%s5361_s5 + $0x110] sm:$0xff] %v2560_v45  ;;  %2645 = vst.msk [vmem:[%s5361_s5 + $0x118] sm:$0xff] %vm1138_vm1, %v2561_v58 }
 0x299   :  { %2630 = vst [vmem:[%s5361_s5 + $0xa0] sm:$0xff] %v2546_v61  ;;  %2631 = vst.msk [vmem:[%s5361_s5 + $0xa8] sm:$0xff] %vm1138_vm1, %v2547_v28  ;;  %v2120_v32 = vpop.permute.xlu0 %2119  ;;  %v2085_v50 = vpop.permute.xlu1 %2084 }
 0x29a   :  { %v2270_v2 = vmul.f32 %v2120_v32, %v5482_v55  ;;  %v2271_v16 = vmul.f32 %v2120_v32, %v5483_v22  ;;  %v2256_v63 = vmul.f32 %v2085_v50, %v5484_v24  ;;  %v2257_v29 = vmul.f32 %v2085_v50, %v5485_v54  ;;  %v5498_v55 = vld [vmem:[#allocation30_spill] sm:$0xff]  ;;  %v5499_v22 = vld [vmem:[#allocation31_spill] sm:$0xff]  ;;  %v5500_v24 = vld [vmem:[#allocation16_spill] sm:$0xff] }
 0x29b   :  { %v5501_v54 = vld [vmem:[#allocation17_spill] sm:$0xff] }
 0x29d   :  { %v2414_v48 = vpop.permute.xlu0 %2413  ;;  %v2379_v8 = vpop.permute.xlu1 %2378 }
 0x29e   :  { %v2564_v40 = vadd.f32 %v2414_v48, %v2270_v2  ;;  %v2565_v21 = vadd.f32 %v2414_v48, %v2271_v16  ;;  %v2550_v25 = vadd.f32 %v2379_v8, %v2256_v63  ;;  %v2551_v57 = vadd.f32 %v2379_v8, %v2257_v29 }
 0x2a0   :  { %2648 = vst [vmem:[%s5361_s5 + $0x130] sm:$0xff] %v2564_v40  ;;  %2649 = vst.msk [vmem:[%s5361_s5 + $0x138] sm:$0xff] %vm1138_vm1, %v2565_v21 }
 0x2a1   :  { %2634 = vst [vmem:[%s5361_s5 + $0xc0] sm:$0xff] %v2550_v25  ;;  %2635 = vst.msk [vmem:[%s5361_s5 + $0xc8] sm:$0xff] %vm1138_vm1, %v2551_v57  ;;  %v2130_v49 = vpop.permute.xlu0 %2129  ;;  %v2095_v20 = vpop.permute.xlu1 %2094 }
 0x2a2   :  { %v2274_v5 = vmul.f32 %v2130_v49, %v5486_v30  ;;  %v2275_v35 = vmul.f32 %v2130_v49, %v5487_v41  ;;  %v2260_v31 = vmul.f32 %v2095_v20, %v5488_v26  ;;  %v2261_v10 = vmul.f32 %v2095_v20, %v5489_v38  ;;  %v5502_v30 = vld [vmem:[#allocation34_spill] sm:$0xff]  ;;  %v5503_v41 = vld [vmem:[#allocation35_spill] sm:$0xff]  ;;  %v5504_v26 = vld [vmem:[#allocation20_spill] sm:$0xff] }
 0x2a3   :  { %v5505_v38 = vld [vmem:[#allocation21_spill] sm:$0xff] }
 0x2a5   :  { %v2424_v11 = vpop.permute.xlu0 %2423  ;;  %v2389_v13 = vpop.permute.xlu1 %2388 }
 0x2a6   :  { %v2568_v0 = vadd.f32 %v2424_v11, %v2274_v5  ;;  %v2569_v23 = vadd.f32 %v2424_v11, %v2275_v35  ;;  %v2554_v12 = vadd.f32 %v2389_v13, %v2260_v31  ;;  %v2555_v19 = vadd.f32 %v2389_v13, %v2261_v10 }
 0x2a8   :  { %2652 = vst [vmem:[%s5361_s5 + $0x150] sm:$0xff] %v2568_v0  ;;  %2653 = vst.msk [vmem:[%s5361_s5 + $0x158] sm:$0xff] %vm1138_vm1, %v2569_v23 }
 0x2a9   :  { %2638 = vst [vmem:[%s5361_s5 + $0xe0] sm:$0xff] %v2554_v12  ;;  %2639 = vst.msk [vmem:[%s5361_s5 + $0xe8] sm:$0xff] %vm1138_vm1, %v2555_v19  ;;  %v2140_v27 = vpop.permute.xlu0 %2139  ;;  %v2105_v56 = vpop.permute.xlu1 %2104 }
 0x2aa   :  { %v2278_v36 = vmul.f32 %v2140_v27, %v5490_v60  ;;  %v2279_v51 = vmul.f32 %v2140_v27, %v5491_v7  ;;  %v2264_v53 = vmul.f32 %v2105_v56, %v5492_v15  ;;  %v2265_v43 = vmul.f32 %v2105_v56, %v5493_v6  ;;  %v5506_v60 = vld [vmem:[#allocation38_spill] sm:$0xff]  ;;  %v5507_v7 = vld [vmem:[#allocation39_spill] sm:$0xff]  ;;  %v5508_v15 = vld [vmem:[#allocation24_spill] sm:$0xff] }
 0x2ab   :  { %v5509_v6 = vld [vmem:[#allocation25_spill] sm:$0xff] }
 0x2ad   :  { %v2434_v34 = vpop.permute.xlu0 %2433  ;;  %v2399_v14 = vpop.permute.xlu1 %2398 }
 0x2ae   :  { %v2572_v18 = vadd.f32 %v2434_v34, %v2278_v36  ;;  %v2573_v46 = vadd.f32 %v2434_v34, %v2279_v51  ;;  %v2558_v4 = vadd.f32 %v2399_v14, %v2264_v53  ;;  %v2559_v1 = vadd.f32 %v2399_v14, %v2265_v43 }
 0x2b0   :  { %2656 = vst [vmem:[%s5361_s5 + $0x170] sm:$0xff] %v2572_v18  ;;  %2657 = vst.msk [vmem:[%s5361_s5 + $0x178] sm:$0xff] %vm1138_vm1, %v2573_v46 }
 0x2b1   :  { %2642 = vst [vmem:[%s5361_s5 + $0x100] sm:$0xff] %v2558_v4  ;;  %2643 = vst.msk [vmem:[%s5361_s5 + $0x108] sm:$0xff] %vm1138_vm1, %v2559_v1  ;;  %v2150_v42 = vpop.permute.xlu0 %2149  ;;  %v2115_v47 = vpop.permute.xlu1 %2114 }
 0x2b2   :  { %v2282_v37 = vmul.f32 %v2150_v42, %v5494_v33  ;;  %v2283_v44 = vmul.f32 %v2150_v42, %v5495_v62  ;;  %v2268_v39 = vmul.f32 %v2115_v47, %v5496_v59  ;;  %v2269_v52 = vmul.f32 %v2115_v47, %v5497_v17  ;;  %v5510_v33 = vld [vmem:[#allocation42_spill] sm:$0xff]  ;;  %v5511_v62 = vld [vmem:[#allocation43_spill] sm:$0xff]  ;;  %v5512_v59 = vld [vmem:[#allocation28_spill] sm:$0xff] }
 0x2b3   :  { %v5513_v17 = vld [vmem:[#allocation29_spill] sm:$0xff] }
 0x2b5   :  { %v2444_v3 = vpop.permute.xlu0 %2443  ;;  %v2409_v9 = vpop.permute.xlu1 %2408 }
 0x2b6   :  { %v2576_v45 = vadd.f32 %v2444_v3, %v2282_v37  ;;  %v2577_v58 = vadd.f32 %v2444_v3, %v2283_v44  ;;  %v2562_v61 = vadd.f32 %v2409_v9, %v2268_v39  ;;  %v2563_v28 = vadd.f32 %v2409_v9, %v2269_v52 }
 0x2b8   :  { %2660 = vst [vmem:[%s5361_s5 + $0x190] sm:$0xff] %v2576_v45  ;;  %2661 = vst.msk [vmem:[%s5361_s5 + $0x198] sm:$0xff] %vm1138_vm1, %v2577_v58 }
 0x2b9   :  { %2646 = vst [vmem:[%s5361_s5 + $0x120] sm:$0xff] %v2562_v61  ;;  %2647 = vst.msk [vmem:[%s5361_s5 + $0x128] sm:$0xff] %vm1138_vm1, %v2563_v28  ;;  %v2160_v32 = vpop.permute.xlu0 %2159  ;;  %v2125_v50 = vpop.permute.xlu1 %2124 }
 0x2ba   :  { %v2286_v2 = vmul.f32 %v2160_v32, %v5498_v55  ;;  %v2287_v16 = vmul.f32 %v2160_v32, %v5499_v22  ;;  %v2272_v63 = vmul.f32 %v2125_v50, %v5500_v24  ;;  %v2273_v29 = vmul.f32 %v2125_v50, %v5501_v54  ;;  %v5514_v55 = vld [vmem:[#allocation46_spill] sm:$0xff]  ;;  %v5515_v22 = vld [vmem:[#allocation47_spill] sm:$0xff]  ;;  %v5516_v24 = vld [vmem:[#allocation32_spill] sm:$0xff] }
 0x2bb   :  { %v5517_v54 = vld [vmem:[#allocation33_spill] sm:$0xff] }
 0x2bd   :  { %v2454_v48 = vpop.permute.xlu0 %2453  ;;  %v2419_v8 = vpop.permute.xlu1 %2418 }
 0x2be   :  { %v2580_v40 = vadd.f32 %v2454_v48, %v2286_v2  ;;  %v2581_v21 = vadd.f32 %v2454_v48, %v2287_v16  ;;  %v2566_v25 = vadd.f32 %v2419_v8, %v2272_v63  ;;  %v2567_v57 = vadd.f32 %v2419_v8, %v2273_v29 }
 0x2c0   :  { %2664 = vst [vmem:[%s5361_s5 + $0x1b0] sm:$0xff] %v2580_v40  ;;  %2665 = vst.msk [vmem:[%s5361_s5 + $0x1b8] sm:$0xff] %vm1138_vm1, %v2581_v21 }
 0x2c1   :  { %2650 = vst [vmem:[%s5361_s5 + $0x140] sm:$0xff] %v2566_v25  ;;  %2651 = vst.msk [vmem:[%s5361_s5 + $0x148] sm:$0xff] %vm1138_vm1, %v2567_v57  ;;  %v2170_v49 = vpop.permute.xlu0 %2169  ;;  %v2135_v20 = vpop.permute.xlu1 %2134 }
 0x2c2   :  { %v2290_v5 = vmul.f32 %v2170_v49, %v5502_v30  ;;  %v2291_v35 = vmul.f32 %v2170_v49, %v5503_v41  ;;  %v2276_v31 = vmul.f32 %v2135_v20, %v5504_v26  ;;  %v2277_v10 = vmul.f32 %v2135_v20, %v5505_v38  ;;  %v5518_v30 = vld [vmem:[#allocation50_spill] sm:$0xff]  ;;  %v5519_v41 = vld [vmem:[#allocation51_spill] sm:$0xff]  ;;  %v5520_v26 = vld [vmem:[#allocation36_spill] sm:$0xff] }
 0x2c3   :  { %v5521_v38 = vld [vmem:[#allocation37_spill] sm:$0xff] }
 0x2c5   :  { %v2464_v11 = vpop.permute.xlu0 %2463  ;;  %v2429_v13 = vpop.permute.xlu1 %2428 }
 0x2c6   :  { %v2584_v0 = vadd.f32 %v2464_v11, %v2290_v5  ;;  %v2585_v23 = vadd.f32 %v2464_v11, %v2291_v35  ;;  %v2570_v12 = vadd.f32 %v2429_v13, %v2276_v31  ;;  %v2571_v19 = vadd.f32 %v2429_v13, %v2277_v10 }
 0x2c8   :  { %2668 = vst [vmem:[%s5361_s5 + $0x1d0] sm:$0xff] %v2584_v0  ;;  %2669 = vst.msk [vmem:[%s5361_s5 + $0x1d8] sm:$0xff] %vm1138_vm1, %v2585_v23 }
 0x2c9   :  { %2654 = vst [vmem:[%s5361_s5 + $0x160] sm:$0xff] %v2570_v12  ;;  %2655 = vst.msk [vmem:[%s5361_s5 + $0x168] sm:$0xff] %vm1138_vm1, %v2571_v19  ;;  %v2180_v27 = vpop.permute.xlu0 %2179  ;;  %v2145_v56 = vpop.permute.xlu1 %2144 }
 0x2ca   :  { %v2294_v36 = vmul.f32 %v2180_v27, %v5506_v60  ;;  %v2295_v51 = vmul.f32 %v2180_v27, %v5507_v7  ;;  %v2280_v53 = vmul.f32 %v2145_v56, %v5508_v15  ;;  %v2281_v43 = vmul.f32 %v2145_v56, %v5509_v6  ;;  %v5522_v60 = vld [vmem:[#allocation54_spill] sm:$0xff]  ;;  %v5523_v7 = vld [vmem:[#allocation55_spill] sm:$0xff]  ;;  %v5524_v15 = vld [vmem:[#allocation40_spill] sm:$0xff] }
 0x2cb   :  { %v5525_v6 = vld [vmem:[#allocation41_spill] sm:$0xff] }
 0x2cd   :  { %v2474_v34 = vpop.permute.xlu0 %2473  ;;  %v2439_v14 = vpop.permute.xlu1 %2438 }
 0x2ce   :  { %v2588_v18 = vadd.f32 %v2474_v34, %v2294_v36  ;;  %v2589_v46 = vadd.f32 %v2474_v34, %v2295_v51  ;;  %v2574_v4 = vadd.f32 %v2439_v14, %v2280_v53  ;;  %v2575_v1 = vadd.f32 %v2439_v14, %v2281_v43 }
 0x2d0   :  { %2672 = vst [vmem:[%s5361_s5 + $0x1f0] sm:$0xff] %v2588_v18  ;;  %2673 = vst.msk [vmem:[%s5361_s5 + $0x1f8] sm:$0xff] %vm1138_vm1, %v2589_v46 }
 0x2d1   :  { %2658 = vst [vmem:[%s5361_s5 + $0x180] sm:$0xff] %v2574_v4  ;;  %2659 = vst.msk [vmem:[%s5361_s5 + $0x188] sm:$0xff] %vm1138_vm1, %v2575_v1  ;;  %v2190_v42 = vpop.permute.xlu0 %2189  ;;  %v2155_v47 = vpop.permute.xlu1 %2154 }
 0x2d2   :  { %v2298_v37 = vmul.f32 %v2190_v42, %v5510_v33  ;;  %v2299_v44 = vmul.f32 %v2190_v42, %v5511_v62  ;;  %v2284_v39 = vmul.f32 %v2155_v47, %v5512_v59  ;;  %v2285_v52 = vmul.f32 %v2155_v47, %v5513_v17  ;;  %v5526_v33 = vld [vmem:[#allocation58_spill] sm:$0xff]  ;;  %v5527_v62 = vld [vmem:[#allocation59_spill] sm:$0xff]  ;;  %v5528_v59 = vld [vmem:[#allocation44_spill] sm:$0xff] }
 0x2d3   :  { %v5529_v17 = vld [vmem:[#allocation45_spill] sm:$0xff] }
 0x2d5   :  { %v2484_v3 = vpop.permute.xlu0 %2483  ;;  %v2449_v9 = vpop.permute.xlu1 %2448 }
 0x2d6   :  { %v2592_v45 = vadd.f32 %v2484_v3, %v2298_v37  ;;  %v2593_v58 = vadd.f32 %v2484_v3, %v2299_v44  ;;  %v2578_v61 = vadd.f32 %v2449_v9, %v2284_v39  ;;  %v2579_v28 = vadd.f32 %v2449_v9, %v2285_v52 }
 0x2d8   :  { %2676 = vst [vmem:[%s5361_s5 + $0x210] sm:$0xff] %v2592_v45  ;;  %2677 = vst.msk [vmem:[%s5361_s5 + $0x218] sm:$0xff] %vm1138_vm1, %v2593_v58 }
 0x2d9   :  { %2662 = vst [vmem:[%s5361_s5 + $0x1a0] sm:$0xff] %v2578_v61  ;;  %2663 = vst.msk [vmem:[%s5361_s5 + $0x1a8] sm:$0xff] %vm1138_vm1, %v2579_v28  ;;  %v2200_v32 = vpop.permute.xlu0 %2199  ;;  %v2165_v50 = vpop.permute.xlu1 %2164 }
 0x2da   :  { %v2302_v2 = vmul.f32 %v2200_v32, %v5514_v55  ;;  %v2303_v16 = vmul.f32 %v2200_v32, %v5515_v22  ;;  %v2288_v63 = vmul.f32 %v2165_v50, %v5516_v24  ;;  %v2289_v29 = vmul.f32 %v2165_v50, %v5517_v54  ;;  %v5530_v50 = vld [vmem:[#allocation48_spill] sm:$0xff] }
 0x2dd   :  { %v2494_v48 = vpop.permute.xlu0 %2493  ;;  %v2459_v8 = vpop.permute.xlu1 %2458 }
 0x2de   :  { %v2596_v40 = vadd.f32 %v2494_v48, %v2302_v2  ;;  %v2597_v21 = vadd.f32 %v2494_v48, %v2303_v16  ;;  %v2582_v25 = vadd.f32 %v2459_v8, %v2288_v63  ;;  %v2583_v57 = vadd.f32 %v2459_v8, %v2289_v29  ;;  %v5531_v2 = vld [vmem:[#allocation49_spill] sm:$0xff]  ;;  %v5532_v29 = vld [vmem:[#allocation52_spill] sm:$0xff] }
 0x2df   :  { %v5533_v8 = vld [vmem:[#allocation53_spill] sm:$0xff] }
 0x2e0   :  { %2680 = vst [vmem:[%s5361_s5 + $0x230] sm:$0xff] %v2596_v40  ;;  %2681 = vst.msk [vmem:[%s5361_s5 + $0x238] sm:$0xff] %vm1138_vm1, %v2597_v21 }
 0x2e1   :  { %2666 = vst [vmem:[%s5361_s5 + $0x1c0] sm:$0xff] %v2582_v25  ;;  %2667 = vst.msk [vmem:[%s5361_s5 + $0x1c8] sm:$0xff] %vm1138_vm1, %v2583_v57  ;;  %v2210_v49 = vpop.permute.xlu0 %2209  ;;  %v2175_v20 = vpop.permute.xlu1 %2174 }
 0x2e2   :  { %v2306_v5 = vmul.f32 %v2210_v49, %v5518_v30  ;;  %v2307_v35 = vmul.f32 %v2210_v49, %v5519_v41  ;;  %v2292_v31 = vmul.f32 %v2175_v20, %v5520_v26  ;;  %v2293_v10 = vmul.f32 %v2175_v20, %v5521_v38  ;;  %v5534_v20 = vld [vmem:[#allocation56_spill] sm:$0xff] }
 0x2e5   :  { %v2504_v11 = vpop.permute.xlu0 %2503  ;;  %v2469_v13 = vpop.permute.xlu1 %2468 }
 0x2e6   :  { %v2600_v0 = vadd.f32 %v2504_v11, %v2306_v5  ;;  %v2601_v23 = vadd.f32 %v2504_v11, %v2307_v35  ;;  %v2586_v12 = vadd.f32 %v2469_v13, %v2292_v31  ;;  %v2587_v19 = vadd.f32 %v2469_v13, %v2293_v10  ;;  %v5535_v5 = vld [vmem:[#allocation57_spill] sm:$0xff] }
 0x2e8   :  { %2684 = vst [vmem:[%s5361_s5 + $0x250] sm:$0xff] %v2600_v0  ;;  %2685 = vst.msk [vmem:[%s5361_s5 + $0x258] sm:$0xff] %vm1138_vm1, %v2601_v23 }
 0x2e9   :  { %2670 = vst [vmem:[%s5361_s5 + $0x1e0] sm:$0xff] %v2586_v12  ;;  %2671 = vst.msk [vmem:[%s5361_s5 + $0x1e8] sm:$0xff] %vm1138_vm1, %v2587_v19  ;;  %v2220_v27 = vpop.permute.xlu0 %2219  ;;  %v2185_v56 = vpop.permute.xlu1 %2184 }
 0x2ea   :  { %v2310_v36 = vmul.f32 %v2220_v27, %v5522_v60  ;;  %v2311_v51 = vmul.f32 %v2220_v27, %v5523_v7  ;;  %v2296_v53 = vmul.f32 %v2185_v56, %v5524_v15  ;;  %v2297_v43 = vmul.f32 %v2185_v56, %v5525_v6 }
 0x2ed   :  { %v2514_v34 = vpop.permute.xlu0 %2513  ;;  %v2479_v14 = vpop.permute.xlu1 %2478 }
 0x2ee   :  { %v2604_v18 = vadd.f32 %v2514_v34, %v2310_v36  ;;  %v2605_v46 = vadd.f32 %v2514_v34, %v2311_v51  ;;  %v2590_v4 = vadd.f32 %v2479_v14, %v2296_v53  ;;  %v2591_v1 = vadd.f32 %v2479_v14, %v2297_v43 }
 0x2f0   :  { %2688 = vst [vmem:[%s5361_s5 + $0x270] sm:$0xff] %v2604_v18  ;;  %2689 = vst.msk [vmem:[%s5361_s5 + $0x278] sm:$0xff] %vm1138_vm1, %v2605_v46 }
 0x2f1   :  { %2674 = vst [vmem:[%s5361_s5 + $0x200] sm:$0xff] %v2590_v4  ;;  %2675 = vst.msk [vmem:[%s5361_s5 + $0x208] sm:$0xff] %vm1138_vm1, %v2591_v1  ;;  %v2230_v42 = vpop.permute.xlu0 %2229  ;;  %v2195_v47 = vpop.permute.xlu1 %2194 }
 0x2f2   :  { %v2314_v37 = vmul.f32 %v2230_v42, %v5526_v33  ;;  %v2315_v44 = vmul.f32 %v2230_v42, %v5527_v62  ;;  %v2300_v39 = vmul.f32 %v2195_v47, %v5528_v59  ;;  %v2301_v52 = vmul.f32 %v2195_v47, %v5529_v17 }
 0x2f5   :  { %v2524_v3 = vpop.permute.xlu0 %2523  ;;  %v2489_v9 = vpop.permute.xlu1 %2488 }
 0x2f6   :  { %v2608_v45 = vadd.f32 %v2524_v3, %v2314_v37  ;;  %v2609_v58 = vadd.f32 %v2524_v3, %v2315_v44  ;;  %v2594_v61 = vadd.f32 %v2489_v9, %v2300_v39  ;;  %v2595_v28 = vadd.f32 %v2489_v9, %v2301_v52 }
 0x2f8   :  { %2692 = vst [vmem:[%s5361_s5 + $0x290] sm:$0xff] %v2608_v45  ;;  %2693 = vst.msk [vmem:[%s5361_s5 + $0x298] sm:$0xff] %vm1138_vm1, %v2609_v58 }
 0x2f9   :  { %2678 = vst [vmem:[%s5361_s5 + $0x220] sm:$0xff] %v2594_v61  ;;  %2679 = vst.msk [vmem:[%s5361_s5 + $0x228] sm:$0xff] %vm1138_vm1, %v2595_v28  ;;  %v2205_v32 = vpop.permute.xlu1 %2204 }
 0x2fa   :  { %v2304_v55 = vmul.f32 %v2205_v32, %v5530_v50  ;;  %v2305_v22 = vmul.f32 %v2205_v32, %v5531_v2 }
 0x2fd   :  { %v2499_v16 = vpop.permute.xlu1 %2498 }
 0x2fe   :  { %v2598_v24 = vadd.f32 %v2499_v16, %v2304_v55  ;;  %v2599_v63 = vadd.f32 %v2499_v16, %v2305_v22 }
 0x300   :  { %2682 = vst [vmem:[%s5361_s5 + $0x240] sm:$0xff] %v2598_v24  ;;  %2683 = vst.msk [vmem:[%s5361_s5 + $0x248] sm:$0xff] %vm1138_vm1, %v2599_v63 }
 0x301   :  { %v2215_v54 = vpop.permute.xlu1 %2214 }
 0x302   :  { %v2308_v48 = vmul.f32 %v2215_v54, %v5532_v29  ;;  %v2309_v40 = vmul.f32 %v2215_v54, %v5533_v8 }
 0x305   :  { %v2509_v21 = vpop.permute.xlu1 %2508 }
 0x306   :  { %v2602_v25 = vadd.f32 %v2509_v21, %v2308_v48  ;;  %v2603_v57 = vadd.f32 %v2509_v21, %v2309_v40 }
 0x308   :  { %2686 = vst [vmem:[%s5361_s5 + $0x260] sm:$0xff] %v2602_v25  ;;  %2687 = vst.msk [vmem:[%s5361_s5 + $0x268] sm:$0xff] %vm1138_vm1, %v2603_v57 }
 0x309   :  { %v2225_v49 = vpop.permute.xlu1 %2224 }
 0x30a   :  { %v2312_v30 = vmul.f32 %v2225_v49, %v5534_v20  ;;  %v2313_v41 = vmul.f32 %v2225_v49, %v5535_v5 }
 0x30d   :  { %v2519_v35 = vpop.permute.xlu1 %2518 }
 0x30e   :  { %v2606_v26 = vadd.f32 %v2519_v35, %v2312_v30  ;;  %v2607_v31 = vadd.f32 %v2519_v35, %v2313_v41 }
 0x310   :  { %2690 = vst [vmem:[%s5361_s5 + $0x280] sm:$0xff] %v2606_v26  ;;  %2691 = vst.msk [vmem:[%s5361_s5 + $0x288] sm:$0xff] %vm1138_vm1, %v2607_v31 }

</bundles_post_ra>
